<compile_context>
chip_gen: v7x
topology: tpu7x:2x2x1
jax: 0.10.0
libtpu: 0.0.40
codegen_flags: <defaults>
</compile_context>

<pallas_src>
import functools
import math

import jax
import jax.numpy as jnp
from jax import lax
from jax.experimental import pallas as pl
from jax.experimental.pallas import tpu as pltpu

COMPUTE_DTYPE = jnp.bfloat16       # MXU operand dtype (accumulation stays f32)
VMEM_LIMIT = 48 * 1024 * 1024      # fits v7x's 64 MiB VMEM with headroom


# ---------------------------------------------------------------------------
# Linear kernels:  out = x @ w + b       (activation cast to bf16 in-VMEM)
# ---------------------------------------------------------------------------
def _linear_kernel(x_ref, w_ref, b_ref, o_ref):
    x = x_ref[...].astype(COMPUTE_DTYPE)          # VPU cast in VMEM, not an XLA pass
    acc = jnp.dot(x, w_ref[...], preferred_element_type=jnp.float32)
    o_ref[...] = (acc + b_ref[...]).astype(o_ref.dtype)


def _qkv_linear_kernel(x_ref, w_ref, b_ref, oq_ref, okv_ref):
    x = x_ref[...].astype(COMPUTE_DTYPE)
    acc = jnp.dot(x, w_ref[...], preferred_element_type=jnp.float32) + b_ref[...]
    cq = oq_ref.shape[-1]
    oq_ref[...] = acc[:, :cq].astype(oq_ref.dtype)
    okv_ref[...] = acc[:, cq:].astype(okv_ref.dtype)


def _m_tiling(M, tm):
    tm_eff = M if M <= tm else tm                 # tm is a multiple of 8
    return tm_eff, (pl.cdiv(M, tm_eff),)


def linear_pallas(x2d, w, b, *, out_dtype, tm=1024):
    """x2d: (M, K) f32/bf16, w: (K, N) matmul layout, b: (N,)."""
    M, K = x2d.shape
    N = w.shape[1]
    wm = w.astype(COMPUTE_DTYPE)                  # weights are small; cast once here
    bm = b.reshape(1, N).astype(jnp.float32)
    tm_eff, grid = _m_tiling(M, tm)
    bytes_accessed = (M * K * x2d.dtype.itemsize + K * N * 2 + N * 4
                      + M * N * jnp.dtype(out_dtype).itemsize)
    return pl.pallas_call(
        _linear_kernel,
        out_shape=jax.ShapeDtypeStruct((M, N), out_dtype),
        grid_spec=pltpu.PrefetchScalarGridSpec(
            num_scalar_prefetch=0,
            grid=grid,
            in_specs=[
                pl.BlockSpec((tm_eff, K), lambda i: (i, 0)),   # activations, tiled over M
                pl.BlockSpec((K, N), lambda i: (0, 0)),        # weight: block idx constant
                pl.BlockSpec((1, N), lambda i: (0, 0)),        # bias: block idx constant
            ],
            out_specs=pl.BlockSpec((tm_eff, N), lambda i: (i, 0)),
        ),
        compiler_params=pltpu.CompilerParams(
            dimension_semantics=("parallel",), vmem_limit_bytes=VMEM_LIMIT),
        cost_estimate=pl.CostEstimate(
            flops=2 * M * K * N, transcendentals=0, bytes_accessed=bytes_accessed),
    )(x2d, wm, bm)


def qkv_linear_pallas(x2d, w_qkv, b_qkv, C, *, out_dtype, tm=1024):
    """Fused to_q/to_kv projection: x read once, returns (q2:(M,C), kv2:(M,2C))."""
    M, K = x2d.shape
    N3 = w_qkv.shape[1]                           # 3C
    wm = w_qkv.astype(COMPUTE_DTYPE)
    bm = b_qkv.reshape(1, N3).astype(jnp.float32)
    tm_eff, grid = _m_tiling(M, tm)
    bytes_accessed = (M * K * x2d.dtype.itemsize + K * N3 * 2 + N3 * 4
                      + M * N3 * jnp.dtype(out_dtype).itemsize)
    return pl.pallas_call(
        _qkv_linear_kernel,
        out_shape=(jax.ShapeDtypeStruct((M, C), out_dtype),
                   jax.ShapeDtypeStruct((M, N3 - C), out_dtype)),
        grid_spec=pltpu.PrefetchScalarGridSpec(
            num_scalar_prefetch=0,
            grid=grid,
            in_specs=[
                pl.BlockSpec((tm_eff, K), lambda i: (i, 0)),
                pl.BlockSpec((K, N3), lambda i: (0, 0)),
                pl.BlockSpec((1, N3), lambda i: (0, 0)),
            ],
            out_specs=(pl.BlockSpec((tm_eff, C), lambda i: (i, 0)),
                       pl.BlockSpec((tm_eff, N3 - C), lambda i: (i, 0))),
        ),
        compiler_params=pltpu.CompilerParams(
            dimension_semantics=("parallel",), vmem_limit_bytes=VMEM_LIMIT),
        cost_estimate=pl.CostEstimate(
            flops=2 * M * K * N3, transcendentals=0, bytes_accessed=bytes_accessed),
    )(x2d, wm, bm)


# ---------------------------------------------------------------------------
# Fused multi-head attention: head split/merge + softmax entirely in VMEM.
#   q_ref:  (1, tq, C)   bf16, scale already folded into to_q
#   kv_ref: (1, Nkv, 2C) bf16  -> k = kv[:, :C], v = kv[:, C:]
#   o_ref:  (1, tq, C)
# ---------------------------------------------------------------------------
def _attn_kernel(*refs, num_heads, has_mask):
    if has_mask:
        mask_ref, q_ref, kv_ref, o_ref = refs
    else:
        q_ref, kv_ref, o_ref = refs

    q = q_ref[0]                                   # (tq, C)
    kv = kv_ref[0]                                 # (Nkv, 2C)
    C = q.shape[-1]
    Dh = C // num_heads
    k = kv[:, :C]
    v = kv[:, C:]
    bias = mask_ref[0].astype(jnp.float32) if has_mask else None

    for h in range(num_heads):                     # static unroll; per-head scratch only
        lo, hi = h * Dh, (h + 1) * Dh
        # scores (tq, Nkv), f32 accumulate on the MXU
        s = lax.dot_general(q[:, lo:hi], k[:, lo:hi],
                            (((1,), (1,)), ((), ())),
                            preferred_element_type=jnp.float32)
        if bias is not None:
            s = s + bias
        m = jnp.max(s, axis=-1, keepdims=True)
        p = jnp.exp(s - m)                         # EUP
        l = jnp.sum(p, axis=-1, keepdims=True)     # XLU
        pv = lax.dot_general(p.astype(v.dtype), v[:, lo:hi],
                             (((1,), (0,)), ((), ())),
                             preferred_element_type=jnp.float32)   # (tq, Dh)
        # normalize AFTER the PV matmul (tq*Dh mults, not tq*Nkv); approx recip = EUP slot
        o_ref[0, :, lo:hi] = (pv * pl.reciprocal(l, approx=True)).astype(o_ref.dtype)


def attention_core_pallas(q2, kv2, *, num_heads, mask=None, kv_batched=True,
                          out_dtype=None, tq=256):
    """q2: (B, N, C); kv2: (B, Nkv, 2C) if kv_batched else (1, Nkv, 2C);
    mask: (nW, N, Nkv) or None. Returns (B, N, C)."""
    B, N, C = q2.shape
    Nkv = kv2.shape[1]
    H = num_heads
    Dh = C // H
    out_dtype = out_dtype or q2.dtype

    # Query-row tiling (only when it divides N; otherwise one full-N block).
    tq_eff = N if (N <= tq or N % tq != 0) else tq
    nq = N // tq_eff

    kernel = functools.partial(_attn_kernel, num_heads=H, has_mask=mask is not None)
    flops = 4 * B * H * N * Nkv * Dh
    bytes_accessed = (q2.size * q2.dtype.itemsize + kv2.size * kv2.dtype.itemsize
                      + B * N * C * jnp.dtype(out_dtype).itemsize
                      + (mask.size * 4 if mask is not None else 0))
    common = dict(
        out_shape=jax.ShapeDtypeStruct((B, N, C), out_dtype),
        cost_estimate=pl.CostEstimate(flops=flops, transcendentals=B * H * N * Nkv,
                                      bytes_accessed=bytes_accessed),
    )

    if mask is None:
        kvb = (lambda b: b) if kv_batched else (lambda b: 0)
        return pl.pallas_call(
            kernel,
            grid_spec=pltpu.PrefetchScalarGridSpec(
                num_scalar_prefetch=0,
                grid=(B, nq),
                in_specs=[
                    pl.BlockSpec((1, tq_eff, C), lambda b, qi: (b, qi, 0)),
                    # K/V block index ignores qi -> fetched once per batch step
                    pl.BlockSpec((1, Nkv, 2 * C), lambda b, qi: (kvb(b), 0, 0)),
                ],
                out_specs=pl.BlockSpec((1, tq_eff, C), lambda b, qi: (b, qi, 0)),
            ),
            compiler_params=pltpu.CompilerParams(
                dimension_semantics=("parallel", "parallel"),
                vmem_limit_bytes=VMEM_LIMIT),
            **common,
        )(q2, kv2)

    nW = mask.shape[0]
    assert B % nW == 0, f"batch {B} must be a multiple of the window count {nW}"
    # Window index on the slow grid axis so the mask block index repeats across the
    # batch-group axis and its DMA can be skipped (nW fetches instead of B).
    def bidx(w, g):
        return g * nW + w
    kvb = (lambda w, g: bidx(w, g)) if kv_batched else (lambda w, g: 0)
    return pl.pallas_call(
        kernel,
        grid_spec=pltpu.PrefetchScalarGridSpec(
            num_scalar_prefetch=0,
            grid=(nW, B // nW, nq),
            in_specs=[
                pl.BlockSpec((1, tq_eff, Nkv), lambda w, g, qi: (w, qi, 0)),
                pl.BlockSpec((1, tq_eff, C), lambda w, g, qi: (bidx(w, g), qi, 0)),
                pl.BlockSpec((1, Nkv, 2 * C), lambda w, g, qi: (kvb(w, g), 0, 0)),
            ],
            out_specs=pl.BlockSpec((1, tq_eff, C), lambda w, g, qi: (bidx(w, g), qi, 0)),
        ),
        compiler_params=pltpu.CompilerParams(
            dimension_semantics=("parallel", "parallel", "parallel"),
            vmem_limit_bytes=VMEM_LIMIT),
        **common,
    )(mask.astype(jnp.float32), q2, kv2)


# ---------------------------------------------------------------------------
# Full Attention forward (matches the PyTorch module in eval mode)
# ---------------------------------------------------------------------------
def attention_forward(x, params, *, num_heads, attn_kv=None, mask=None, qk_scale=None):
    B, N, C = x.shape
    H = num_heads
    Dh = C // H
    scale = float(qk_scale) if qk_scale is not None else Dh ** (-0.5)

    # Fold the softmax scale into to_q: q*scale == x @ (Wq^T*scale) + bq*scale.
    wq_t = params["wq"].T * scale                  # (C, C) matmul layout
    bq_s = params["bq"] * scale
    wkv_t = params["wkv"].T                        # (C, 2C)
    bkv = params["bkv"]

    if attn_kv is None:
        # Self-attention: fused q/kv projection (x read from HBM once, one launch).
        w_qkv = jnp.concatenate([wq_t, wkv_t], axis=1)     # (C, 3C)
        b_qkv = jnp.concatenate([bq_s, bkv], axis=0)       # (3C,)
        q2, kv2 = qkv_linear_pallas(x.reshape(B * N, C), w_qkv, b_qkv, C,
                                    out_dtype=COMPUTE_DTYPE)
        q2 = q2.reshape(B, N, C)                   # row-major reshapes: no data movement
        kv2 = kv2.reshape(B, N, 2 * C)
        kv_batched = True
    else:
        # Cross-attention: project the shared K/V rows ONCE (no per-batch repeat).
        Nkv = attn_kv.shape[0]
        q2 = linear_pallas(x.reshape(B * N, C), wq_t, bq_s,
                           out_dtype=COMPUTE_DTYPE).reshape(B, N, C)
        kv2 = linear_pallas(attn_kv, wkv_t, bkv,
                            out_dtype=COMPUTE_DTYPE).reshape(1, Nkv, 2 * C)
        kv_batched = False

    # Fused MHSA: heads split/merged inside the kernel, (B, N, C) output slab.
    o = attention_core_pallas(q2, kv2, num_heads=H, mask=mask,
                              kv_batched=kv_batched, out_dtype=COMPUTE_DTYPE)

    # Output projection reads the attention output without any transpose.
    out = linear_pallas(o.reshape(B * N, C), params["wp"].T, params["bp"],
                        out_dtype=x.dtype)
    # TODO(synk): attn_drop / proj_drop omitted (identity in eval mode / p=0.0).
    return out.reshape(B, N, C)


# ---------------------------------------------------------------------------
# Pure-JAX f32 reference mirroring the PyTorch forward exactly
# ---------------------------------------------------------------------------
def _reference(x, params, *, num_heads, attn_kv=None, mask=None, qk_scale=None):
    B, N, C = x.shape
    H = num_heads
    Dh = C // H
    scale = qk_scale if qk_scale is not None else Dh ** (-0.5)
    kv_in = x if attn_kv is None else jnp.broadcast_to(attn_kv[None], (B,) + attn_kv.shape)
    Nkv = kv_in.shape[1]

    q = x @ params["wq"].T + params["bq"]
    kv = kv_in @ params["wkv"].T + params["bkv"]
    q = q.reshape(B, N, H, Dh).transpose(0, 2, 1, 3)
    k = kv[..., :C].reshape(B, Nkv, H, Dh).transpose(0, 2, 1, 3)
    v = kv[..., C:].reshape(B, Nkv, H, Dh).transpose(0, 2, 1, 3)

    attn = (q * scale) @ jnp.swapaxes(k, -1, -2)           # (B, H, N, Nkv)
    if mask is not None:
        nW = mask.shape[0]
        attn = attn.reshape(B // nW, nW, H, N, Nkv) + mask[None, :, None]
        attn = attn.reshape(B, H, N, Nkv)
    attn = jax.nn.softmax(attn, axis=-1)
    out = (attn @ v).transpose(0, 2, 1, 3).reshape(B, N, C)
    return out @ params["wp"].T + params["bp"]


if __name__ == "__main__":
    dim, num_heads = 32, 8
    B, N, Nkv = 2, 64, 48
    nW = 2

    key = jax.random.PRNGKey(0)
    ks = jax.random.split(key, 9)

    def _linear_init(kw, kb, out_f, in_f):
        bound = 1.0 / math.sqrt(in_f)
        w = jax.random.uniform(kw, (out_f, in_f), jnp.float32, -bound, bound)
        b = jax.random.uniform(kb, (out_f,), jnp.float32, -bound, bound)
        return w, b

    wq, bq = _linear_init(ks[0], ks[1], dim, dim)           # to_q   (PyTorch (out,in))
    wkv, bkv = _linear_init(ks[2], ks[3], 2 * dim, dim)     # to_kv
    wp, bp = _linear_init(ks[4], ks[5], dim, dim)           # proj
    params = {"wq": wq, "bq": bq, "wkv": wkv, "bkv": bkv, "wp": wp, "bp": bp}

    x = jax.random.normal(ks[6], (B, N, dim), dtype=jnp.float32)
    mask = jax.random.uniform(ks[7], (nW, N, N), jnp.float32, -1.0, 1.0)
    attn_kv = jax.random.normal(ks[8], (Nkv, dim), dtype=jnp.float32)

    fwd = jax.jit(functools.partial(attention_forward, num_heads=num_heads))

    # 1) self-attention, no mask
    out = jax.block_until_ready(fwd(x, params))
    ref = _reference(x, params, num_heads=num_heads)
    assert out.shape == (B, N, dim), out.shape
    assert jnp.allclose(out, ref, atol=3e-2, rtol=3e-2), \
        float(jnp.max(jnp.abs(out - ref)))

    # 2) self-attention with window mask (B // nW groups of nW windows)
    out_m = jax.block_until_ready(fwd(x, params, mask=mask))
    ref_m = _reference(x, params, num_heads=num_heads, mask=mask)
    assert jnp.allclose(out_m, ref_m, atol=3e-2, rtol=3e-2), \
        float(jnp.max(jnp.abs(out_m - ref_m)))

    # 3) cross-attention with a shared attn_kv (projected once, broadcast in-kernel)
    out_c = jax.block_until_ready(fwd(x, params, attn_kv=attn_kv))
    ref_c = _reference(x, params, num_heads=num_heads, attn_kv=attn_kv)
    assert jnp.allclose(out_c, ref_c, atol=3e-2, rtol=3e-2), \
        float(jnp.max(jnp.abs(out_c - ref_c)))

    print("KERNEL_OK")
</pallas_src>

<mosaic_0001>
module attributes {stable_mosaic.version = 11 : i64} {
  func.func @_linear_kernel(%arg0: i32, %arg1: memref<128x32xbf16, #tpu.memory_space<vmem>>, %arg2: memref<32x32xbf16, #tpu.memory_space<vmem>>, %arg3: memref<1x32xf32, #tpu.memory_space<vmem>>, %arg4: memref<128x32xf32, #tpu.memory_space<vmem>>) attributes {dimension_semantics = [#tpu.dimension_semantics<parallel>], iteration_bounds = array<i64: 1>, scalar_prefetch = 0 : i64, scratch_operands = 0 : i64, tpu.core_type = #tpu.core_type<tc>, window_params = [{transform_indices = @transform_0, window_bounds = array<i64: 128, 32>}, {pipeline_mode = #tpu.pipeline_mode<synchronous>, transform_indices = @transform_1, window_bounds = array<i64: 32, 32>}, {pipeline_mode = #tpu.pipeline_mode<synchronous>, transform_indices = @transform_2, window_bounds = array<i64: 1, 32>}, {transform_indices = @transform_3, window_bounds = array<i64: 128, 32>}]} {
    %c0 = arith.constant 0 : index
    %c0_0 = arith.constant 0 : index
    %0 = vector.load %arg1[%c0, %c0_0] : memref<128x32xbf16, #tpu.memory_space<vmem>>, vector<128x32xbf16>
    %c0_1 = arith.constant 0 : index
    %c0_2 = arith.constant 0 : index
    %1 = vector.load %arg2[%c0_1, %c0_2] : memref<32x32xbf16, #tpu.memory_space<vmem>>, vector<32x32xbf16>
    %cst = arith.constant dense<0.000000e+00> : vector<128x32xf32>
    %2 = tpu.matmul %0, %1, %cst {dimension_numbers = #tpu.dot_dimension_numbers<[1], [0], [0], [1], [0, 0, 1, 1], [], []>} : vector<128x32xbf16>, vector<32x32xbf16>, vector<128x32xf32> -> vector<128x32xf32>
    %c0_3 = arith.constant 0 : index
    %c0_4 = arith.constant 0 : index
    %3 = vector.load %arg3[%c0_3, %c0_4] : memref<1x32xf32, #tpu.memory_space<vmem>>, vector<1x32xf32>
    %4 = vector.broadcast %3 : vector<1x32xf32> to vector<128x32xf32>
    %5 = arith.addf %2, %4 : vector<128x32xf32>
    %c0_5 = arith.constant 0 : index
    %c0_6 = arith.constant 0 : index
    %6 = vector.load %arg4[%c0_5, %c0_6] : memref<128x32xf32, #tpu.memory_space<vmem>>, vector<128x32xf32>
    tpu.vector_store %arg4[%c0_5, %c0_6], %5 {strides = array<i32>} : memref<128x32xf32, #tpu.memory_space<vmem>>, vector<128x32xf32>,
    return
  }
  func.func @transform_0(%arg0: i32) -> (i32, i32) {
    %c0_i32 = arith.constant 0 : i32
    %c0_i32_0 = arith.constant 0 : i32
    return %arg0, %c0_i32 : i32, i32
  }
  func.func @transform_1(%arg0: i32) -> (i32, i32) {
    %c0_i32 = arith.constant 0 : i32
    %c0_i32_0 = arith.constant 0 : i32
    %c0_i32_1 = arith.constant 0 : i32
    return %c0_i32, %c0_i32_0 : i32, i32
  }
  func.func @transform_2(%arg0: i32) -> (i32, i32) {
    %c0_i32 = arith.constant 0 : i32
    %c0_i32_0 = arith.constant 0 : i32
    %c0_i32_1 = arith.constant 0 : i32
    return %c0_i32, %c0_i32_0 : i32, i32
  }
  func.func @transform_3(%arg0: i32) -> (i32, i32) {
    %c0_i32 = arith.constant 0 : i32
    %c0_i32_0 = arith.constant 0 : i32
    return %arg0, %c0_i32 : i32, i32
  }
}

module attributes {stable_mosaic.version = 11 : i64} {
  func.func @_qkv_linear_kernel(%arg0: i32, %arg1: memref<128x32xf32, #tpu.memory_space<vmem>>, %arg2: memref<32x96xbf16, #tpu.memory_space<vmem>>, %arg3: memref<1x96xf32, #tpu.memory_space<vmem>>, %arg4: memref<128x32xbf16, #tpu.memory_space<vmem>>, %arg5: memref<128x64xbf16, #tpu.memory_space<vmem>>) attributes {dimension_semantics = [#tpu.dimension_semantics<parallel>], iteration_bounds = array<i64: 1>, scalar_prefetch = 0 : i64, scratch_operands = 0 : i64, tpu.core_type = #tpu.core_type<tc>, window_params = [{transform_indices = @transform_0, window_bounds = array<i64: 128, 32>}, {pipeline_mode = #tpu.pipeline_mode<synchronous>, transform_indices = @transform_1, window_bounds = array<i64: 32, 96>}, {pipeline_mode = #tpu.pipeline_mode<synchronous>, transform_indices = @transform_2, window_bounds = array<i64: 1, 96>}, {transform_indices = @transform_3, window_bounds = array<i64: 128, 32>}, {transform_indices = @transform_4, window_bounds = array<i64: 128, 64>}]} {
    %c0 = arith.constant 0 : index
    %c0_0 = arith.constant 0 : index
    %0 = vector.load %arg1[%c0, %c0_0] : memref<128x32xf32, #tpu.memory_space<vmem>>, vector<128x32xf32>
    %1 = arith.truncf %0 : vector<128x32xf32> to vector<128x32xbf16>
    %c0_1 = arith.constant 0 : index
    %c0_2 = arith.constant 0 : index
    %2 = vector.load %arg2[%c0_1, %c0_2] : memref<32x96xbf16, #tpu.memory_space<vmem>>, vector<32x96xbf16>
    %cst = arith.constant dense<0.000000e+00> : vector<128x96xf32>
    %3 = tpu.matmul %1, %2, %cst {dimension_numbers = #tpu.dot_dimension_numbers<[1], [0], [0], [1], [0, 0, 1, 1], [], []>} : vector<128x32xbf16>, vector<32x96xbf16>, vector<128x96xf32> -> vector<128x96xf32>
    %c0_3 = arith.constant 0 : index
    %c0_4 = arith.constant 0 : index
    %4 = vector.load %arg3[%c0_3, %c0_4] : memref<1x96xf32, #tpu.memory_space<vmem>>, vector<1x96xf32>
    %5 = vector.broadcast %4 : vector<1x96xf32> to vector<128x96xf32>
    %6 = arith.addf %3, %5 : vector<128x96xf32>
    %7 = vector.extract_strided_slice %6 {offsets = [0, 0], sizes = [128, 32], strides = [1, 1]} : vector<128x96xf32> to vector<128x32xf32>
    %8 = arith.truncf %7 : vector<128x32xf32> to vector<128x32xbf16>
    %c0_5 = arith.constant 0 : index
    %c0_6 = arith.constant 0 : index
    %9 = vector.load %arg4[%c0_5, %c0_6] : memref<128x32xbf16, #tpu.memory_space<vmem>>, vector<128x32xbf16>
    tpu.vector_store %arg4[%c0_5, %c0_6], %8 {strides = array<i32>} : memref<128x32xbf16, #tpu.memory_space<vmem>>, vector<128x32xbf16>,
    %10 = vector.extract_strided_slice %6 {offsets = [0, 32], sizes = [128, 64], strides = [1, 1]} : vector<128x96xf32> to vector<128x64xf32>
    %11 = arith.truncf %10 : vector<128x64xf32> to vector<128x64xbf16>
    %c0_7 = arith.constant 0 : index
    %c0_8 = arith.constant 0 : index
    %12 = vector.load %arg5[%c0_7, %c0_8] : memref<128x64xbf16, #tpu.memory_space<vmem>>, vector<128x64xbf16>
    tpu.vector_store %arg5[%c0_7, %c0_8], %11 {strides = array<i32>} : memref<128x64xbf16, #tpu.memory_space<vmem>>, vector<128x64xbf16>,
    return
  }
  func.func @transform_0(%arg0: i32) -> (i32, i32) {
    %c0_i32 = arith.constant 0 : i32
    %c0_i32_0 = arith.constant 0 : i32
    return %arg0, %c0_i32 : i32, i32
  }
  func.func @transform_1(%arg0: i32) -> (i32, i32) {
    %c0_i32 = arith.constant 0 : i32
    %c0_i32_0 = arith.constant 0 : i32
    %c0_i32_1 = arith.constant 0 : i32
    return %c0_i32, %c0_i32_0 : i32, i32
  }
  func.func @transform_2(%arg0: i32) -> (i32, i32) {
    %c0_i32 = arith.constant 0 : i32
    %c0_i32_0 = arith.constant 0 : i32
    %c0_i32_1 = arith.constant 0 : i32
    return %c0_i32, %c0_i32_0 : i32, i32
  }
  func.func @transform_3(%arg0: i32) -> (i32, i32) {
    %c0_i32 = arith.constant 0 : i32
    %c0_i32_0 = arith.constant 0 : i32
    return %arg0, %c0_i32 : i32, i32
  }
  func.func @transform_4(%arg0: i32) -> (i32, i32) {
    %c0_i32 = arith.constant 0 : i32
    %c0_i32_0 = arith.constant 0 : i32
    return %arg0, %c0_i32 : i32, i32
  }
}

module attributes {stable_mosaic.version = 11 : i64} {
  func.func @_attn_kernel(%arg0: i32, %arg1: i32, %arg2: memref<1x64x32xbf16, #tpu.memory_space<vmem>>, %arg3: memref<1x64x64xbf16, #tpu.memory_space<vmem>>, %arg4: memref<1x64x32xbf16, #tpu.memory_space<vmem>>) attributes {dimension_semantics = [#tpu.dimension_semantics<parallel>, #tpu.dimension_semantics<parallel>], iteration_bounds = array<i64: 2, 1>, scalar_prefetch = 0 : i64, scratch_operands = 0 : i64, tpu.core_type = #tpu.core_type<tc>, window_params = [{transform_indices = @transform_0, window_bounds = array<i64: 1, 64, 32>}, {transform_indices = @transform_1, window_bounds = array<i64: 1, 64, 64>}, {transform_indices = @transform_2, window_bounds = array<i64: 1, 64, 32>}]} {
    %c0 = arith.constant 0 : index
    %c0_0 = arith.constant 0 : index
    %c0_1 = arith.constant 0 : index
    %0 = vector.load %arg2[%c0, %c0_0, %c0_1] : memref<1x64x32xbf16, #tpu.memory_space<vmem>>, vector<1x64x32xbf16>
    %1 = vector.shape_cast %0 : vector<1x64x32xbf16> to vector<64x32xbf16>
    %c0_2 = arith.constant 0 : index
    %c0_3 = arith.constant 0 : index
    %c0_4 = arith.constant 0 : index
    %2 = vector.load %arg3[%c0_2, %c0_3, %c0_4] : memref<1x64x64xbf16, #tpu.memory_space<vmem>>, vector<1x64x64xbf16>
    %3 = vector.shape_cast %2 : vector<1x64x64xbf16> to vector<64x64xbf16>
    %4 = vector.extract_strided_slice %3 {offsets = [0, 0], sizes = [64, 32], strides = [1, 1]} : vector<64x64xbf16> to vector<64x32xbf16>
    %5 = vector.extract_strided_slice %3 {offsets = [0, 32], sizes = [64, 32], strides = [1, 1]} : vector<64x64xbf16> to vector<64x32xbf16>
    %6 = vector.extract_strided_slice %1 {offsets = [0, 0], sizes = [64, 4], strides = [1, 1]} : vector<64x32xbf16> to vector<64x4xbf16>
    %7 = vector.extract_strided_slice %4 {offsets = [0, 0], sizes = [64, 4], strides = [1, 1]} : vector<64x32xbf16> to vector<64x4xbf16>
    %cst = arith.constant dense<0.000000e+00> : vector<64x64xf32>
    %8 = tpu.matmul %6, %7, %cst {dimension_numbers = #tpu.dot_dimension_numbers<[1], [1], [0], [0], [0, 0, 1, 0], [], []>} : vector<64x4xbf16>, vector<64x4xbf16>, vector<64x64xf32> -> vector<64x64xf32>
    %cst_5 = arith.constant dense<0xFF800000> : vector<64xf32>
    %9 = vector.multi_reduction <maximumf>, %8, %cst_5 [1] : vector<64x64xf32> to vector<64xf32>
    %10 = vector.shape_cast %9 : vector<64xf32> to vector<64x1xf32>
    %11 = vector.broadcast %10 : vector<64x1xf32> to vector<64x64xf32>
    %12 = arith.subf %8, %11 : vector<64x64xf32>
    %13 = math.exp %12 : vector<64x64xf32>
    %cst_6 = arith.constant dense<0.000000e+00> : vector<64xf32>
    %14 = vector.multi_reduction <add>, %13, %cst_6 [1] : vector<64x64xf32> to vector<64xf32>
    %15 = vector.shape_cast %14 : vector<64xf32> to vector<64x1xf32>
    %16 = arith.truncf %13 : vector<64x64xf32> to vector<64x64xbf16>
    %17 = vector.extract_strided_slice %5 {offsets = [0, 0], sizes = [64, 4], strides = [1, 1]} : vector<64x32xbf16> to vector<64x4xbf16>
    %cst_7 = arith.constant dense<0.000000e+00> : vector<64x4xf32>
    %18 = tpu.matmul %16, %17, %cst_7 {dimension_numbers = #tpu.dot_dimension_numbers<[1], [0], [0], [1], [0, 0, 1, 1], [], []>} : vector<64x64xbf16>, vector<64x4xbf16>, vector<64x4xf32> -> vector<64x4xf32>
    %19 = tpu.reciprocal %15 {approx = true} : vector<64x1xf32> -> vector<64x1xf32>
    %20 = vector.broadcast %19 : vector<64x1xf32> to vector<64x4xf32>
    %21 = arith.mulf %18, %20 : vector<64x4xf32>
    %22 = arith.truncf %21 : vector<64x4xf32> to vector<64x4xbf16>
    %c0_8 = arith.constant 0 : index
    %c0_9 = arith.constant 0 : index
    %c0_10 = arith.constant 0 : index
    %23 = vector.load %arg4[%c0_8, %c0_9, %c0_10] : memref<1x64x32xbf16, #tpu.memory_space<vmem>>, vector<1x64x4xbf16>
    %24 = vector.shape_cast %23 : vector<1x64x4xbf16> to vector<64x4xbf16>
    %25 = vector.shape_cast %22 : vector<64x4xbf16> to vector<1x64x4xbf16>
    tpu.vector_store %arg4[%c0_8, %c0_9, %c0_10], %25 {strides = array<i32>} : memref<1x64x32xbf16, #tpu.memory_space<vmem>>, vector<1x64x4xbf16>,
    %26 = vector.extract_strided_slice %1 {offsets = [0, 4], sizes = [64, 4], strides = [1, 1]} : vector<64x32xbf16> to vector<64x4xbf16>
    %27 = vector.extract_strided_slice %4 {offsets = [0, 4], sizes = [64, 4], strides = [1, 1]} : vector<64x32xbf16> to vector<64x4xbf16>
    %cst_11 = arith.constant dense<0.000000e+00> : vector<64x64xf32>
    %28 = tpu.matmul %26, %27, %cst_11 {dimension_numbers = #tpu.dot_dimension_numbers<[1], [1], [0], [0], [0, 0, 1, 0], [], []>} : vector<64x4xbf16>, vector<64x4xbf16>, vector<64x64xf32> -> vector<64x64xf32>
    %cst_12 = arith.constant dense<0xFF800000> : vector<64xf32>
    %29 = vector.multi_reduction <maximumf>, %28, %cst_12 [1] : vector<64x64xf32> to vector<64xf32>
    %30 = vector.shape_cast %29 : vector<64xf32> to vector<64x1xf32>
    %31 = vector.broadcast %30 : vector<64x1xf32> to vector<64x64xf32>
    %32 = arith.subf %28, %31 : vector<64x64xf32>
    %33 = math.exp %32 : vector<64x64xf32>
    %cst_13 = arith.constant dense<0.000000e+00> : vector<64xf32>
    %34 = vector.multi_reduction <add>, %33, %cst_13 [1] : vector<64x64xf32> to vector<64xf32>
    %35 = vector.shape_cast %34 : vector<64xf32> to vector<64x1xf32>
    %36 = arith.truncf %33 : vector<64x64xf32> to vector<64x64xbf16>
    %37 = vector.extract_strided_slice %5 {offsets = [0, 4], sizes = [64, 4], strides = [1, 1]} : vector<64x32xbf16> to vector<64x4xbf16>
    %cst_14 = arith.constant dense<0.000000e+00> : vector<64x4xf32>
    %38 = tpu.matmul %36, %37, %cst_14 {dimension_numbers = #tpu.dot_dimension_numbers<[1], [0], [0], [1], [0, 0, 1, 1], [], []>} : vector<64x64xbf16>, vector<64x4xbf16>, vector<64x4xf32> -> vector<64x4xf32>
    %39 = tpu.reciprocal %35 {approx = true} : vector<64x1xf32> -> vector<64x1xf32>
    %40 = vector.broadcast %39 : vector<64x1xf32> to vector<64x4xf32>
    %41 = arith.mulf %38, %40 : vector<64x4xf32>
    %42 = arith.truncf %41 : vector<64x4xf32> to vector<64x4xbf16>
    %c0_15 = arith.constant 0 : index
    %c0_16 = arith.constant 0 : index
    %c4 = arith.constant 4 : index
    %43 = vector.load %arg4[%c0_15, %c0_16, %c4] : memref<1x64x32xbf16, #tpu.memory_space<vmem>>, vector<1x64x4xbf16>
    %44 = vector.shape_cast %43 : vector<1x64x4xbf16> to vector<64x4xbf16>
    %45 = vector.shape_cast %42 : vector<64x4xbf16> to vector<1x64x4xbf16>
    tpu.vector_store %arg4[%c0_15, %c0_16, %c4], %45 {strides = array<i32>} : memref<1x64x32xbf16, #tpu.memory_space<vmem>>, vector<1x64x4xbf16>,
    %46 = vector.extract_strided_slice %1 {offsets = [0, 8], sizes = [64, 4], strides = [1, 1]} : vector<64x32xbf16> to vector<64x4xbf16>
    %47 = vector.extract_strided_slice %4 {offsets = [0, 8], sizes = [64, 4], strides = [1, 1]} : vector<64x32xbf16> to vector<64x4xbf16>
    %cst_17 = arith.constant dense<0.000000e+00> : vector<64x64xf32>
    %48 = tpu.matmul %46, %47, %cst_17 {dimension_numbers = #tpu.dot_dimension_numbers<[1], [1], [0], [0], [0, 0, 1, 0], [], []>} : vector<64x4xbf16>, vector<64x4xbf16>, vector<64x64xf32> -> vector<64x64xf32>
    %cst_18 = arith.constant dense<0xFF800000> : vector<64xf32>
    %49 = vector.multi_reduction <maximumf>, %48, %cst_18 [1] : vector<64x64xf32> to vector<64xf32>
    %50 = vector.shape_cast %49 : vector<64xf32> to vector<64x1xf32>
    %51 = vector.broadcast %50 : vector<64x1xf32> to vector<64x64xf32>
    %52 = arith.subf %48, %51 : vector<64x64xf32>
    %53 = math.exp %52 : vector<64x64xf32>
    %cst_19 = arith.constant dense<0.000000e+00> : vector<64xf32>
    %54 = vector.multi_reduction <add>, %53, %cst_19 [1] : vector<64x64xf32> to vector<64xf32>
    %55 = vector.shape_cast %54 : vector<64xf32> to vector<64x1xf32>
    %56 = arith.truncf %53 : vector<64x64xf32> to vector<64x64xbf16>
    %57 = vector.extract_strided_slice %5 {offsets = [0, 8], sizes = [64, 4], strides = [1, 1]} : vector<64x32xbf16> to vector<64x4xbf16>
    %cst_20 = arith.constant dense<0.000000e+00> : vector<64x4xf32>
    %58 = tpu.matmul %56, %57, %cst_20 {dimension_numbers = #tpu.dot_dimension_numbers<[1], [0], [0], [1], [0, 0, 1, 1], [], []>} : vector<64x64xbf16>, vector<64x4xbf16>, vector<64x4xf32> -> vector<64x4xf32>
    %59 = tpu.reciprocal %55 {approx = true} : vector<64x1xf32> -> vector<64x1xf32>
    %60 = vector.broadcast %59 : vector<64x1xf32> to vector<64x4xf32>
    %61 = arith.mulf %58, %60 : vector<64x4xf32>
    %62 = arith.truncf %61 : vector<64x4xf32> to vector<64x4xbf16>
    %c0_21 = arith.constant 0 : index
    %c0_22 = arith.constant 0 : index
    %c8 = arith.constant 8 : index
    %63 = vector.load %arg4[%c0_21, %c0_22, %c8] : memref<1x64x32xbf16, #tpu.memory_space<vmem>>, vector<1x64x4xbf16>
    %64 = vector.shape_cast %63 : vector<1x64x4xbf16> to vector<64x4xbf16>
    %65 = vector.shape_cast %62 : vector<64x4xbf16> to vector<1x64x4xbf16>
    tpu.vector_store %arg4[%c0_21, %c0_22, %c8], %65 {strides = array<i32>} : memref<1x64x32xbf16, #tpu.memory_space<vmem>>, vector<1x64x4xbf16>,
    %66 = vector.extract_strided_slice %1 {offsets = [0, 12], sizes = [64, 4], strides = [1, 1]} : vector<64x32xbf16> to vector<64x4xbf16>
    %67 = vector.extract_strided_slice %4 {offsets = [0, 12], sizes = [64, 4], strides = [1, 1]} : vector<64x32xbf16> to vector<64x4xbf16>
    %cst_23 = arith.constant dense<0.000000e+00> : vector<64x64xf32>
    %68 = tpu.matmul %66, %67, %cst_23 {dimension_numbers = #tpu.dot_dimension_numbers<[1], [1], [0], [0], [0, 0, 1, 0], [], []>} : vector<64x4xbf16>, vector<64x4xbf16>, vector<64x64xf32> -> vector<64x64xf32>
    %cst_24 = arith.constant dense<0xFF800000> : vector<64xf32>
    %69 = vector.multi_reduction <maximumf>, %68, %cst_24 [1] : vector<64x64xf32> to vector<64xf32>
    %70 = vector.shape_cast %69 : vector<64xf32> to vector<64x1xf32>
    %71 = vector.broadcast %70 : vector<64x1xf32> to vector<64x64xf32>
    %72 = arith.subf %68, %71 : vector<64x64xf32>
    %73 = math.exp %72 : vector<64x64xf32>
    %cst_25 = arith.constant dense<0.000000e+00> : vector<64xf32>
    %74 = vector.multi_reduction <add>, %73, %cst_25 [1] : vector<64x64xf32> to vector<64xf32>
    %75 = vector.shape_cast %74 : vector<64xf32> to vector<64x1xf32>
    %76 = arith.truncf %73 : vector<64x64xf32> to vector<64x64xbf16>
    %77 = vector.extract_strided_slice %5 {offsets = [0, 12], sizes = [64, 4], strides = [1, 1]} : vector<64x32xbf16> to vector<64x4xbf16>
    %cst_26 = arith.constant dense<0.000000e+00> : vector<64x4xf32>
    %78 = tpu.matmul %76, %77, %cst_26 {dimension_numbers = #tpu.dot_dimension_numbers<[1], [0], [0], [1], [0, 0, 1, 1], [], []>} : vector<64x64xbf16>, vector<64x4xbf16>, vector<64x4xf32> -> vector<64x4xf32>
    %79 = tpu.reciprocal %75 {approx = true} : vector<64x1xf32> -> vector<64x1xf32>
    %80 = vector.broadcast %79 : vector<64x1xf32> to vector<64x4xf32>
    %81 = arith.mulf %78, %80 : vector<64x4xf32>
    %82 = arith.truncf %81 : vector<64x4xf32> to vector<64x4xbf16>
    %c0_27 = arith.constant 0 : index
    %c0_28 = arith.constant 0 : index
    %c12 = arith.constant 12 : index
    %83 = vector.load %arg4[%c0_27, %c0_28, %c12] : memref<1x64x32xbf16, #tpu.memory_space<vmem>>, vector<1x64x4xbf16>
    %84 = vector.shape_cast %83 : vector<1x64x4xbf16> to vector<64x4xbf16>
    %85 = vector.shape_cast %82 : vector<64x4xbf16> to vector<1x64x4xbf16>
    tpu.vector_store %arg4[%c0_27, %c0_28, %c12], %85 {strides = array<i32>} : memref<1x64x32xbf16, #tpu.memory_space<vmem>>, vector<1x64x4xbf16>,
    %86 = vector.extract_strided_slice %1 {offsets = [0, 16], sizes = [64, 4], strides = [1, 1]} : vector<64x32xbf16> to vector<64x4xbf16>
    %87 = vector.extract_strided_slice %4 {offsets = [0, 16], sizes = [64, 4], strides = [1, 1]} : vector<64x32xbf16> to vector<64x4xbf16>
    %cst_29 = arith.constant dense<0.000000e+00> : vector<64x64xf32>
    %88 = tpu.matmul %86, %87, %cst_29 {dimension_numbers = #tpu.dot_dimension_numbers<[1], [1], [0], [0], [0, 0, 1, 0], [], []>} : vector<64x4xbf16>, vector<64x4xbf16>, vector<64x64xf32> -> vector<64x64xf32>
    %cst_30 = arith.constant dense<0xFF800000> : vector<64xf32>
    %89 = vector.multi_reduction <maximumf>, %88, %cst_30 [1] : vector<64x64xf32> to vector<64xf32>
    %90 = vector.shape_cast %89 : vector<64xf32> to vector<64x1xf32>
    %91 = vector.broadcast %90 : vector<64x1xf32> to vector<64x64xf32>
    %92 = arith.subf %88, %91 : vector<64x64xf32>
    %93 = math.exp %92 : vector<64x64xf32>
    %cst_31 = arith.constant dense<0.000000e+00> : vector<64xf32>
    %94 = vector.multi_reduction <add>, %93, %cst_31 [1] : vector<64x64xf32> to vector<64xf32>
    %95 = vector.shape_cast %94 : vector<64xf32> to vector<64x1xf32>
    %96 = arith.truncf %93 : vector<64x64xf32> to vector<64x64xbf16>
    %97 = vector.extract_strided_slice %5 {offsets = [0, 16], sizes = [64, 4], strides = [1, 1]} : vector<64x32xbf16> to vector<64x4xbf16>
    %cst_32 = arith.constant dense<0.000000e+00> : vector<64x4xf32>
    %98 = tpu.matmul %96, %97, %cst_32 {dimension_numbers = #tpu.dot_dimension_numbers<[1], [0], [0], [1], [0, 0, 1, 1], [], []>} : vector<64x64xbf16>, vector<64x4xbf16>, vector<64x4xf32> -> vector<64x4xf32>
    %99 = tpu.reciprocal %95 {approx = true} : vector<64x1xf32> -> vector<64x1xf32>
    %100 = vector.broadcast %99 : vector<64x1xf32> to vector<64x4xf32>
    %101 = arith.mulf %98, %100 : vector<64x4xf32>
    %102 = arith.truncf %101 : vector<64x4xf32> to vector<64x4xbf16>
    %c0_33 = arith.constant 0 : index
    %c0_34 = arith.constant 0 : index
    %c16 = arith.constant 16 : index
    %103 = vector.load %arg4[%c0_33, %c0_34, %c16] : memref<1x64x32xbf16, #tpu.memory_space<vmem>>, vector<1x64x4xbf16>
    %104 = vector.shape_cast %103 : vector<1x64x4xbf16> to vector<64x4xbf16>
    %105 = vector.shape_cast %102 : vector<64x4xbf16> to vector<1x64x4xbf16>
    tpu.vector_store %arg4[%c0_33, %c0_34, %c16], %105 {strides = array<i32>} : memref<1x64x32xbf16, #tpu.memory_space<vmem>>, vector<1x64x4xbf16>,
    %106 = vector.extract_strided_slice %1 {offsets = [0, 20], sizes = [64, 4], strides = [1, 1]} : vector<64x32xbf16> to vector<64x4xbf16>
    %107 = vector.extract_strided_slice %4 {offsets = [0, 20], sizes = [64, 4], strides = [1, 1]} : vector<64x32xbf16> to vector<64x4xbf16>
    %cst_35 = arith.constant dense<0.000000e+00> : vector<64x64xf32>
    %108 = tpu.matmul %106, %107, %cst_35 {dimension_numbers = #tpu.dot_dimension_numbers<[1], [1], [0], [0], [0, 0, 1, 0], [], []>} : vector<64x4xbf16>, vector<64x4xbf16>, vector<64x64xf32> -> vector<64x64xf32>
    %cst_36 = arith.constant dense<0xFF800000> : vector<64xf32>
    %109 = vector.multi_reduction <maximumf>, %108, %cst_36 [1] : vector<64x64xf32> to vector<64xf32>
    %110 = vector.shape_cast %109 : vector<64xf32> to vector<64x1xf32>
    %111 = vector.broadcast %110 : vector<64x1xf32> to vector<64x64xf32>
    %112 = arith.subf %108, %111 : vector<64x64xf32>
    %113 = math.exp %112 : vector<64x64xf32>
    %cst_37 = arith.constant dense<0.000000e+00> : vector<64xf32>
    %114 = vector.multi_reduction <add>, %113, %cst_37 [1] : vector<64x64xf32> to vector<64xf32>
    %115 = vector.shape_cast %114 : vector<64xf32> to vector<64x1xf32>
    %116 = arith.truncf %113 : vector<64x64xf32> to vector<64x64xbf16>
    %117 = vector.extract_strided_slice %5 {offsets = [0, 20], sizes = [64, 4], strides = [1, 1]} : vector<64x32xbf16> to vector<64x4xbf16>
    %cst_38 = arith.constant dense<0.000000e+00> : vector<64x4xf32>
    %118 = tpu.matmul %116, %117, %cst_38 {dimension_numbers = #tpu.dot_dimension_numbers<[1], [0], [0], [1], [0, 0, 1, 1], [], []>} : vector<64x64xbf16>, vector<64x4xbf16>, vector<64x4xf32> -> vector<64x4xf32>
    %119 = tpu.reciprocal %115 {approx = true} : vector<64x1xf32> -> vector<64x1xf32>
    %120 = vector.broadcast %119 : vector<64x1xf32> to vector<64x4xf32>
    %121 = arith.mulf %118, %120 : vector<64x4xf32>
    %122 = arith.truncf %121 : vector<64x4xf32> to vector<64x4xbf16>
    %c0_39 = arith.constant 0 : index
    %c0_40 = arith.constant 0 : index
    %c20 = arith.constant 20 : index
    %123 = vector.load %arg4[%c0_39, %c0_40, %c20] : memref<1x64x32xbf16, #tpu.memory_space<vmem>>, vector<1x64x4xbf16>
    %124 = vector.shape_cast %123 : vector<1x64x4xbf16> to vector<64x4xbf16>
    %125 = vector.shape_cast %122 : vector<64x4xbf16> to vector<1x64x4xbf16>
    tpu.vector_store %arg4[%c0_39, %c0_40, %c20], %125 {strides = array<i32>} : memref<1x64x32xbf16, #tpu.memory_space<vmem>>, vector<1x64x4xbf16>,
    %126 = vector.extract_strided_slice %1 {offsets = [0, 24], sizes = [64, 4], strides = [1, 1]} : vector<64x32xbf16> to vector<64x4xbf16>
    %127 = vector.extract_strided_slice %4 {offsets = [0, 24], sizes = [64, 4], strides = [1, 1]} : vector<64x32xbf16> to vector<64x4xbf16>
    %cst_41 = arith.constant dense<0.000000e+00> : vector<64x64xf32>
    %128 = tpu.matmul %126, %127, %cst_41 {dimension_numbers = #tpu.dot_dimension_numbers<[1], [1], [0], [0], [0, 0, 1, 0], [], []>} : vector<64x4xbf16>, vector<64x4xbf16>, vector<64x64xf32> -> vector<64x64xf32>
    %cst_42 = arith.constant dense<0xFF800000> : vector<64xf32>
    %129 = vector.multi_reduction <maximumf>, %128, %cst_42 [1] : vector<64x64xf32> to vector<64xf32>
    %130 = vector.shape_cast %129 : vector<64xf32> to vector<64x1xf32>
    %131 = vector.broadcast %130 : vector<64x1xf32> to vector<64x64xf32>
    %132 = arith.subf %128, %131 : vector<64x64xf32>
    %133 = math.exp %132 : vector<64x64xf32>
    %cst_43 = arith.constant dense<0.000000e+00> : vector<64xf32>
    %134 = vector.multi_reduction <add>, %133, %cst_43 [1] : vector<64x64xf32> to vector<64xf32>
    %135 = vector.shape_cast %134 : vector<64xf32> to vector<64x1xf32>
    %136 = arith.truncf %133 : vector<64x64xf32> to vector<64x64xbf16>
    %137 = vector.extract_strided_slice %5 {offsets = [0, 24], sizes = [64, 4], strides = [1, 1]} : vector<64x32xbf16> to vector<64x4xbf16>
    %cst_44 = arith.constant dense<0.000000e+00> : vector<64x4xf32>
    %138 = tpu.matmul %136, %137, %cst_44 {dimension_numbers = #tpu.dot_dimension_numbers<[1], [0], [0], [1], [0, 0, 1, 1], [], []>} : vector<64x64xbf16>, vector<64x4xbf16>, vector<64x4xf32> -> vector<64x4xf32>
    %139 = tpu.reciprocal %135 {approx = true} : vector<64x1xf32> -> vector<64x1xf32>
    %140 = vector.broadcast %139 : vector<64x1xf32> to vector<64x4xf32>
    %141 = arith.mulf %138, %140 : vector<64x4xf32>
    %142 = arith.truncf %141 : vector<64x4xf32> to vector<64x4xbf16>
    %c0_45 = arith.constant 0 : index
    %c0_46 = arith.constant 0 : index
    %c24 = arith.constant 24 : index
    %143 = vector.load %arg4[%c0_45, %c0_46, %c24] : memref<1x64x32xbf16, #tpu.memory_space<vmem>>, vector<1x64x4xbf16>
    %144 = vector.shape_cast %143 : vector<1x64x4xbf16> to vector<64x4xbf16>
    %145 = vector.shape_cast %142 : vector<64x4xbf16> to vector<1x64x4xbf16>
    tpu.vector_store %arg4[%c0_45, %c0_46, %c24], %145 {strides = array<i32>} : memref<1x64x32xbf16, #tpu.memory_space<vmem>>, vector<1x64x4xbf16>,
    %146 = vector.extract_strided_slice %1 {offsets = [0, 28], sizes = [64, 4], strides = [1, 1]} : vector<64x32xbf16> to vector<64x4xbf16>
    %147 = vector.extract_strided_slice %4 {offsets = [0, 28], sizes = [64, 4], strides = [1, 1]} : vector<64x32xbf16> to vector<64x4xbf16>
    %cst_47 = arith.constant dense<0.000000e+00> : vector<64x64xf32>
    %148 = tpu.matmul %146, %147, %cst_47 {dimension_numbers = #tpu.dot_dimension_numbers<[1], [1], [0], [0], [0, 0, 1, 0], [], []>} : vector<64x4xbf16>, vector<64x4xbf16>, vector<64x64xf32> -> vector<64x64xf32>
    %cst_48 = arith.constant dense<0xFF800000> : vector<64xf32>
    %149 = vector.multi_reduction <maximumf>, %148, %cst_48 [1] : vector<64x64xf32> to vector<64xf32>
    %150 = vector.shape_cast %149 : vector<64xf32> to vector<64x1xf32>
    %151 = vector.broadcast %150 : vector<64x1xf32> to vector<64x64xf32>
    %152 = arith.subf %148, %151 : vector<64x64xf32>
    %153 = math.exp %152 : vector<64x64xf32>
    %cst_49 = arith.constant dense<0.000000e+00> : vector<64xf32>
    %154 = vector.multi_reduction <add>, %153, %cst_49 [1] : vector<64x64xf32> to vector<64xf32>
    %155 = vector.shape_cast %154 : vector<64xf32> to vector<64x1xf32>
    %156 = arith.truncf %153 : vector<64x64xf32> to vector<64x64xbf16>
    %157 = vector.extract_strided_slice %5 {offsets = [0, 28], sizes = [64, 4], strides = [1, 1]} : vector<64x32xbf16> to vector<64x4xbf16>
    %cst_50 = arith.constant dense<0.000000e+00> : vector<64x4xf32>
    %158 = tpu.matmul %156, %157, %cst_50 {dimension_numbers = #tpu.dot_dimension_numbers<[1], [0], [0], [1], [0, 0, 1, 1], [], []>} : vector<64x64xbf16>, vector<64x4xbf16>, vector<64x4xf32> -> vector<64x4xf32>
    %159 = tpu.reciprocal %155 {approx = true} : vector<64x1xf32> -> vector<64x1xf32>
    %160 = vector.broadcast %159 : vector<64x1xf32> to vector<64x4xf32>
    %161 = arith.mulf %158, %160 : vector<64x4xf32>
    %162 = arith.truncf %161 : vector<64x4xf32> to vector<64x4xbf16>
    %c0_51 = arith.constant 0 : index
    %c0_52 = arith.constant 0 : index
    %c28 = arith.constant 28 : index
    %163 = vector.load %arg4[%c0_51, %c0_52, %c28] : memref<1x64x32xbf16, #tpu.memory_space<vmem>>, vector<1x64x4xbf16>
    %164 = vector.shape_cast %163 : vector<1x64x4xbf16> to vector<64x4xbf16>
    %165 = vector.shape_cast %162 : vector<64x4xbf16> to vector<1x64x4xbf16>
    tpu.vector_store %arg4[%c0_51, %c0_52, %c28], %165 {strides = array<i32>} : memref<1x64x32xbf16, #tpu.memory_space<vmem>>, vector<1x64x4xbf16>,
    return
  }
  func.func @transform_0(%arg0: i32, %arg1: i32) -> (i32, i32, i32) {
    %c0_i32 = arith.constant 0 : i32
    %c0_i32_0 = arith.constant 0 : i32
    return %arg0, %arg1, %c0_i32 : i32, i32, i32
  }
  func.func @transform_1(%arg0: i32, %arg1: i32) -> (i32, i32, i32) {
    %c0_i32 = arith.constant 0 : i32
    %c0_i32_0 = arith.constant 0 : i32
    %c0_i32_1 = arith.constant 0 : i32
    return %arg0, %c0_i32, %c0_i32_0 : i32, i32, i32
  }
  func.func @transform_2(%arg0: i32, %arg1: i32) -> (i32, i32, i32) {
    %c0_i32 = arith.constant 0 : i32
    %c0_i32_0 = arith.constant 0 : i32
    return %arg0, %arg1, %c0_i32 : i32, i32, i32
  }
}

</mosaic_0001>

<bundles_post_ra>
// kernel: attention_forward.5
= control target key start
LH: loop header
LB: loop body
LE: loop exit
PB: predicated region body
PF: predicated region fallthrough
CT: control target
= control target key end

     0   :  { %vm94_vm0 = vcmask 261120   ;;  %s424_s1 = inlined_call_operand.vmem [shape: bf16[32,32], index: 1, kind: input, shape index: {}]   ;;  %s425_s0 = inlined_call_operand.vmem [shape: bf16[128,32], index: 0, kind: input, shape index: {}]   ;;  %s426_s2 = inlined_call_operand.vmem [shape: f32[1,32], index: 2, kind: input, shape index: {}]   ;;  %s427_s3 = inlined_call_operand.vmem [shape: f32[128,32], index: 3, kind: output, shape index: {}]  }
   0x1   :  { %v289_v0 = vld [vmem:[%s424_s1] sm:$0xff]   ;;  %v290_v1 = vld [vmem:[%s424_s1 + $0x8] sm:$0xff]   ;;  %v295_v6 = vld [vmem:[%s425_s0 + $0x10] sm:$0xff]  }
   0x2   :  { %265 = vmatprep.subr.bf16.mxu0 %v289_v0  ;;  %285 = vmatprep.subr.bf16.mxu1 %v289_v0  ;;  %v291_v2 = vld [vmem:[%s425_s0] sm:$0xff]   ;;  %v293_v4 = vld [vmem:[%s425_s0 + $0x8] sm:$0xff]   ;;  %v296_v7 = vld [vmem:[%s425_s0 + $0x30] sm:$0xff]  }
   0x3   :  { %266 = vmatpush3.bf16.msra.mxu0 %v289_v0  ;;  %287 = vmatpush3.bf16.msra.mxu1 %v289_v0  ;;  %v292_v3 = vld [vmem:[%s425_s0 + $0x20] sm:$0xff]   ;;  %v294_v5 = vld [vmem:[%s425_s0 + $0x28] sm:$0xff]   ;;  %v297_v8 = vld [vmem:[%s425_s0 + $0x18] sm:$0xff]  }
   0x4   :  { %267 = vmatprep.subr.bf16.mxu0 %v290_v1  ;;  %286 = vmatprep.subr.bf16.mxu1 %v290_v1  ;;  %v298_v9 = vld [vmem:[%s425_s0 + $0x38] sm:$0xff]   ;;  %v236_v10 = vld [vmem:[%s426_s2] ss:$0 sm:$0xff] }
   0x5   :  { %269 = vmatprep.mubr.msk.bf16.mxu0 %vm94_vm0, %v291_v2  ;;  %277 = vmatprep.mubr.msk.bf16.mxu1 %vm94_vm0, %v292_v3 }
   0x7   :  { %268 = vmatpush3.bf16.msra.mxu0 %v290_v1  ;;  %288 = vmatpush3.bf16.msra.mxu1 %v290_v1 }
   0xa   :  { %270 = vmatmul.mubr.msk.bf16.vlgmr.msra.gmra.mrb[0].mxu0 %vm94_vm0, %v293_v4  ;;  %278 = vmatmul.mubr.msk.bf16.vlgmr.msra.gmra.mrb[0].mxu1 %vm94_vm0, %v294_v5 }
   0xb   :  { %273 = vmatprep.mubr.msk.bf16.mxu0 %vm94_vm0, %v295_v6  ;;  %281 = vmatprep.mubr.msk.bf16.mxu1 %vm94_vm0, %v296_v7 }
  0x12   :  { %274 = vmatmul.mubr.msk.bf16.gmra.mrb[4].mxu0 %vm94_vm0, %v297_v8  ;;  %282 = vmatmul.mubr.msk.bf16.gmra.mrb[4].mxu1 %vm94_vm0, %v298_v9 }
  0xdd   :  { %v271_v11 = vpop.f32.mrb[0].mxu0  ;;  %v279_v12 = vpop.f32.mrb[0].mxu1 }
  0xde   :  { %v162_v13 = vadd.f32 %v271_v11, %v236_v10  ;;  %v194_v14 = vadd.f32 %v279_v12, %v236_v10  ;;  %v153_v15 = vpop.f32.mrb[1].mxu0  ;;  %v185_v16 = vpop.f32.mrb[1].mxu1 }
  0xdf   :  { %v154_v17 = vadd.f32 %v236_v10, %v153_v15  ;;  %v186_v18 = vadd.f32 %v236_v10, %v185_v16  ;;  %v272_v19 = vpop.f32.mrb[2].mxu0  ;;  %v280_v20 = vpop.f32.mrb[2].mxu1 }
  0xe0   :  { %218 = vst.msk [vmem:[%s427_s3 + $0x10] sm:$0xff] %vm94_vm0, %v162_v13  ;;  %226 = vst.msk [vmem:[%s427_s3 + $0x50] sm:$0xff] %vm94_vm0, %v194_v14  ;;  %v165_v21 = vadd.f32 %v272_v19, %v236_v10  ;;  %v197_v22 = vadd.f32 %v280_v20, %v236_v10  ;;  %v156_v23 = vpop.f32.mrb[3].mxu0  ;;  %v188_v24 = vpop.f32.mrb[3].mxu1 }
  0xe1   :  { %216 = vst.msk [vmem:[%s427_s3] sm:$0xff] %vm94_vm0, %v154_v17  ;;  %224 = vst.msk [vmem:[%s427_s3 + $0x40] sm:$0xff] %vm94_vm0, %v186_v18  ;;  %v157_v25 = vadd.f32 %v236_v10, %v156_v23  ;;  %v189_v26 = vadd.f32 %v236_v10, %v188_v24 }
  0xe2   :  { %219 = vst.msk [vmem:[%s427_s3 + $0x18] sm:$0xff] %vm94_vm0, %v165_v21  ;;  %227 = vst.msk [vmem:[%s427_s3 + $0x58] sm:$0xff] %vm94_vm0, %v197_v22 }
  0xe3   :  { %217 = vst.msk [vmem:[%s427_s3 + $0x8] sm:$0xff] %vm94_vm0, %v157_v25  ;;  %225 = vst.msk [vmem:[%s427_s3 + $0x48] sm:$0xff] %vm94_vm0, %v189_v26 }
  0xe5   :  { %v275_v27 = vpop.f32.mrb[4].mxu0  ;;  %v283_v28 = vpop.f32.mrb[4].mxu1 }
  0xe6   :  { %v178_v29 = vadd.f32 %v275_v27, %v236_v10  ;;  %v210_v30 = vadd.f32 %v283_v28, %v236_v10  ;;  %v169_v31 = vpop.f32.mrb[5].mxu0  ;;  %v201_v32 = vpop.f32.mrb[5].mxu1 }
  0xe7   :  { %v170_v33 = vadd.f32 %v236_v10, %v169_v31  ;;  %v202_v34 = vadd.f32 %v236_v10, %v201_v32  ;;  %v276_v35 = vpop.f32.mrb[6].mxu0  ;;  %v284_v36 = vpop.f32.mrb[6].mxu1 }
  0xe8   :  { %222 = vst.msk [vmem:[%s427_s3 + $0x30] sm:$0xff] %vm94_vm0, %v178_v29  ;;  %230 = vst.msk [vmem:[%s427_s3 + $0x70] sm:$0xff] %vm94_vm0, %v210_v30  ;;  %v181_v37 = vadd.f32 %v276_v35, %v236_v10  ;;  %v213_v38 = vadd.f32 %v284_v36, %v236_v10  ;;  %v172_v39 = vpop.f32.mrb[7].mxu0  ;;  %v204_v40 = vpop.f32.mrb[7].mxu1 }
  0xe9   :  { %220 = vst.msk [vmem:[%s427_s3 + $0x20] sm:$0xff] %vm94_vm0, %v170_v33  ;;  %228 = vst.msk [vmem:[%s427_s3 + $0x60] sm:$0xff] %vm94_vm0, %v202_v34  ;;  %v173_v41 = vadd.f32 %v236_v10, %v172_v39  ;;  %v205_v42 = vadd.f32 %v236_v10, %v204_v40 }
  0xea   :  { %223 = vst.msk [vmem:[%s427_s3 + $0x38] sm:$0xff] %vm94_vm0, %v181_v37  ;;  %231 = vst.msk [vmem:[%s427_s3 + $0x78] sm:$0xff] %vm94_vm0, %v213_v38 }
  0xeb   :  { %221 = vst.msk [vmem:[%s427_s3 + $0x28] sm:$0xff] %vm94_vm0, %v173_v41  ;;  %229 = vst.msk [vmem:[%s427_s3 + $0x68] sm:$0xff] %vm94_vm0, %v205_v42 }

// kernel: attention_forward.3
= control target key start
LH: loop header
LB: loop body
LE: loop exit
PB: predicated region body
PF: predicated region fallthrough
CT: control target
= control target key end

     0   :  { %vm64_vm0 = vcmask 261120   ;;  %vm250_vm1 = vcmask 257024   ;;  %s420_s27 = smov 96   ;;  %vm315_vm2 = vcmask 519168   ;;  %s655_s1 = inlined_call_operand.vmem [shape: bf16[32,96], index: 1, kind: input, shape index: {}]   ;;  %s656_s0 = inlined_call_operand.vmem [shape: f32[128,32], index: 0, kind: input, shape index: {}]   ;;  %s657_s2 = inlined_call_operand.vmem [shape: f32[1,96], index: 2, kind: input, shape index: {}]   ;;  %s658_s3 = inlined_call_operand.vmem [shape: bf16[128,32], index: 3, kind: output, shape index: {0}]   ;;  %s659_s4 = inlined_call_operand.vmem [shape: bf16[128,64], index: 4, kind: output, shape index: {1}]  }
   0x1   :  { %v418_v0 = vld [vmem:[%s655_s1] sm:$0xff]   ;;  %v419_v1 = vld [vmem:[%s655_s1 + $0x8] sm:$0xff]   ;;  %v19_v7 = vld [vmem:[%s656_s0 + $0x10] sm:$0xff] }
   0x2   :  { %393 = vmatprep.subr.bf16.mxu0 %v418_v0  ;;  %413 = vmatprep.subr.bf16.mxu1 %v418_v0  ;;  %v17_v2 = vld [vmem:[%s656_s0] sm:$0xff]  ;;  %v18_v3 = vld [vmem:[%s656_s0 + $0x8] sm:$0xff]  ;;  %v20_v8 = vld [vmem:[%s656_s0 + $0x18] sm:$0xff] }
   0x3   :  { %v25_v4 = vld [vmem:[%s656_s0 + $0x40] sm:$0xff]  ;;  %394 = vmatpush3.bf16.msra.mxu0 %v418_v0  ;;  %415 = vmatpush3.bf16.msra.mxu1 %v418_v0  ;;  %v33_v5 = vpack.c.bf16 %v18_v3, %v17_v2  ;;  %v26_v6 = vld [vmem:[%s656_s0 + $0x48] sm:$0xff]  ;;  %v27_v10 = vld [vmem:[%s656_s0 + $0x50] sm:$0xff]  ;;  %v34_v14 = vpack.c.bf16 %v20_v8, %v19_v7 }
   0x4   :  { %395 = vmatprep.subr.bf16.mxu0 %v419_v1  ;;  %414 = vmatprep.subr.bf16.mxu1 %v419_v1  ;;  %v37_v9 = vpack.c.bf16 %v26_v6, %v25_v4  ;;  %v28_v11 = vld [vmem:[%s656_s0 + $0x58] sm:$0xff]  ;;  %v21_v12 = vld [vmem:[%s656_s0 + $0x20] sm:$0xff]  ;;  %v22_v13 = vld [vmem:[%s656_s0 + $0x28] sm:$0xff] }
   0x5   :  { %397 = vmatprep.mubr.msk.bf16.mxu0 %vm64_vm0, %v33_v5  ;;  %v38_v15 = vpack.c.bf16 %v28_v11, %v27_v10  ;;  %v29_v16 = vld [vmem:[%s656_s0 + $0x60] sm:$0xff]  ;;  %v30_v17 = vld [vmem:[%s656_s0 + $0x68] sm:$0xff]  ;;  %v35_v18 = vpack.c.bf16 %v22_v13, %v21_v12  ;;  %v23_v20 = vld [vmem:[%s656_s0 + $0x30] sm:$0xff] }
   0x6   :  { %405 = vmatprep.mubr.msk.bf16.mxu1 %vm64_vm0, %v37_v9  ;;  %v39_v19 = vpack.c.bf16 %v30_v17, %v29_v16  ;;  %v24_v21 = vld [vmem:[%s656_s0 + $0x38] sm:$0xff]  ;;  %v31_v22 = vld [vmem:[%s656_s0 + $0x70] sm:$0xff]  ;;  %v340_v26 = vld [vmem:[%s657_s2] ss:$0 sm:$0xff] }
   0x7   :  { %396 = vmatpush3.bf16.msra.mxu0 %v419_v1  ;;  %416 = vmatpush3.bf16.msra.mxu1 %v419_v1  ;;  %v32_v23 = vld [vmem:[%s656_s0 + $0x78] sm:$0xff]  ;;  %v36_v24 = vpack.c.bf16 %v24_v21, %v23_v20 }
   0x8   :  { %v40_v25 = vpack.c.bf16 %v32_v23, %v31_v22 }
   0xa   :  { %398 = vmatmul.mubr.msk.bf16.vlgmr.msra.gmra.mrb[0].mxu0 %vm64_vm0, %v34_v14  ;;  %406 = vmatmul.mubr.msk.bf16.vlgmr.msra.gmra.mrb[0].mxu1 %vm64_vm0, %v38_v15 }
   0xb   :  { %401 = vmatprep.mubr.msk.bf16.mxu0 %vm64_vm0, %v35_v18  ;;  %409 = vmatprep.mubr.msk.bf16.mxu1 %vm64_vm0, %v39_v19 }
  0x12   :  { %402 = vmatmul.mubr.msk.bf16.gmra.mrb[4].mxu0 %vm64_vm0, %v36_v24  ;;  %410 = vmatmul.mubr.msk.bf16.gmra.mrb[4].mxu1 %vm64_vm0, %v40_v25 }
  0xdd   :  { %v399_v27 = vpop.f32.mrb[0].mxu0  ;;  %v407_v28 = vpop.f32.mrb[0].mxu1 }
  0xde   :  { %v132_v29 = vadd.f32 %v399_v27, %v340_v26  ;;  %v164_v30 = vadd.f32 %v407_v28, %v340_v26  ;;  %v123_v31 = vpop.f32.mrb[1].mxu0  ;;  %v155_v32 = vpop.f32.mrb[1].mxu1 }
  0xdf   :  { %v124_v33 = vadd.f32 %v340_v26, %v123_v31  ;;  %v156_v34 = vadd.f32 %v340_v26, %v155_v32  ;;  %v400_v35 = vpop.f32.mrb[2].mxu0  ;;  %v408_v36 = vpop.f32.mrb[2].mxu1 }
  0xe0   :  { %v369_v37 = vpack.c.bf16 %v132_v29, %v132_v29  ;;  %v377_v38 = vpack.c.bf16 %v164_v30, %v164_v30  ;;  %v135_v39 = vadd.f32 %v400_v35, %v340_v26  ;;  %v167_v40 = vadd.f32 %v408_v36, %v340_v26  ;;  %v126_v41 = vpop.f32.mrb[3].mxu0  ;;  %v158_v42 = vpop.f32.mrb[3].mxu1 }
  0xe1   :  { %v367_v43 = vpack.c.bf16 %v124_v33, %v124_v33  ;;  %v375_v44 = vpack.c.bf16 %v156_v34, %v156_v34  ;;  %v127_v45 = vadd.f32 %v340_v26, %v126_v41  ;;  %v159_v46 = vadd.f32 %v340_v26, %v158_v42 }
  0xe2   :  { %253 = vst.msk [vmem:[%s658_s3 + $0x8] sm:$0xf] %vm250_vm1, %v369_v37  ;;  %261 = vst.msk [vmem:[%s658_s3 + $0x28] sm:$0xf] %vm250_vm1, %v377_v38  ;;  %v370_v47 = vpack.c.bf16 %v135_v39, %v135_v39  ;;  %v378_v48 = vpack.c.bf16 %v167_v40, %v167_v40  ;;  %287 = vrot.lane.b32.xlu0 %v377_v38, %s420_s27  ;;  %271 = vrot.lane.b32.xlu1 %v369_v37, %s420_s27 }
  0xe3   :  { %251 = vst.msk [vmem:[%s658_s3] sm:$0xf] %vm250_vm1, %v367_v43  ;;  %259 = vst.msk [vmem:[%s658_s3 + $0x20] sm:$0xf] %vm250_vm1, %v375_v44  ;;  %v368_v49 = vpack.c.bf16 %v127_v45, %v127_v45  ;;  %v376_v50 = vpack.c.bf16 %v159_v46, %v159_v46 }
  0xe4   :  { %254 = vst.msk [vmem:[%s658_s3 + $0xc] sm:$0xf] %vm250_vm1, %v370_v47  ;;  %262 = vst.msk [vmem:[%s658_s3 + $0x2c] sm:$0xf] %vm250_vm1, %v378_v48 }
  0xe5   :  { %252 = vst.msk [vmem:[%s658_s3 + $0x4] sm:$0xf] %vm250_vm1, %v368_v49  ;;  %260 = vst.msk [vmem:[%s658_s3 + $0x24] sm:$0xf] %vm250_vm1, %v376_v50  ;;  %v403_v51 = vpop.f32.mrb[4].mxu0  ;;  %v411_v52 = vpop.f32.mrb[4].mxu1 }
  0xe6   :  { %273 = vrot.lane.b32.xlu1 %v370_v47, %s420_s27  ;;  %267 = vrot.lane.b32.xlu0 %v367_v43, %s420_s27  ;;  %v148_v53 = vadd.f32 %v403_v51, %v340_v26  ;;  %v139_v54 = vpop.f32.mrb[5].mxu0  ;;  %v180_v55 = vadd.f32 %v411_v52, %v340_v26  ;;  %v171_v56 = vpop.f32.mrb[5].mxu1 }
  0xe7   :  { %v140_v57 = vadd.f32 %v340_v26, %v139_v54  ;;  %v404_v58 = vpop.f32.mrb[6].mxu0  ;;  %v172_v59 = vadd.f32 %v340_v26, %v171_v56  ;;  %v412_v60 = vpop.f32.mrb[6].mxu1 }
  0xe8   :  { %v373_v61 = vpack.c.bf16 %v148_v53, %v148_v53  ;;  %v151_v62 = vadd.f32 %v404_v58, %v340_v26  ;;  %v142_v63 = vpop.f32.mrb[7].mxu0  ;;  %v381_v0 = vpack.c.bf16 %v180_v55, %v180_v55  ;;  %v183_v1 = vadd.f32 %v412_v60, %v340_v26  ;;  %v174_v2 = vpop.f32.mrb[7].mxu1 }
  0xe9   :  { %v371_v3 = vpack.c.bf16 %v140_v57, %v140_v57  ;;  %v143_v4 = vadd.f32 %v340_v26, %v142_v63  ;;  %v379_v5 = vpack.c.bf16 %v172_v59, %v172_v59  ;;  %v175_v6 = vadd.f32 %v340_v26, %v174_v2 }
  0xea   :  { %257 = vst.msk [vmem:[%s658_s3 + $0x18] sm:$0xf] %vm250_vm1, %v373_v61  ;;  %289 = vrot.lane.b32.xlu1 %v378_v48, %s420_s27  ;;  %v374_v7 = vpack.c.bf16 %v151_v62, %v151_v62  ;;  %283 = vrot.lane.b32.xlu0 %v375_v44, %s420_s27  ;;  %265 = vst.msk [vmem:[%s658_s3 + $0x38] sm:$0xf] %vm250_vm1, %v381_v0  ;;  %v382_v8 = vpack.c.bf16 %v183_v1, %v183_v1 }
  0xeb   :  { %255 = vst.msk [vmem:[%s658_s3 + $0x10] sm:$0xf] %vm250_vm1, %v371_v3  ;;  %v372_v9 = vpack.c.bf16 %v143_v4, %v143_v4  ;;  %263 = vst.msk [vmem:[%s658_s3 + $0x30] sm:$0xf] %vm250_vm1, %v379_v5  ;;  %v380_v10 = vpack.c.bf16 %v175_v6, %v175_v6 }
  0xec   :  { %258 = vst.msk [vmem:[%s658_s3 + $0x1c] sm:$0xf] %vm250_vm1, %v374_v7  ;;  %266 = vst.msk [vmem:[%s658_s3 + $0x3c] sm:$0xf] %vm250_vm1, %v382_v8 }
  0xed   :  { %256 = vst.msk [vmem:[%s658_s3 + $0x14] sm:$0xf] %vm250_vm1, %v372_v9  ;;  %264 = vst.msk [vmem:[%s658_s3 + $0x34] sm:$0xf] %vm250_vm1, %v380_v10 }
  0xee   :  { %285 = vrot.lane.b32.xlu1 %v376_v50, %s420_s27  ;;  %269 = vrot.lane.b32.xlu0 %v368_v49, %s420_s27 }
  0xf2   :  { %281 = vrot.lane.b32.xlu1 %v374_v7, %s420_s27  ;;  %279 = vrot.lane.b32.xlu0 %v373_v61, %s420_s27 }
  0xf6   :  { %277 = vrot.lane.b32.xlu1 %v372_v9, %s420_s27  ;;  %275 = vrot.lane.b32.xlu0 %v371_v3, %s420_s27 }
  0xfa   :  { %293 = vrot.lane.b32.xlu1 %v380_v10, %s420_s27  ;;  %291 = vrot.lane.b32.xlu0 %v379_v5, %s420_s27 }
  0xfe   :  { %297 = vrot.lane.b32.xlu1 %v382_v8, %s420_s27  ;;  %295 = vrot.lane.b32.xlu0 %v381_v0, %s420_s27 }
 0x154   :  { %v288_v11 = vpop.permute.xlu0 %287  ;;  %v272_v12 = vpop.permute.xlu1 %271 }
 0x155   :  { %326 = vst.msk [vmem:[%s659_s4 + $0x28] sm:$0xf] %vm315_vm2, %v288_v11  ;;  %318 = vst.msk [vmem:[%s659_s4 + $0x8] sm:$0xf] %vm315_vm2, %v272_v12 }
 0x158   :  { %v274_v13 = vpop.permute.xlu1 %273  ;;  %v268_v14 = vpop.permute.xlu0 %267 }
 0x159   :  { %319 = vst.msk [vmem:[%s659_s4 + $0xc] sm:$0xf] %vm315_vm2, %v274_v13  ;;  %316 = vst.msk [vmem:[%s659_s4] sm:$0xf] %vm315_vm2, %v268_v14 }
 0x15c   :  { %v290_v15 = vpop.permute.xlu1 %289  ;;  %v284_v16 = vpop.permute.xlu0 %283 }
 0x15d   :  { %327 = vst.msk [vmem:[%s659_s4 + $0x2c] sm:$0xf] %vm315_vm2, %v290_v15  ;;  %324 = vst.msk [vmem:[%s659_s4 + $0x20] sm:$0xf] %vm315_vm2, %v284_v16 }
 0x160   :  { %v286_v17 = vpop.permute.xlu1 %285  ;;  %v270_v18 = vpop.permute.xlu0 %269 }
 0x161   :  { %325 = vst.msk [vmem:[%s659_s4 + $0x24] sm:$0xf] %vm315_vm2, %v286_v17  ;;  %317 = vst.msk [vmem:[%s659_s4 + $0x4] sm:$0xf] %vm315_vm2, %v270_v18 }
 0x164   :  { %v282_v19 = vpop.permute.xlu1 %281  ;;  %v280_v20 = vpop.permute.xlu0 %279 }
 0x165   :  { %323 = vst.msk [vmem:[%s659_s4 + $0x1c] sm:$0xf] %vm315_vm2, %v282_v19  ;;  %322 = vst.msk [vmem:[%s659_s4 + $0x18] sm:$0xf] %vm315_vm2, %v280_v20 }
 0x168   :  { %v278_v21 = vpop.permute.xlu1 %277  ;;  %v276_v22 = vpop.permute.xlu0 %275 }
 0x169   :  { %321 = vst.msk [vmem:[%s659_s4 + $0x14] sm:$0xf] %vm315_vm2, %v278_v21  ;;  %320 = vst.msk [vmem:[%s659_s4 + $0x10] sm:$0xf] %vm315_vm2, %v276_v22 }
 0x16c   :  { %v294_v23 = vpop.permute.xlu1 %293  ;;  %v292_v24 = vpop.permute.xlu0 %291 }
 0x16d   :  { %329 = vst.msk [vmem:[%s659_s4 + $0x34] sm:$0xf] %vm315_vm2, %v294_v23  ;;  %328 = vst.msk [vmem:[%s659_s4 + $0x30] sm:$0xf] %vm315_vm2, %v292_v24 }
 0x170   :  { %v298_v25 = vpop.permute.xlu1 %297  ;;  %v296_v26 = vpop.permute.xlu0 %295 }
 0x171   :  { %331 = vst.msk [vmem:[%s659_s4 + $0x3c] sm:$0xf] %vm315_vm2, %v298_v25  ;;  %330 = vst.msk [vmem:[%s659_s4 + $0x38] sm:$0xf] %vm315_vm2, %v296_v26 }

// kernel: attention_forward.4
= control target key start
LH: loop header
LB: loop body
LE: loop exit
PB: predicated region body
PF: predicated region fallthrough
CT: control target
= control target key end

     0   :  { %s4084_s9 = smov 0   ;;  %s4086_s10 = smov 0   ;;  %s5313_s0 = inlined_call_operand.vmem [shape: bf16[2,64,32], index: 0, kind: input, shape index: {}]   ;;  %s5314_s1 = inlined_call_operand.vmem [shape: bf16[2,64,64], index: 1, kind: input, shape index: {}]   ;;  %s5315_s2 = inlined_call_operand.vmem [shape: bf16[2,64,32], index: 2, kind: output, shape index: {}]  }
   0x1   :  { %s4088_s11 = smov 0  }
   0x2 LB: > { %s24_s12 = sadd.s32 1, %s4041_s10  ;;  %p3077_p0 = scmp.ge.s32.totalorder %s4045_s11, 1  ;;  %s4045_s11 = sphi %s4088_s11, %s12_s11   ;;  %s4041_s10 = sphi %s4086_s10, %s5452_s10   ;;  %s4037_s9 = sphi %s4084_s9, %s5451_s9  }
   0x3   : > { %p26_p1 = scmp.ge.s32.totalorder %s24_s12, 2  ;;  %p143_p2 = scmp.lt.s32.totalorder %s4045_s11, 3 }
   0x5   : > { %s5454_s12 = smov (%p26_p1, %s24_s12), 0  ;;  %p144_p3 = pnand %p3077_p0, %p143_p2 }
   0x7   : > { %147 = sbr.rel (%p144_p3) target bundleno = 3956 (0xf74), region = 28 }
   0xe   : > { %p179_p4 = scmp.lt.s32.totalorder %s4037_s9, 1  ;;  %vm260_vm0 = vcmask 31744   ;;  %s4047_s20 = smov 96   ;;  %vm350_vm1 = vcmask 523264   ;;  %vm564_vm2 = vcmask 27648   ;;  %vm907_vm3 = vcmask 60448  }
   0xf   : > { %s4048_s21 = smov 124   ;;  %s4049_s22 = smov 92   ;;  %vm1250_vm4 = vcmask 93248   ;;  %vm1593_vm5 = vcmask 126048   ;;  %vm1936_vm6 = vcmask 158848   ;;  %vm2279_vm7 = vcmask 191648  }
  0x10   : > { %s5456_s9 = smov (!%p179_p4, %s4037_s9), 1  ;;  %s4050_s23 = smov 120   ;;  %vm2622_vm8 = vcmask 224448   ;;  %vm2965_vm9 = vcmask 257248  }
  0x11   : > { %s4102_s13 = sshll.u32 %s5456_s9, 5  ;;  %s4051_s24 = smov 88  }
  0x12   : > { %s4108_s16 = scalar_lea.vmem %s5314_s1, %s4102_s13  ;;  %s4120_s19 = scalar_lea.vmem %s5313_s0, %s4102_s13 }
  0x13   : > { %v4111_v0 = vld [vmem:[%s4108_s16] sm:$0xff]   ;;  %v4114_v1 = vld [vmem:[%s4108_s16 + $0x8] sm:$0xff]   ;;  %v4134_v4 = vld [vmem:[%s4108_s16 + $0x10] sm:$0xff]   ;;  %s4052_s25 = smov 116   ;;  %s4053_s26 = smov 84  }
  0x14   : > { %3673 = vmatprep.subr.msk.bf16.mxu0 %vm260_vm0, %v4111_v0  ;;  %v274_v2 = vsel %vm260_vm0, %v4111_v0, 0  ;;  %427 = vrot.lane.b32.xlu0 %v4111_v0, %s4047_s20  ;;  %v4131_v3 = vld [vmem:[%s4120_s19] sm:$0xff]   ;;  %v277_v5 = vsel %vm260_vm0, %v4114_v1, 0  ;;  %v4142_v6 = vld [vmem:[%s4108_s16 + $0x18] sm:$0xff]   ;;  %v280_v7 = vsel %vm260_vm0, %v4134_v4, 0  ;;  %v4154_v9 = vld [vmem:[%s4120_s19 + $0x8] sm:$0xff]   ;;  %s5079_s17 = scalar_lea.vmem %s5315_s2, %s4102_s13 }
  0x15   : > { %3418 = vmatpush3.bf16.xpose.msra.mxu0 %v274_v2  ;;  %429 = vrot.lane.b32.xlu1 %v4114_v1, %s4047_s20  ;;  %v283_v8 = vsel %vm260_vm0, %v4142_v6, 0  ;;  %v4157_v10 = vld [vmem:[%s4120_s19 + $0x10] sm:$0xff]   ;;  %v4164_v11 = vld [vmem:[%s4120_s19 + $0x18] sm:$0xff]   ;;  %s4054_s27 = smov 112   ;;  %s4055_s28 = smov 80  }
  0x16   : > { %3674 = vmatprep.subr.msk.bf16.mxu0 %vm260_vm0, %v4114_v1  ;;  %3425 = vmatprep.mubr.msk.bf16.mxu0 %vm260_vm0, %v4131_v3  ;;  %s4056_s29 = smov 108   ;;  %s4057_s30 = smov 76  }
  0x17   : > { %s4058_s3 = smov 104   ;;  %s4059_s4 = smov 72  }
  0x18   : > { %s4060_s5 = smov 100   ;;  %s4061_s6 = smov 68  }
  0x19   : > { %431 = vrot.lane.b32.xlu1 %v4134_v4, %s4047_s20  ;;  %s4062_s7 = smov 4   ;;  %s4063_s8 = smov 8  }
  0x1a   : > { %s4064_s9 = smov 12   ;;  %s4065_s14 = smov 16  }
  0x1b   : > { %s4066_s13 = smov 20   ;;  %s4067_s18 = smov 24  }
  0x1d   : > { %3420 = vmatpush3.bf16.xpose.msra.mxu0 %v277_v5  ;;  %433 = vrot.lane.b32.xlu1 %v4142_v6, %s4047_s20 }
  0x1e   : > { %3675 = vmatprep.subr.msk.bf16.mxu0 %vm260_vm0, %v4134_v4 }
  0x25   : > { %3422 = vmatpush3.bf16.xpose.msra.mxu0 %v280_v7 }
  0x26   : > { %3676 = vmatprep.subr.msk.bf16.mxu0 %vm260_vm0, %v4142_v6 }
  0x2d   : > { %3424 = vmatpush3.bf16.xpose.msra.mxu0 %v283_v8 }
  0x34   : > { %3426 = vmatmul.mubr.msk.bf16.vlgmr.msra.gmra.mrb[0].mxu0 %vm260_vm0, %v4154_v9 }
  0x35   : > { %3429 = vmatprep.mubr.msk.bf16.mxu0 %vm260_vm0, %v4157_v10 }
  0x3c   : > { %3430 = vmatmul.mubr.msk.bf16.gmra.mrb[4].mxu0 %vm260_vm0, %v4164_v11 }
  0x86   : > { %v428_v12 = vpop.permute.xlu0 %427 }
  0x87   : > { %v430_v13 = vpop.permute.xlu1 %429  ;;  %3433 = vmatprep.subr.bf16.mxu1 %v428_v12 }
  0x88   : > { %3434 = vmatpush3.bf16.msra.mxu1 %v428_v12 }
  0x89   : > { %3435 = vmatprep.subr.bf16.mxu1 %v430_v13 }
  0x8b   : > { %v432_v14 = vpop.permute.xlu1 %431 }
  0x8c   : > { %3436 = vmatpush3.bf16.msra.mxu1 %v430_v13 }
  0x8d   : > { %3437 = vmatprep.subr.bf16.mxu1 %v432_v14 }
  0x8f   : > { %v434_v15 = vpop.permute.xlu1 %433 }
  0x90   : > { %3438 = vmatpush3.bf16.msra.mxu1 %v432_v14 }
  0x91   : > { %3439 = vmatprep.subr.bf16.mxu1 %v434_v15 }
  0x94   : > { %3440 = vmatpush3.bf16.msra.mxu1 %v434_v15 }
 0x107   : > { %v3427_v16 = vpop.f32.mrb[0].mxu0 }
 0x108   : > { %v319_v17 = vpop.f32.mrb[1].mxu0  ;;  %v357_v18 = vsel %vm350_vm1, %v3427_v16, -inf }
 0x109   : > { %358 = vmax.xlane.f32.xlu1 %v357_v18  ;;  %v3428_v19 = vpop.f32.mrb[2].mxu0  ;;  %v351_v20 = vsel %vm350_vm1, %v319_v17, -inf }
 0x10a   : > { %352 = vmax.xlane.f32.xlu0 %v351_v20  ;;  %v322_v21 = vpop.f32.mrb[3].mxu0  ;;  %v360_v22 = vsel %vm350_vm1, %v3428_v19, -inf }
 0x10b   : > { %v354_v23 = vsel %vm350_vm1, %v322_v21, -inf }
 0x10d   : > { %361 = vmax.xlane.f32.xlu1 %v360_v22 }
 0x10e   : > { %355 = vmax.xlane.f32.xlu0 %v354_v23 }
 0x10f   : > { %v3431_v24 = vpop.f32.mrb[4].mxu0 }
 0x110   : > { %v369_v25 = vsel %vm350_vm1, %v3431_v24, -inf  ;;  %v4173_v26 = vpop.f32.mrb[5].mxu0 }
 0x111   : > { %v3432_v27 = vpop.f32.mrb[6].mxu0  ;;  %v363_v29 = vsel %vm350_vm1, %v4173_v26, -inf }
 0x112   : > { %370 = vmax.xlane.f32.xlu0 %v369_v25  ;;  %v4175_v28 = vpop.f32.mrb[7].mxu0  ;;  %v372_v30 = vsel %vm350_vm1, %v3432_v27, -inf }
 0x113   : > { %v366_v31 = vsel %vm350_vm1, %v4175_v28, -inf }
 0x116   : > { %364 = vmax.xlane.f32.xlu0 %v363_v29 }
 0x11a   : > { %373 = vmax.xlane.f32.xlu0 %v372_v30 }
 0x11e   : > { %583 = vrot.lane.b32.xlu1 %v4114_v1, %s4048_s21 }
 0x122   : > { %585 = vrot.lane.b32.xlu1 %v4134_v4, %s4048_s21 }
 0x130   : > { %581 = vrot.lane.b32.xlu0 %v4111_v0, %s4048_s21 }
 0x134   : > { %573 = vrot.lane.b32.xlu0 %v4131_v3, %s4048_s21 }
 0x138   : > { %577 = vrot.lane.b32.xlu0 %v4157_v10, %s4048_s21 }
 0x13c   : > { %754 = vrot.lane.b32.xlu0 %v4111_v0, %s4049_s22 }
 0x146   : > { %367 = vmax.xlane.f32.xlu1 %v366_v31 }
 0x157   : > { %587 = vrot.lane.b32.xlu1 %v4142_v6, %s4048_s21 }
 0x15b   : > { %575 = vrot.lane.b32.xlu1 %v4154_v9, %s4048_s21 }
 0x15f   : > { %579 = vrot.lane.b32.xlu1 %v4164_v11, %s4048_s21 }
 0x163   : > { %756 = vrot.lane.b32.xlu1 %v4114_v1, %s4049_s22 }
 0x167   : > { %758 = vrot.lane.b32.xlu1 %v4134_v4, %s4049_s22 }
 0x16b   : > { %760 = vrot.lane.b32.xlu1 %v4142_v6, %s4049_s22 }
 0x196   : > { %v359_v32 = vpop.xlane.xlu1 %358 }
 0x197   : > { %v377_v33 = vsub.f32 %v3427_v16, %v359_v32  ;;  %v353_v34 = vpop.xlane.xlu0 %352 }
 0x198   : > { %v375_v35 = vsub.f32 %v319_v17, %v353_v34 }
 0x199   : > { %v387_v36 = vmul.f32 1.442695, %v377_v33 }
 0x19a   : > { %v383_v37 = vmul.f32 1.442695, %v375_v35  ;;  %v362_v38 = vpop.xlane.xlu1 %361 }
 0x19b   : > { %v378_v39 = vsub.f32 %v3428_v19, %v362_v38  ;;  %v356_v40 = vpop.xlane.xlu0 %355  ;;  %3759 = vpow2.f32 %v387_v36 }
 0x19c   : > { %v376_v41 = vsub.f32 %v322_v21, %v356_v40  ;;  %3761 = vpow2.f32 %v383_v37 }
 0x19d   : > { %v389_v42 = vmul.f32 1.442695, %v378_v39 }
 0x19e   : > { %v385_v43 = vmul.f32 1.442695, %v376_v41  ;;  %v584_v59 = vpop.permute.xlu1 %583 }
 0x19f   : > { %3763 = vpow2.f32 %v389_v42  ;;  %v371_v44 = vpop.xlane.xlu0 %370  ;;  %v605_v62 = vsel %vm260_vm0, %v584_v59, 0 }
 0x1a0   : > { %3765 = vpow2.f32 %v385_v43  ;;  %v381_v45 = vsub.f32 %v3431_v24, %v371_v44 }
 0x1a2   : > { %v395_v48 = vmul.f32 1.442695, %v381_v45  ;;  %v586_v63 = vpop.permute.xlu1 %585 }
 0x1a3   : > { %v365_v46 = vpop.xlane.xlu0 %364  ;;  %v608_v5 = vsel %vm260_vm0, %v586_v63, 0 }
 0x1a4   : > { %3767 = vpow2.f32 %v395_v48  ;;  %v379_v7 = vsub.f32 %v4173_v26, %v365_v46 }
 0x1a5   : > { %v4190_v47 = vpop.eup %3759 }
 0x1a6   : > { %5329 = vst [vmem:[#allocation2_spill] sm:$0xff] %v4190_v47  ;;  %v4192_v50 = vpop.eup %3761  ;;  %v391_v8 = vmul.f32 1.442695, %v379_v7 }
 0x1a7   : > { %v374_v49 = vpop.xlane.xlu0 %373  ;;  %5330 = vst [vmem:[#allocation3_spill] sm:$0xff] %v4192_v50 }
 0x1a8   : > { %v382_v51 = vsub.f32 %v3432_v27, %v374_v49 }
 0x1a9   : > { %v4194_v52 = vpop.eup %3763 }
 0x1aa   : > { %5331 = vst [vmem:[#allocation4_spill] sm:$0xff] %v4194_v52  ;;  %v4196_v53 = vpop.eup %3765  ;;  %v397_v54 = vmul.f32 1.442695, %v382_v51  ;;  %v424_v55 = vpack.c.bf16 %v4194_v52, %v4190_v47 }
 0x1ab   : > { %5332 = vst [vmem:[#allocation5_spill] sm:$0xff] %v4196_v53  ;;  %v582_v56 = vpop.permute.xlu0 %581  ;;  %v423_v57 = vpack.c.bf16 %v4196_v53, %v4192_v50 }
 0x1ac   : > { %3769 = vpow2.f32 %v397_v54  ;;  %3677 = vmatprep.subr.msk.bf16.mxu1 %vm260_vm0, %v582_v56  ;;  %v602_v58 = vsel %vm260_vm0, %v582_v56, 0 }
 0x1ad   : > { %3441 = vmatprep.mubr.msk.bf16.mxu1 %vm350_vm1, %v423_v57  ;;  %3771 = vpow2.f32 %v391_v8 }
 0x1ae   : > { %3442 = vmatmul.mubr.msk.bf16.vlgmr.msra.gmra.mrb[0].mxu1 %vm350_vm1, %v424_v55  ;;  %v4207_v60 = vpop.eup %3767 }
 0x1af   : > { %3450 = vmatpush3.bf16.xpose.msra.mxu1 %v602_v58  ;;  %5333 = vst [vmem:[#allocation6_spill] sm:$0xff] %v4207_v60  ;;  %v574_v20 = vpop.permute.xlu0 %573 }
 0x1b0   : > { %3678 = vmatprep.subr.msk.bf16.mxu1 %vm260_vm0, %v584_v59 }
 0x1b3   : > { %v578_v22 = vpop.permute.xlu0 %577 }
 0x1b6   : > { %v4209_v61 = vpop.eup %3769 }
 0x1b7   : > { %5334 = vst [vmem:[#allocation7_spill] sm:$0xff] %v4209_v61  ;;  %3452 = vmatpush3.bf16.xpose.msra.mxu1 %v605_v62  ;;  %v426_v2 = vpack.c.bf16 %v4209_v61, %v4207_v60  ;;  %v4220_v17 = vpop.eup %3771  ;;  %v755_v24 = vpop.permute.xlu0 %754 }
 0x1b8   : > { %3679 = vmatprep.subr.msk.bf16.mxu1 %vm260_vm0, %v586_v63  ;;  %5335 = vst [vmem:[#allocation8_spill] sm:$0xff] %v4220_v17  ;;  %3465 = vmatprep.subr.bf16.mxu0 %v755_v24 }
 0x1b9   : > { %3466 = vmatpush3.bf16.msra.mxu0 %v755_v24 }
 0x1bf   : > { %3454 = vmatpush3.bf16.xpose.msra.mxu1 %v608_v5 }
 0x1d3   : > { %v368_v12 = vpop.xlane.xlu1 %367 }
 0x1d4   : > { %v380_v13 = vsub.f32 %v4175_v28, %v368_v12 }
 0x1d6   : > { %v393_v14 = vmul.f32 1.442695, %v380_v13 }
 0x1d7   : > { %v588_v15 = vpop.permute.xlu1 %587 }
 0x1d8   : > { %3773 = vpow2.f32 %v393_v14  ;;  %3680 = vmatprep.subr.msk.bf16.mxu1 %vm260_vm0, %v588_v15  ;;  %v611_v16 = vsel %vm260_vm0, %v588_v15, 0 }
 0x1d9   : > { %3456 = vmatpush3.bf16.xpose.msra.mxu1 %v611_v16 }
 0x1db   : > { %v576_v21 = vpop.permute.xlu1 %575 }
 0x1df   : > { %v580_v23 = vpop.permute.xlu1 %579 }
 0x1e2   : > { %v4222_v18 = vpop.eup %3773 }
 0x1e3   : > { %5336 = vst [vmem:[#allocation9_spill] sm:$0xff] %v4222_v18  ;;  %v425_v19 = vpack.c.bf16 %v4222_v18, %v4220_v17  ;;  %v757_v25 = vpop.permute.xlu1 %756 }
 0x1e4   : > { %3467 = vmatprep.subr.bf16.mxu0 %v757_v25 }
 0x1e5   : > { %3445 = vmatprep.mubr.msk.bf16.mxu1 %vm350_vm1, %v425_v19  ;;  %3468 = vmatpush3.bf16.msra.mxu0 %v757_v25 }
 0x1e6   : > { %3446 = vmatmul.mubr.msk.bf16.gmra.mrb[4].mxu1 %vm350_vm1, %v426_v2 }
 0x1e7   : > { %3457 = vmatprep.mubr.msk.bf16.mxu1 %vm260_vm0, %v574_v20  ;;  %v759_v29 = vpop.permute.xlu1 %758 }
 0x1e8   : > { %3469 = vmatprep.subr.bf16.mxu0 %v759_v29 }
 0x1e9   : > { %3470 = vmatpush3.bf16.msra.mxu0 %v759_v29 }
 0x1eb   : > { %v761_v31 = vpop.permute.xlu1 %760 }
 0x1ec   : > { %3471 = vmatprep.subr.bf16.mxu0 %v761_v31 }
 0x1ed   : > { %3472 = vmatpush3.bf16.msra.mxu0 %v761_v31 }
 0x1ee   : > { %3458 = vmatmul.mubr.msk.bf16.vlgmr.msra.gmra.mrb[8].mxu1 %vm260_vm0, %v576_v21 }
 0x1ef   : > { %3461 = vmatprep.mubr.msk.bf16.mxu1 %vm260_vm0, %v578_v22 }
 0x1f6   : > { %3462 = vmatmul.mubr.msk.bf16.gmra.mrb[12].mxu1 %vm260_vm0, %v580_v23 }
 0x281   : > { %v4236_v26 = vpop.f32.mrb[0].mxu1 }
 0x282   : > { %5337 = vst [vmem:[#allocation10_spill] sm:$0xff] %v4236_v26  ;;  %v4238_v27 = vpop.f32.mrb[1].mxu1 }
 0x283   : > { %5338 = vst [vmem:[#allocation11_spill] sm:$0xff] %v4238_v27  ;;  %v4240_v28 = vpop.f32.mrb[2].mxu1 }
 0x284   : > { %5339 = vst [vmem:[#allocation12_spill] sm:$0xff] %v4240_v28  ;;  %v4242_v30 = vpop.f32.mrb[3].mxu1 }
 0x285   : > { %5340 = vst [vmem:[#allocation13_spill] sm:$0xff] %v4242_v30 }
 0x2b9   : > { %v4244_v32 = vpop.f32.mrb[4].mxu1 }
 0x2ba   : > { %5341 = vst [vmem:[#allocation14_spill] sm:$0xff] %v4244_v32  ;;  %v4246_v33 = vpop.f32.mrb[5].mxu1 }
 0x2bb   : > { %5342 = vst [vmem:[#allocation15_spill] sm:$0xff] %v4246_v33  ;;  %v4248_v34 = vpop.f32.mrb[6].mxu1 }
 0x2bc   : > { %5343 = vst [vmem:[#allocation16_spill] sm:$0xff] %v4248_v34  ;;  %v4250_v35 = vpop.f32.mrb[7].mxu1 }
 0x2bd   : > { %5344 = vst [vmem:[#allocation17_spill] sm:$0xff] %v4250_v35 }
 0x2c1   : > { %v3459_v36 = vpop.f32.mrb[8].mxu1 }
 0x2c2   : > { %v647_v37 = vpop.f32.mrb[9].mxu1  ;;  %v684_v38 = vsel %vm350_vm1, %v3459_v36, -inf }
 0x2c3   : > { %685 = vmax.xlane.f32.xlu0 %v684_v38  ;;  %v3460_v39 = vpop.f32.mrb[10].mxu1  ;;  %v678_v42 = vsel %vm350_vm1, %v647_v37, -inf }
 0x2c4   : > { %v650_v40 = vpop.f32.mrb[11].mxu1  ;;  %v687_v44 = vsel %vm350_vm1, %v3460_v39, -inf }
 0x2c5   : > { %v681_v41 = vsel %vm350_vm1, %v650_v40, -inf }
 0x2c6   : > { %682 = vmax.xlane.f32.xlu1 %v681_v41 }
 0x2c7   : > { %679 = vmax.xlane.f32.xlu0 %v678_v42 }
 0x2c9   : > { %v3463_v43 = vpop.f32.mrb[12].mxu1 }
 0x2ca   : > { %v4256_v45 = vpop.f32.mrb[13].mxu1  ;;  %v696_v48 = vsel %vm350_vm1, %v3463_v43, -inf }
 0x2cb   : > { %688 = vmax.xlane.f32.xlu0 %v687_v44  ;;  %v3464_v46 = vpop.f32.mrb[14].mxu1  ;;  %v690_v51 = vsel %vm350_vm1, %v4256_v45, -inf }
 0x2cc   : > { %v4259_v49 = vpop.f32.mrb[15].mxu1  ;;  %v699_v54 = vsel %vm350_vm1, %v3464_v46, -inf }
 0x2cd   : > { %v693_v55 = vsel %vm350_vm1, %v4259_v49, -inf }
 0x2cf   : > { %697 = vmax.xlane.f32.xlu0 %v696_v48 }
 0x2d3   : > { %691 = vmax.xlane.f32.xlu0 %v690_v51 }
 0x2d7   : > { %926 = vrot.lane.b32.xlu1 %v4114_v1, %s4050_s23  ;;  %700 = vmax.xlane.f32.xlu0 %v699_v54 }
 0x2db   : > { %928 = vrot.lane.b32.xlu1 %v4134_v4, %s4050_s23 }
 0x2ed   : > { %924 = vrot.lane.b32.xlu0 %v4111_v0, %s4050_s23 }
 0x2f1   : > { %916 = vrot.lane.b32.xlu0 %v4131_v3, %s4050_s23 }
 0x2f5   : > { %920 = vrot.lane.b32.xlu0 %v4157_v10, %s4050_s23 }
 0x2f9   : > { %1097 = vrot.lane.b32.xlu0 %v4111_v0, %s4051_s24 }
 0x2ff   : > { %694 = vmax.xlane.f32.xlu1 %v693_v55 }
 0x310   : > { %930 = vrot.lane.b32.xlu1 %v4142_v6, %s4050_s23 }
 0x314   : > { %918 = vrot.lane.b32.xlu1 %v4154_v9, %s4050_s23 }
 0x318   : > { %922 = vrot.lane.b32.xlu1 %v4164_v11, %s4050_s23 }
 0x31c   : > { %1099 = vrot.lane.b32.xlu1 %v4114_v1, %s4051_s24 }
 0x320   : > { %1101 = vrot.lane.b32.xlu1 %v4134_v4, %s4051_s24 }
 0x324   : > { %1103 = vrot.lane.b32.xlu1 %v4142_v6, %s4051_s24 }
 0x350   : > { %v686_v56 = vpop.xlane.xlu0 %685 }
 0x351   : > { %v704_v58 = vsub.f32 %v3459_v36, %v686_v56 }
 0x353   : > { %v683_v57 = vpop.xlane.xlu1 %682  ;;  %v714_v7 = vmul.f32 1.442695, %v704_v58 }
 0x354   : > { %v703_v59 = vsub.f32 %v650_v40, %v683_v57  ;;  %v680_v62 = vpop.xlane.xlu0 %679 }
 0x355   : > { %v702_v63 = vsub.f32 %v647_v37, %v680_v62 }
 0x356   : > { %v712_v2 = vmul.f32 1.442695, %v703_v59 }
 0x357   : > { %v710_v5 = vmul.f32 1.442695, %v702_v63 }
 0x358   : > { %3775 = vpow2.f32 %v712_v2  ;;  %v689_v8 = vpop.xlane.xlu0 %688 }
 0x359   : > { %3777 = vpow2.f32 %v710_v5  ;;  %v705_v12 = vsub.f32 %v3460_v39, %v689_v8  ;;  %v927_v39 = vpop.permute.xlu1 %926 }
 0x35a   : > { %3779 = vpow2.f32 %v714_v7  ;;  %v948_v41 = vsel %vm260_vm0, %v927_v39, 0 }
 0x35b   : > { %v716_v13 = vmul.f32 1.442695, %v705_v12 }
 0x35c   : > { %v698_v14 = vpop.xlane.xlu0 %697 }
 0x35d   : > { %3781 = vpow2.f32 %v716_v13  ;;  %v708_v15 = vsub.f32 %v3463_v43, %v698_v14  ;;  %v929_v43 = vpop.permute.xlu1 %928 }
 0x35f   : > { %v722_v21 = vmul.f32 1.442695, %v708_v15 }
 0x360   : > { %v692_v16 = vpop.xlane.xlu0 %691 }
 0x361   : > { %3783 = vpow2.f32 %v722_v21  ;;  %v706_v48 = vsub.f32 %v4256_v45, %v692_v16 }
 0x362   : > { %v4274_v19 = vpop.eup %3775 }
 0x363   : > { %v4276_v20 = vpop.eup %3777  ;;  %v718_v51 = vmul.f32 1.442695, %v706_v48 }
 0x364   : > { %v701_v22 = vpop.xlane.xlu0 %700  ;;  %v750_v23 = vpack.c.bf16 %v4274_v19, %v4276_v20  ;;  %v4280_v25 = vpop.eup %3779 }
 0x365   : > { %v709_v24 = vsub.f32 %v3464_v46, %v701_v22  ;;  %v951_v46 = vsel %vm260_vm0, %v929_v43, 0 }
 0x366   : > { %3473 = vmatprep.mubr.msk.bf16.mxu0 %vm350_vm1, %v750_v23 }
 0x367   : > { %v4283_v29 = vpop.eup %3781  ;;  %v724_v31 = vmul.f32 1.442695, %v709_v24 }
 0x368   : > { %v751_v36 = vpack.c.bf16 %v4283_v29, %v4280_v25  ;;  %v925_v37 = vpop.permute.xlu0 %924 }
 0x369   : > { %3785 = vpow2.f32 %v724_v31  ;;  %3681 = vmatprep.subr.msk.bf16.mxu0 %vm260_vm0, %v925_v37  ;;  %v945_v38 = vsel %vm260_vm0, %v925_v37, 0 }
 0x36a   : > { %3474 = vmatmul.mubr.msk.bf16.vlgmr.msra.gmra.mrb[8].mxu0 %vm350_vm1, %v751_v36  ;;  %3787 = vpow2.f32 %v718_v51 }
 0x36b   : > { %3482 = vmatpush3.bf16.xpose.msra.mxu0 %v945_v38  ;;  %v4291_v40 = vpop.eup %3783 }
 0x36c   : > { %3682 = vmatprep.subr.msk.bf16.mxu0 %vm260_vm0, %v927_v39  ;;  %v917_v63 = vpop.permute.xlu0 %916 }
 0x370   : > { %v921_v2 = vpop.permute.xlu0 %920 }
 0x373   : > { %v4294_v42 = vpop.eup %3785  ;;  %3484 = vmatpush3.bf16.xpose.msra.mxu0 %v948_v41 }
 0x374   : > { %3683 = vmatprep.subr.msk.bf16.mxu0 %vm260_vm0, %v929_v43  ;;  %v753_v44 = vpack.c.bf16 %v4294_v42, %v4291_v40  ;;  %v4304_v59 = vpop.eup %3787  ;;  %v1098_v7 = vpop.permute.xlu0 %1097 }
 0x375   : > { %3497 = vmatprep.subr.bf16.mxu1 %v1098_v7 }
 0x376   : > { %3498 = vmatpush3.bf16.msra.mxu1 %v1098_v7 }
 0x37b   : > { %3486 = vmatpush3.bf16.xpose.msra.mxu0 %v951_v46 }
 0x38c   : > { %v695_v54 = vpop.xlane.xlu1 %694 }
 0x38d   : > { %v707_v55 = vsub.f32 %v4259_v49, %v695_v54 }
 0x38f   : > { %v720_v56 = vmul.f32 1.442695, %v707_v55 }
 0x390   : > { %v931_v57 = vpop.permute.xlu1 %930 }
 0x391   : > { %3789 = vpow2.f32 %v720_v56  ;;  %3684 = vmatprep.subr.msk.bf16.mxu0 %vm260_vm0, %v931_v57  ;;  %v954_v58 = vsel %vm260_vm0, %v931_v57, 0 }
 0x392   : > { %3488 = vmatpush3.bf16.xpose.msra.mxu0 %v954_v58 }
 0x394   : > { %v919_v49 = vpop.permute.xlu1 %918 }
 0x398   : > { %v923_v5 = vpop.permute.xlu1 %922 }
 0x39b   : > { %v4306_v62 = vpop.eup %3789 }
 0x39c   : > { %v752_v45 = vpack.c.bf16 %v4306_v62, %v4304_v59  ;;  %v1100_v8 = vpop.permute.xlu1 %1099 }
 0x39d   : > { %3499 = vmatprep.subr.bf16.mxu1 %v1100_v8 }
 0x39e   : > { %3477 = vmatprep.mubr.msk.bf16.mxu0 %vm350_vm1, %v752_v45  ;;  %3500 = vmatpush3.bf16.msra.mxu1 %v1100_v8 }
 0x39f   : > { %3478 = vmatmul.mubr.msk.bf16.gmra.mrb[12].mxu0 %vm350_vm1, %v753_v44 }
 0x3a0   : > { %3489 = vmatprep.mubr.msk.bf16.mxu0 %vm260_vm0, %v917_v63  ;;  %v1102_v12 = vpop.permute.xlu1 %1101 }
 0x3a1   : > { %3501 = vmatprep.subr.bf16.mxu1 %v1102_v12 }
 0x3a2   : > { %3502 = vmatpush3.bf16.msra.mxu1 %v1102_v12 }
 0x3a4   : > { %v1104_v21 = vpop.permute.xlu1 %1103 }
 0x3a5   : > { %3503 = vmatprep.subr.bf16.mxu1 %v1104_v21 }
 0x3a6   : > { %3504 = vmatpush3.bf16.msra.mxu1 %v1104_v21 }
 0x3a7   : > { %3490 = vmatmul.mubr.msk.bf16.vlgmr.msra.gmra.mrb[16].mxu0 %vm260_vm0, %v919_v49 }
 0x3a8   : > { %3493 = vmatprep.mubr.msk.bf16.mxu0 %vm260_vm0, %v921_v2 }
 0x3af   : > { %3494 = vmatmul.mubr.msk.bf16.gmra.mrb[20].mxu0 %vm260_vm0, %v923_v5 }
 0x43d   : > { %v4320_v13 = vpop.f32.mrb[8].mxu0 }
 0x43e   : > { %5345 = vst [vmem:[#allocation18_spill] sm:$0xff] %v4320_v13  ;;  %v4322_v14 = vpop.f32.mrb[9].mxu0 }
 0x43f   : > { %5346 = vst [vmem:[#allocation19_spill] sm:$0xff] %v4322_v14  ;;  %v4324_v15 = vpop.f32.mrb[10].mxu0 }
 0x440   : > { %5347 = vst [vmem:[#allocation20_spill] sm:$0xff] %v4324_v15  ;;  %v4326_v16 = vpop.f32.mrb[11].mxu0 }
 0x441   : > { %5348 = vst [vmem:[#allocation21_spill] sm:$0xff] %v4326_v16 }
 0x472   : > { %v4328_v22 = vpop.f32.mrb[12].mxu0 }
 0x473   : > { %5349 = vst [vmem:[#allocation22_spill] sm:$0xff] %v4328_v22  ;;  %v4330_v23 = vpop.f32.mrb[13].mxu0 }
 0x474   : > { %5350 = vst [vmem:[#allocation23_spill] sm:$0xff] %v4330_v23  ;;  %v4332_v24 = vpop.f32.mrb[14].mxu0 }
 0x475   : > { %5351 = vst [vmem:[#allocation24_spill] sm:$0xff] %v4332_v24  ;;  %v4334_v31 = vpop.f32.mrb[15].mxu0 }
 0x476   : > { %5352 = vst [vmem:[#allocation25_spill] sm:$0xff] %v4334_v31 }
 0x47a   : > { %v3491_v36 = vpop.f32.mrb[16].mxu0 }
 0x47b   : > { %v990_v37 = vpop.f32.mrb[17].mxu0  ;;  %v1027_v38 = vsel %vm350_vm1, %v3491_v36, -inf }
 0x47c   : > { %1028 = vmax.xlane.f32.xlu0 %v1027_v38  ;;  %v3492_v39 = vpop.f32.mrb[18].mxu0  ;;  %v1021_v44 = vsel %vm350_vm1, %v990_v37, -inf }
 0x47d   : > { %v993_v41 = vpop.f32.mrb[19].mxu0  ;;  %v1030_v48 = vsel %vm350_vm1, %v3492_v39, -inf }
 0x47e   : > { %v1024_v43 = vsel %vm350_vm1, %v993_v41, -inf }
 0x47f   : > { %1025 = vmax.xlane.f32.xlu1 %v1024_v43 }
 0x480   : > { %1022 = vmax.xlane.f32.xlu0 %v1021_v44 }
 0x482   : > { %v3495_v46 = vpop.f32.mrb[20].mxu0 }
 0x483   : > { %v4340_v51 = vpop.f32.mrb[21].mxu0  ;;  %v1039_v55 = vsel %vm350_vm1, %v3495_v46, -inf }
 0x484   : > { %1031 = vmax.xlane.f32.xlu0 %v1030_v48  ;;  %v3496_v54 = vpop.f32.mrb[22].mxu0  ;;  %v1033_v57 = vsel %vm350_vm1, %v4340_v51, -inf }
 0x485   : > { %v4343_v56 = vpop.f32.mrb[23].mxu0  ;;  %v1042_v58 = vsel %vm350_vm1, %v3496_v54, -inf }
 0x486   : > { %v1036_v45 = vsel %vm350_vm1, %v4343_v56, -inf }
 0x488   : > { %1040 = vmax.xlane.f32.xlu0 %v1039_v55 }
 0x48c   : > { %1034 = vmax.xlane.f32.xlu0 %v1033_v57 }
 0x490   : > { %1269 = vrot.lane.b32.xlu1 %v4114_v1, %s4052_s25  ;;  %1043 = vmax.xlane.f32.xlu0 %v1042_v58 }
 0x494   : > { %1271 = vrot.lane.b32.xlu1 %v4134_v4, %s4052_s25 }
 0x4a6   : > { %1267 = vrot.lane.b32.xlu0 %v4111_v0, %s4052_s25 }
 0x4aa   : > { %1259 = vrot.lane.b32.xlu0 %v4131_v3, %s4052_s25 }
 0x4ae   : > { %1263 = vrot.lane.b32.xlu0 %v4157_v10, %s4052_s25 }
 0x4b2   : > { %1440 = vrot.lane.b32.xlu0 %v4111_v0, %s4053_s26 }
 0x4b8   : > { %1037 = vmax.xlane.f32.xlu1 %v1036_v45 }
 0x4c9   : > { %1273 = vrot.lane.b32.xlu1 %v4142_v6, %s4052_s25 }
 0x4cd   : > { %1261 = vrot.lane.b32.xlu1 %v4154_v9, %s4052_s25 }
 0x4d1   : > { %1265 = vrot.lane.b32.xlu1 %v4164_v11, %s4052_s25 }
 0x4d5   : > { %1442 = vrot.lane.b32.xlu1 %v4114_v1, %s4053_s26 }
 0x4d9   : > { %1444 = vrot.lane.b32.xlu1 %v4134_v4, %s4053_s26 }
 0x4dd   : > { %1446 = vrot.lane.b32.xlu1 %v4142_v6, %s4053_s26 }
 0x509   : > { %v1029_v63 = vpop.xlane.xlu0 %1028 }
 0x50a   : > { %v1047_v2 = vsub.f32 %v3491_v36, %v1029_v63 }
 0x50c   : > { %v1026_v49 = vpop.xlane.xlu1 %1025  ;;  %v1057_v38 = vmul.f32 1.442695, %v1047_v2 }
 0x50d   : > { %v1046_v5 = vsub.f32 %v993_v41, %v1026_v49  ;;  %v1023_v7 = vpop.xlane.xlu0 %1022 }
 0x50e   : > { %v1045_v8 = vsub.f32 %v990_v37, %v1023_v7 }
 0x50f   : > { %v1055_v12 = vmul.f32 1.442695, %v1046_v5 }
 0x510   : > { %v1053_v21 = vmul.f32 1.442695, %v1045_v8 }
 0x511   : > { %3791 = vpow2.f32 %v1055_v12  ;;  %v1032_v43 = vpop.xlane.xlu0 %1031 }
 0x512   : > { %3793 = vpow2.f32 %v1053_v21  ;;  %v1048_v44 = vsub.f32 %v3492_v39, %v1032_v43 }
 0x513   : > { %3795 = vpow2.f32 %v1057_v38 }
 0x514   : > { %v1059_v48 = vmul.f32 1.442695, %v1048_v44 }
 0x515   : > { %v1041_v55 = vpop.xlane.xlu0 %1040 }
 0x516   : > { %3797 = vpow2.f32 %v1059_v48  ;;  %v1051_v57 = vsub.f32 %v3495_v46, %v1041_v55 }
 0x518   : > { %v1065_v36 = vmul.f32 1.442695, %v1051_v57 }
 0x519   : > { %v1035_v58 = vpop.xlane.xlu0 %1034 }
 0x51a   : > { %3799 = vpow2.f32 %v1065_v36  ;;  %v1049_v48 = vsub.f32 %v4340_v51, %v1035_v58 }
 0x51b   : > { %v4358_v45 = vpop.eup %3791 }
 0x51c   : > { %v4360_v32 = vpop.eup %3793  ;;  %v1061_v55 = vmul.f32 1.442695, %v1049_v48 }
 0x51d   : > { %v1044_v41 = vpop.xlane.xlu0 %1043  ;;  %v1093_v37 = vpack.c.bf16 %v4358_v45, %v4360_v32  ;;  %v4364_v49 = vpop.eup %3795 }
 0x51e   : > { %v1052_v63 = vsub.f32 %v3496_v54, %v1044_v41  ;;  %v1270_v54 = vpop.permute.xlu1 %1269 }
 0x51f   : > { %3505 = vmatprep.mubr.msk.bf16.mxu1 %vm350_vm1, %v1093_v37  ;;  %v1291_v12 = vsel %vm260_vm0, %v1270_v54, 0 }
 0x520   : > { %v4367_v39 = vpop.eup %3797  ;;  %v1067_v2 = vmul.f32 1.442695, %v1052_v63 }
 0x521   : > { %v1094_v46 = vpack.c.bf16 %v4367_v39, %v4364_v49  ;;  %v1268_v5 = vpop.permute.xlu0 %1267 }
 0x522   : > { %3801 = vpow2.f32 %v1067_v2  ;;  %3685 = vmatprep.subr.msk.bf16.mxu1 %vm260_vm0, %v1268_v5  ;;  %v1288_v7 = vsel %vm260_vm0, %v1268_v5, 0  ;;  %v1272_v38 = vpop.permute.xlu1 %1271 }
 0x523   : > { %3506 = vmatmul.mubr.msk.bf16.vlgmr.msra.gmra.mrb[16].mxu1 %vm350_vm1, %v1094_v46  ;;  %v1294_v44 = vsel %vm260_vm0, %v1272_v38, 0  ;;  %3803 = vpow2.f32 %v1061_v55 }
 0x524   : > { %3514 = vmatpush3.bf16.xpose.msra.mxu1 %v1288_v7  ;;  %v4375_v8 = vpop.eup %3799 }
 0x525   : > { %3686 = vmatprep.subr.msk.bf16.mxu1 %vm260_vm0, %v1270_v54  ;;  %v1260_v58 = vpop.permute.xlu0 %1259 }
 0x529   : > { %v1264_v5 = vpop.permute.xlu0 %1263 }
 0x52c   : > { %v4378_v21 = vpop.eup %3801  ;;  %3516 = vmatpush3.bf16.xpose.msra.mxu1 %v1291_v12 }
 0x52d   : > { %3687 = vmatprep.subr.msk.bf16.mxu1 %vm260_vm0, %v1272_v38  ;;  %v1096_v43 = vpack.c.bf16 %v4378_v21, %v4375_v8  ;;  %v4388_v2 = vpop.eup %3803  ;;  %v1441_v54 = vpop.permute.xlu0 %1440 }
 0x52e   : > { %3529 = vmatprep.subr.bf16.mxu0 %v1441_v54 }
 0x52f   : > { %3530 = vmatpush3.bf16.msra.mxu0 %v1441_v54 }
 0x534   : > { %3518 = vmatpush3.bf16.xpose.msra.mxu1 %v1294_v44 }
 0x545   : > { %v1038_v57 = vpop.xlane.xlu1 %1037 }
 0x546   : > { %v1050_v36 = vsub.f32 %v4343_v56, %v1038_v57 }
 0x548   : > { %v1063_v41 = vmul.f32 1.442695, %v1050_v36 }
 0x549   : > { %v1274_v37 = vpop.permute.xlu1 %1273 }
 0x54a   : > { %3805 = vpow2.f32 %v1063_v41  ;;  %3688 = vmatprep.subr.msk.bf16.mxu1 %vm260_vm0, %v1274_v37  ;;  %v1297_v63 = vsel %vm260_vm0, %v1274_v37, 0 }
 0x54b   : > { %3520 = vmatpush3.bf16.xpose.msra.mxu1 %v1297_v63 }
 0x54d   : > { %v1262_v56 = vpop.permute.xlu1 %1261 }
 0x551   : > { %v1266_v7 = vpop.permute.xlu1 %1265 }
 0x554   : > { %v4390_v46 = vpop.eup %3805 }
 0x555   : > { %v1095_v51 = vpack.c.bf16 %v4390_v46, %v4388_v2  ;;  %v1443_v12 = vpop.permute.xlu1 %1442 }
 0x556   : > { %3531 = vmatprep.subr.bf16.mxu0 %v1443_v12 }
 0x557   : > { %3509 = vmatprep.mubr.msk.bf16.mxu1 %vm350_vm1, %v1095_v51  ;;  %3532 = vmatpush3.bf16.msra.mxu0 %v1443_v12 }
 0x558   : > { %3510 = vmatmul.mubr.msk.bf16.gmra.mrb[20].mxu1 %vm350_vm1, %v1096_v43 }
 0x559   : > { %3521 = vmatprep.mubr.msk.bf16.mxu1 %vm260_vm0, %v1260_v58  ;;  %v1445_v38 = vpop.permute.xlu1 %1444 }
 0x55a   : > { %3533 = vmatprep.subr.bf16.mxu0 %v1445_v38 }
 0x55b   : > { %3534 = vmatpush3.bf16.msra.mxu0 %v1445_v38 }
 0x55d   : > { %v1447_v57 = vpop.permute.xlu1 %1446 }
 0x55e   : > { %3535 = vmatprep.subr.bf16.mxu0 %v1447_v57 }
 0x55f   : > { %3536 = vmatpush3.bf16.msra.mxu0 %v1447_v57 }
 0x560   : > { %3522 = vmatmul.mubr.msk.bf16.vlgmr.msra.gmra.mrb[24].mxu1 %vm260_vm0, %v1262_v56 }
 0x561   : > { %3525 = vmatprep.mubr.msk.bf16.mxu1 %vm260_vm0, %v1264_v5 }
 0x568   : > { %3526 = vmatmul.mubr.msk.bf16.gmra.mrb[28].mxu1 %vm260_vm0, %v1266_v7 }
 0x5f6   : > { %v4404_v43 = vpop.f32.mrb[16].mxu1 }
 0x5f7   : > { %5353 = vst [vmem:[#allocation26_spill] sm:$0xff] %v4404_v43  ;;  %v4406_v44 = vpop.f32.mrb[17].mxu1 }
 0x5f8   : > { %5354 = vst [vmem:[#allocation27_spill] sm:$0xff] %v4406_v44  ;;  %v4408_v48 = vpop.f32.mrb[18].mxu1 }
 0x5f9   : > { %5355 = vst [vmem:[#allocation28_spill] sm:$0xff] %v4408_v48  ;;  %v4410_v55 = vpop.f32.mrb[19].mxu1 }
 0x5fa   : > { %5356 = vst [vmem:[#allocation29_spill] sm:$0xff] %v4410_v55 }
 0x62b   : > { %v4412_v36 = vpop.f32.mrb[20].mxu1 }
 0x62c   : > { %5357 = vst [vmem:[#allocation30_spill] sm:$0xff] %v4412_v36  ;;  %v4414_v41 = vpop.f32.mrb[21].mxu1 }
 0x62d   : > { %5358 = vst [vmem:[#allocation31_spill] sm:$0xff] %v4414_v41  ;;  %v4416_v37 = vpop.f32.mrb[22].mxu1 }
 0x62e   : > { %5359 = vst [vmem:[#allocation32_spill] sm:$0xff] %v4416_v37  ;;  %v4418_v63 = vpop.f32.mrb[23].mxu1 }
 0x62f   : > { %5360 = vst [vmem:[#allocation33_spill] sm:$0xff] %v4418_v63 }
 0x633   : > { %v3523_v51 = vpop.f32.mrb[24].mxu1 }
 0x634   : > { %v1333_v58 = vpop.f32.mrb[25].mxu1  ;;  %v1370_v56 = vsel %vm350_vm1, %v3523_v51, -inf }
 0x635   : > { %1371 = vmax.xlane.f32.xlu0 %v1370_v56  ;;  %v3524_v5 = vpop.f32.mrb[26].mxu1  ;;  %v1364_v12 = vsel %vm350_vm1, %v1333_v58, -inf }
 0x636   : > { %v1336_v7 = vpop.f32.mrb[27].mxu1  ;;  %v1373_v57 = vsel %vm350_vm1, %v3524_v5, -inf }
 0x637   : > { %v1367_v54 = vsel %vm350_vm1, %v1336_v7, -inf }
 0x638   : > { %1368 = vmax.xlane.f32.xlu1 %v1367_v54 }
 0x639   : > { %1365 = vmax.xlane.f32.xlu0 %v1364_v12 }
 0x63b   : > { %v3527_v38 = vpop.f32.mrb[28].mxu1 }
 0x63c   : > { %v4424_v33 = vpop.f32.mrb[29].mxu1  ;;  %v1382_v27 = vsel %vm350_vm1, %v3527_v38, -inf }
 0x63d   : > { %1374 = vmax.xlane.f32.xlu0 %v1373_v57  ;;  %v3528_v26 = vpop.f32.mrb[30].mxu1  ;;  %v1376_v56 = vsel %vm350_vm1, %v4424_v33, -inf }
 0x63e   : > { %v4427_v34 = vpop.f32.mrb[31].mxu1  ;;  %v1385_v54 = vsel %vm350_vm1, %v3528_v26, -inf }
 0x641   : > { %1383 = vmax.xlane.f32.xlu0 %v1382_v27  ;;  %v1379_v27 = vsel %vm350_vm1, %v4427_v34, -inf }
 0x645   : > { %1377 = vmax.xlane.f32.xlu0 %v1376_v56 }
 0x649   : > { %1612 = vrot.lane.b32.xlu1 %v4114_v1, %s4054_s27  ;;  %1386 = vmax.xlane.f32.xlu0 %v1385_v54 }
 0x64d   : > { %1614 = vrot.lane.b32.xlu1 %v4134_v4, %s4054_s27 }
 0x65f   : > { %1610 = vrot.lane.b32.xlu0 %v4111_v0, %s4054_s27 }
 0x663   : > { %1602 = vrot.lane.b32.xlu0 %v4131_v3, %s4054_s27 }
 0x667   : > { %1606 = vrot.lane.b32.xlu0 %v4157_v10, %s4054_s27 }
 0x671   : > { %1380 = vmax.xlane.f32.xlu1 %v1379_v27 }
 0x682   : > { %1616 = vrot.lane.b32.xlu1 %v4142_v6, %s4054_s27 }
 0x686   : > { %1604 = vrot.lane.b32.xlu1 %v4154_v9, %s4054_s27 }
 0x68a   : > { %1608 = vrot.lane.b32.xlu1 %v4164_v11, %s4054_s27 }
 0x6c2   : > { %v1372_v1 = vpop.xlane.xlu0 %1371 }
 0x6c3   : > { %v1390_v57 = vsub.f32 %v3523_v51, %v1372_v1 }
 0x6c5   : > { %v1369_v12 = vpop.xlane.xlu1 %1368  ;;  %v1400_v35 = vmul.f32 1.442695, %v1390_v57 }
 0x6c6   : > { %v1389_v4 = vsub.f32 %v1336_v7, %v1369_v12  ;;  %v1366_v56 = vpop.xlane.xlu0 %1365 }
 0x6c7   : > { %v1388_v0 = vsub.f32 %v1333_v58, %v1366_v56 }
 0x6c8   : > { %v1398_v54 = vmul.f32 1.442695, %v1389_v4 }
 0x6c9   : > { %v1396_v3 = vmul.f32 1.442695, %v1388_v0 }
 0x6ca   : > { %3807 = vpow2.f32 %v1398_v54  ;;  %v1375_v10 = vpop.xlane.xlu0 %1374 }
 0x6cb   : > { %3809 = vpow2.f32 %v1396_v3  ;;  %v1391_v28 = vsub.f32 %v3524_v5, %v1375_v10 }
 0x6cc   : > { %3811 = vpow2.f32 %v1400_v35 }
 0x6cd   : > { %v1402_v27 = vmul.f32 1.442695, %v1391_v28 }
 0x6ce   : > { %v1384_v6 = vpop.xlane.xlu0 %1383 }
 0x6cf   : > { %3813 = vpow2.f32 %v1402_v27  ;;  %v1394_v9 = vsub.f32 %v3527_v38, %v1384_v6 }
 0x6d1   : > { %v1408_v51 = vmul.f32 1.442695, %v1394_v9 }
 0x6d2   : > { %v1378_v30 = vpop.xlane.xlu0 %1377 }
 0x6d3   : > { %3815 = vpow2.f32 %v1408_v51  ;;  %v1392_v27 = vsub.f32 %v4424_v33, %v1378_v30 }
 0x6d4   : > { %v4442_v11 = vpop.eup %3807 }
 0x6d5   : > { %v4444_v36 = vpop.eup %3809  ;;  %v1404_v6 = vmul.f32 1.442695, %v1392_v27 }
 0x6d6   : > { %v1387_v7 = vpop.xlane.xlu0 %1386  ;;  %v1436_v58 = vpack.c.bf16 %v4442_v11, %v4444_v36  ;;  %v4448_v12 = vpop.eup %3811 }
 0x6d7   : > { %v1395_v1 = vsub.f32 %v3528_v26, %v1387_v7  ;;  %v1613_v26 = vpop.permute.xlu1 %1612 }
 0x6d8   : > { %3537 = vmatprep.mubr.msk.bf16.mxu0 %vm350_vm1, %v1436_v58  ;;  %v1634_v56 = vsel %vm260_vm0, %v1613_v26, 0 }
 0x6d9   : > { %v4451_v28 = vpop.eup %3813  ;;  %v1410_v35 = vmul.f32 1.442695, %v1395_v1 }
 0x6da   : > { %v1437_v5 = vpack.c.bf16 %v4451_v28, %v4448_v12  ;;  %v1611_v38 = vpop.permute.xlu0 %1610 }
 0x6db   : > { %3817 = vpow2.f32 %v1410_v35  ;;  %3689 = vmatprep.subr.msk.bf16.mxu0 %vm260_vm0, %v1611_v38  ;;  %v1631_v57 = vsel %vm260_vm0, %v1611_v38, 0  ;;  %v1615_v54 = vpop.permute.xlu1 %1614 }
 0x6dc   : > { %3538 = vmatmul.mubr.msk.bf16.vlgmr.msra.gmra.mrb[24].mxu0 %vm350_vm1, %v1437_v5  ;;  %v1637_v10 = vsel %vm260_vm0, %v1615_v54, 0  ;;  %3819 = vpow2.f32 %v1404_v6 }
 0x6dd   : > { %3546 = vmatpush3.bf16.xpose.msra.mxu0 %v1631_v57  ;;  %v4459_v4 = vpop.eup %3815 }
 0x6de   : > { %3690 = vmatprep.subr.msk.bf16.mxu0 %vm260_vm0, %v1613_v26  ;;  %v1603_v33 = vpop.permute.xlu0 %1602  ;;  %v4485_v26 = vld [vmem:[%s4108_s16] sm:$0xff]  }
 0x6df   : > { %1783 = vrot.lane.b32.xlu0 %v4485_v26, %s4055_s28 }
 0x6e2   : > { %v1607_v38 = vpop.permute.xlu0 %1606 }
 0x6e5   : > { %v4462_v0 = vpop.eup %3817  ;;  %3548 = vmatpush3.bf16.xpose.msra.mxu0 %v1634_v56  ;;  %v4489_v56 = vld [vmem:[%s4108_s16 + $0x8] sm:$0xff]  }
 0x6e6   : > { %3691 = vmatprep.subr.msk.bf16.mxu0 %vm260_vm0, %v1615_v54  ;;  %v1439_v3 = vpack.c.bf16 %v4462_v0, %v4459_v4  ;;  %v4472_v35 = vpop.eup %3819  ;;  %1785 = vrot.lane.b32.xlu1 %v4489_v56, %s4055_s28  ;;  %v4493_v54 = vld [vmem:[%s4108_s16 + $0x10] sm:$0xff]  }
 0x6ea   : > { %1787 = vrot.lane.b32.xlu1 %v4493_v54, %s4055_s28 }
 0x6ed   : > { %3550 = vmatpush3.bf16.xpose.msra.mxu0 %v1637_v10 }
 0x6fe   : > { %v1381_v9 = vpop.xlane.xlu1 %1380 }
 0x6ff   : > { %v1393_v51 = vsub.f32 %v4427_v34, %v1381_v9 }
 0x701   : > { %v1406_v7 = vmul.f32 1.442695, %v1393_v51 }
 0x702   : > { %v1617_v58 = vpop.permute.xlu1 %1616 }
 0x703   : > { %3821 = vpow2.f32 %v1406_v7  ;;  %3692 = vmatprep.subr.msk.bf16.mxu0 %vm260_vm0, %v1617_v58  ;;  %v1640_v1 = vsel %vm260_vm0, %v1617_v58, 0 }
 0x704   : > { %3552 = vmatpush3.bf16.xpose.msra.mxu0 %v1640_v1 }
 0x706   : > { %v1605_v34 = vpop.permute.xlu1 %1604 }
 0x70a   : > { %v1609_v57 = vpop.permute.xlu1 %1608 }
 0x70d   : > { %v4474_v5 = vpop.eup %3821 }
 0x70e   : > { %v1438_v30 = vpack.c.bf16 %v4474_v5, %v4472_v35 }
 0x710   : > { %3541 = vmatprep.mubr.msk.bf16.mxu0 %vm350_vm1, %v1438_v30 }
 0x711   : > { %3542 = vmatmul.mubr.msk.bf16.gmra.mrb[28].mxu0 %vm350_vm1, %v1439_v3  ;;  %v4497_v3 = vld [vmem:[%s4108_s16 + $0x18] sm:$0xff]  }
 0x712   : > { %3553 = vmatprep.mubr.msk.bf16.mxu0 %vm260_vm0, %v1603_v33  ;;  %1789 = vrot.lane.b32.xlu1 %v4497_v3, %s4055_s28 }
 0x719   : > { %3554 = vmatmul.mubr.msk.bf16.vlgmr.msra.gmra.mrb[32].mxu0 %vm260_vm0, %v1605_v34 }
 0x71a   : > { %3557 = vmatprep.mubr.msk.bf16.mxu0 %vm260_vm0, %v1607_v38 }
 0x721   : > { %3558 = vmatmul.mubr.msk.bf16.gmra.mrb[36].mxu0 %vm260_vm0, %v1609_v57 }
 0x751   : > { %v1784_v10 = vpop.permute.xlu0 %1783 }
 0x752   : > { %3561 = vmatprep.subr.bf16.mxu1 %v1784_v10 }
 0x753   : > { %3562 = vmatpush3.bf16.msra.mxu1 %v1784_v10 }
 0x758   : > { %v1786_v27 = vpop.permute.xlu1 %1785 }
 0x759   : > { %3563 = vmatprep.subr.bf16.mxu1 %v1786_v27 }
 0x75a   : > { %3564 = vmatpush3.bf16.msra.mxu1 %v1786_v27 }
 0x75c   : > { %v1788_v6 = vpop.permute.xlu1 %1787 }
 0x75d   : > { %3565 = vmatprep.subr.bf16.mxu1 %v1788_v6 }
 0x75e   : > { %3566 = vmatpush3.bf16.msra.mxu1 %v1788_v6 }
 0x784   : > { %v1790_v1 = vpop.permute.xlu1 %1789 }
 0x785   : > { %3567 = vmatprep.subr.bf16.mxu1 %v1790_v1 }
 0x786   : > { %3568 = vmatpush3.bf16.msra.mxu1 %v1790_v1 }
 0x7af   : > { %v4500_v9 = vpop.f32.mrb[24].mxu0 }
 0x7b0   : > { %5361 = vst [vmem:[#allocation34_spill] sm:$0xff] %v4500_v9  ;;  %v4502_v51 = vpop.f32.mrb[25].mxu0 }
 0x7b1   : > { %5362 = vst [vmem:[#allocation35_spill] sm:$0xff] %v4502_v51  ;;  %v4504_v7 = vpop.f32.mrb[26].mxu0 }
 0x7b2   : > { %5363 = vst [vmem:[#allocation36_spill] sm:$0xff] %v4504_v7  ;;  %v4506_v58 = vpop.f32.mrb[27].mxu0 }
 0x7b3   : > { %5364 = vst [vmem:[#allocation37_spill] sm:$0xff] %v4506_v58  ;;  %v4543_v58 = vld [vmem:[%s4120_s19 + $0x8] sm:$0xff]  }
 0x7e4   : > { %v4508_v30 = vpop.f32.mrb[28].mxu0 }
 0x7e5   : > { %5365 = vst [vmem:[#allocation38_spill] sm:$0xff] %v4508_v30  ;;  %v4510_v33 = vpop.f32.mrb[29].mxu0 }
 0x7e6   : > { %5366 = vst [vmem:[#allocation39_spill] sm:$0xff] %v4510_v33  ;;  %v4512_v34 = vpop.f32.mrb[30].mxu0 }
 0x7e7   : > { %5367 = vst [vmem:[#allocation40_spill] sm:$0xff] %v4512_v34  ;;  %v4514_v38 = vpop.f32.mrb[31].mxu0 }
 0x7e8   : > { %5368 = vst [vmem:[#allocation41_spill] sm:$0xff] %v4514_v38 }
 0x7ec   : > { %v3555_v57 = vpop.f32.mrb[32].mxu0 }
 0x7ed   : > { %v1676_v10 = vpop.f32.mrb[33].mxu0  ;;  %v1713_v27 = vsel %vm350_vm1, %v3555_v57, -inf }
 0x7ee   : > { %1714 = vmax.xlane.f32.xlu0 %v1713_v27  ;;  %v3556_v9 = vpop.f32.mrb[34].mxu0  ;;  %v1707_v6 = vsel %vm350_vm1, %v1676_v10, -inf }
 0x7ef   : > { %v1679_v7 = vpop.f32.mrb[35].mxu0  ;;  %v1716_v30 = vsel %vm350_vm1, %v3556_v9, -inf }
 0x7f0   : > { %v1710_v51 = vsel %vm350_vm1, %v1679_v7, -inf }
 0x7f1   : > { %1711 = vmax.xlane.f32.xlu1 %v1710_v51 }
 0x7f2   : > { %1708 = vmax.xlane.f32.xlu0 %v1707_v6 }
 0x7f4   : > { %v3559_v1 = vpop.f32.mrb[36].mxu0 }
 0x7f5   : > { %v4520_v34 = vpop.f32.mrb[37].mxu0  ;;  %v1725_v38 = vsel %vm350_vm1, %v3559_v1, -inf }
 0x7f6   : > { %1717 = vmax.xlane.f32.xlu0 %v1716_v30  ;;  %v3560_v33 = vpop.f32.mrb[38].mxu0  ;;  %v1719_v51 = vsel %vm350_vm1, %v4520_v34, -inf  ;;  %v4532_v30 = vld [vmem:[%s4120_s19] sm:$0xff]  }
 0x7f7   : > { %v4523_v27 = vpop.f32.mrb[39].mxu0  ;;  %v1728_v6 = vsel %vm350_vm1, %v3560_v33, -inf }
 0x7fa   : > { %1726 = vmax.xlane.f32.xlu0 %v1725_v38  ;;  %v4536_v38 = vld [vmem:[%s4120_s19 + $0x10] sm:$0xff]  }
 0x7fe   : > { %1720 = vmax.xlane.f32.xlu0 %v1719_v51  ;;  %v1722_v51 = vsel %vm350_vm1, %v4523_v27, -inf }
 0x802   : > { %1955 = vrot.lane.b32.xlu1 %v4489_v56, %s4056_s29  ;;  %1729 = vmax.xlane.f32.xlu0 %v1728_v6  ;;  %v4547_v6 = vld [vmem:[%s4120_s19 + $0x18] sm:$0xff]   ;;  %s4068_s19 = smov 28  }
 0x806   : > { %1957 = vrot.lane.b32.xlu1 %v4493_v54, %s4056_s29 }
 0x818   : > { %1953 = vrot.lane.b32.xlu0 %v4485_v26, %s4056_s29 }
 0x81c   : > { %1945 = vrot.lane.b32.xlu0 %v4532_v30, %s4056_s29 }
 0x820   : > { %1949 = vrot.lane.b32.xlu0 %v4536_v38, %s4056_s29 }
 0x824   : > { %2126 = vrot.lane.b32.xlu0 %v4485_v26, %s4057_s30 }
 0x82a   : > { %1723 = vmax.xlane.f32.xlu1 %v1722_v51 }
 0x83b   : > { %1959 = vrot.lane.b32.xlu1 %v4497_v3, %s4056_s29 }
 0x83f   : > { %1947 = vrot.lane.b32.xlu1 %v4543_v58, %s4056_s29 }
 0x843   : > { %1951 = vrot.lane.b32.xlu1 %v4547_v6, %s4056_s29 }
 0x847   : > { %2128 = vrot.lane.b32.xlu1 %v4489_v56, %s4057_s30 }
 0x84b   : > { %2130 = vrot.lane.b32.xlu1 %v4493_v54, %s4057_s30 }
 0x84f   : > { %2132 = vrot.lane.b32.xlu1 %v4497_v3, %s4057_s30 }
 0x87b   : > { %v1715_v37 = vpop.xlane.xlu0 %1714 }
 0x87c   : > { %v1733_v63 = vsub.f32 %v3555_v57, %v1715_v37 }
 0x87e   : > { %v1712_v41 = vpop.xlane.xlu1 %1711  ;;  %v1743_v24 = vmul.f32 1.442695, %v1733_v63 }
 0x87f   : > { %v1732_v43 = vsub.f32 %v1679_v7, %v1712_v41  ;;  %v1709_v48 = vpop.xlane.xlu0 %1708 }
 0x880   : > { %v1731_v44 = vsub.f32 %v1676_v10, %v1709_v48 }
 0x881   : > { %v1741_v55 = vmul.f32 1.442695, %v1732_v43 }
 0x882   : > { %v1739_v22 = vmul.f32 1.442695, %v1731_v44 }
 0x883   : > { %3823 = vpow2.f32 %v1741_v55  ;;  %v1718_v51 = vpop.xlane.xlu0 %1717 }
 0x884   : > { %3825 = vpow2.f32 %v1739_v22  ;;  %v1734_v23 = vsub.f32 %v3556_v9, %v1718_v51 }
 0x885   : > { %3827 = vpow2.f32 %v1743_v24 }
 0x886   : > { %v1745_v31 = vmul.f32 1.442695, %v1734_v23 }
 0x887   : > { %v1727_v15 = vpop.xlane.xlu0 %1726 }
 0x888   : > { %3829 = vpow2.f32 %v1745_v31  ;;  %v1737_v13 = vsub.f32 %v3559_v1, %v1727_v15  ;;  %v1956_v31 = vpop.permute.xlu1 %1955 }
 0x889   : > { %v1977_v63 = vsel %vm260_vm0, %v1956_v31, 0 }
 0x88a   : > { %v1751_v41 = vmul.f32 1.442695, %v1737_v13 }
 0x88b   : > { %v1721_v14 = vpop.xlane.xlu0 %1720 }
 0x88c   : > { %3831 = vpow2.f32 %v1751_v41  ;;  %v1958_v7 = vpop.permute.xlu1 %1957  ;;  %v1735_v10 = vsub.f32 %v4520_v34, %v1721_v14 }
 0x88d   : > { %v4550_v16 = vpop.eup %3823  ;;  %v1980_v57 = vsel %vm260_vm0, %v1958_v7, 0 }
 0x88e   : > { %v4552_v60 = vpop.eup %3825  ;;  %v1747_v1 = vmul.f32 1.442695, %v1735_v10 }
 0x88f   : > { %v1730_v37 = vpop.xlane.xlu0 %1729  ;;  %v1779_v43 = vpack.c.bf16 %v4550_v16, %v4552_v60  ;;  %v4556_v48 = vpop.eup %3827 }
 0x890   : > { %v1738_v44 = vsub.f32 %v3560_v33, %v1730_v37 }
 0x891   : > { %3569 = vmatprep.mubr.msk.bf16.mxu1 %vm350_vm1, %v1779_v43 }
 0x892   : > { %v4559_v22 = vpop.eup %3829  ;;  %v1753_v23 = vmul.f32 1.442695, %v1738_v44 }
 0x893   : > { %v1780_v15 = vpack.c.bf16 %v4559_v22, %v4556_v48  ;;  %v1954_v24 = vpop.permute.xlu0 %1953 }
 0x894   : > { %3833 = vpow2.f32 %v1753_v23  ;;  %3693 = vmatprep.subr.msk.bf16.mxu1 %vm260_vm0, %v1954_v24  ;;  %v1974_v13 = vsel %vm260_vm0, %v1954_v24, 0 }
 0x895   : > { %3570 = vmatmul.mubr.msk.bf16.vlgmr.msra.gmra.mrb[32].mxu1 %vm350_vm1, %v1780_v15  ;;  %3835 = vpow2.f32 %v1747_v1 }
 0x896   : > { %3578 = vmatpush3.bf16.xpose.msra.mxu1 %v1974_v13  ;;  %v4567_v55 = vpop.eup %3831 }
 0x897   : > { %3694 = vmatprep.subr.msk.bf16.mxu1 %vm260_vm0, %v1956_v31  ;;  %5369 = vst [vmem:[#allocation42_spill] sm:$0xff] %v4567_v55  ;;  %v1946_v34 = vpop.permute.xlu0 %1945 }
 0x89b   : > { %v1950_v24 = vpop.permute.xlu0 %1949 }
 0x89e   : > { %v4570_v9 = vpop.eup %3833  ;;  %3580 = vmatpush3.bf16.xpose.msra.mxu1 %v1977_v63 }
 0x89f   : > { %3695 = vmatprep.subr.msk.bf16.mxu1 %vm260_vm0, %v1958_v7  ;;  %v1782_v33 = vpack.c.bf16 %v4570_v9, %v4567_v55  ;;  %v4580_v23 = vpop.eup %3835  ;;  %v2127_v31 = vpop.permute.xlu0 %2126 }
 0x8a0   : > { %3593 = vmatprep.subr.bf16.mxu0 %v2127_v31 }
 0x8a1   : > { %3594 = vmatpush3.bf16.msra.mxu0 %v2127_v31 }
 0x8a6   : > { %3582 = vmatpush3.bf16.xpose.msra.mxu1 %v1980_v57 }
 0x8b7   : > { %v1724_v51 = vpop.xlane.xlu1 %1723 }
 0x8b8   : > { %v1736_v41 = vsub.f32 %v4523_v27, %v1724_v51 }
 0x8ba   : > { %v1749_v37 = vmul.f32 1.442695, %v1736_v41 }
 0x8bb   : > { %v1960_v43 = vpop.permute.xlu1 %1959 }
 0x8bc   : > { %3837 = vpow2.f32 %v1749_v37  ;;  %3696 = vmatprep.subr.msk.bf16.mxu1 %vm260_vm0, %v1960_v43  ;;  %v1983_v44 = vsel %vm260_vm0, %v1960_v43, 0 }
 0x8bd   : > { %3584 = vmatpush3.bf16.xpose.msra.mxu1 %v1983_v44 }
 0x8bf   : > { %v1948_v27 = vpop.permute.xlu1 %1947 }
 0x8c3   : > { %v1952_v13 = vpop.permute.xlu1 %1951 }
 0x8c6   : > { %v4582_v15 = vpop.eup %3837 }
 0x8c7   : > { %v1781_v14 = vpack.c.bf16 %v4582_v15, %v4580_v23  ;;  %v2129_v63 = vpop.permute.xlu1 %2128 }
 0x8c8   : > { %3595 = vmatprep.subr.bf16.mxu0 %v2129_v63 }
 0x8c9   : > { %3573 = vmatprep.mubr.msk.bf16.mxu1 %vm350_vm1, %v1781_v14  ;;  %3596 = vmatpush3.bf16.msra.mxu0 %v2129_v63 }
 0x8ca   : > { %3574 = vmatmul.mubr.msk.bf16.gmra.mrb[36].mxu1 %vm350_vm1, %v1782_v33 }
 0x8cb   : > { %3585 = vmatprep.mubr.msk.bf16.mxu1 %vm260_vm0, %v1946_v34  ;;  %v2131_v7 = vpop.permute.xlu1 %2130 }
 0x8cc   : > { %3597 = vmatprep.subr.bf16.mxu0 %v2131_v7 }
 0x8cd   : > { %3598 = vmatpush3.bf16.msra.mxu0 %v2131_v7 }
 0x8cf   : > { %v2133_v51 = vpop.permute.xlu1 %2132 }
 0x8d0   : > { %3599 = vmatprep.subr.bf16.mxu0 %v2133_v51 }
 0x8d1   : > { %3600 = vmatpush3.bf16.msra.mxu0 %v2133_v51 }
 0x8d2   : > { %3586 = vmatmul.mubr.msk.bf16.vlgmr.msra.gmra.mrb[40].mxu1 %vm260_vm0, %v1948_v27 }
 0x8d3   : > { %3589 = vmatprep.mubr.msk.bf16.mxu1 %vm260_vm0, %v1950_v24 }
 0x8da   : > { %3590 = vmatmul.mubr.msk.bf16.gmra.mrb[44].mxu1 %vm260_vm0, %v1952_v13 }
 0x968   : > { %v4596_v33 = vpop.f32.mrb[32].mxu1 }
 0x969   : > { %5370 = vst [vmem:[#allocation43_spill] sm:$0xff] %v4596_v33  ;;  %v4598_v57 = vpop.f32.mrb[33].mxu1 }
 0x96a   : > { %5371 = vst [vmem:[#allocation44_spill] sm:$0xff] %v4598_v57  ;;  %v4600_v10 = vpop.f32.mrb[34].mxu1 }
 0x96b   : > { %5372 = vst [vmem:[#allocation45_spill] sm:$0xff] %v4600_v10  ;;  %v4602_v1 = vpop.f32.mrb[35].mxu1 }
 0x96c   : > { %5373 = vst [vmem:[#allocation46_spill] sm:$0xff] %v4602_v1 }
 0x99d   : > { %v4604_v41 = vpop.f32.mrb[36].mxu1 }
 0x99e   : > { %5374 = vst [vmem:[#allocation47_spill] sm:$0xff] %v4604_v41  ;;  %v4606_v37 = vpop.f32.mrb[37].mxu1 }
 0x99f   : > { %5375 = vst [vmem:[#allocation48_spill] sm:$0xff] %v4606_v37  ;;  %v4608_v43 = vpop.f32.mrb[38].mxu1 }
 0x9a0   : > { %5376 = vst [vmem:[#allocation49_spill] sm:$0xff] %v4608_v43  ;;  %v4610_v44 = vpop.f32.mrb[39].mxu1 }
 0x9a1   : > { %5377 = vst [vmem:[#allocation50_spill] sm:$0xff] %v4610_v44 }
 0x9a5   : > { %v3587_v14 = vpop.f32.mrb[40].mxu1 }
 0x9a6   : > { %v2019_v34 = vpop.f32.mrb[41].mxu1  ;;  %v2056_v27 = vsel %vm350_vm1, %v3587_v14, -inf }
 0x9a7   : > { %2057 = vmax.xlane.f32.xlu0 %v2056_v27  ;;  %v3588_v24 = vpop.f32.mrb[42].mxu1  ;;  %v2050_v63 = vsel %vm350_vm1, %v2019_v34, -inf }
 0x9a8   : > { %v2022_v13 = vpop.f32.mrb[43].mxu1  ;;  %v2059_v51 = vsel %vm350_vm1, %v3588_v24, -inf }
 0x9a9   : > { %v2053_v31 = vsel %vm350_vm1, %v2022_v13, -inf }
 0x9aa   : > { %2054 = vmax.xlane.f32.xlu1 %v2053_v31 }
 0x9ab   : > { %2051 = vmax.xlane.f32.xlu0 %v2050_v63 }
 0x9ad   : > { %v3591_v7 = vpop.f32.mrb[44].mxu1 }
 0x9ae   : > { %v4616_v41 = vpop.f32.mrb[45].mxu1  ;;  %v2068_v33 = vsel %vm350_vm1, %v3591_v7, -inf }
 0x9af   : > { %2060 = vmax.xlane.f32.xlu0 %v2059_v51  ;;  %v3592_v37 = vpop.f32.mrb[46].mxu1  ;;  %v2062_v27 = vsel %vm350_vm1, %v4616_v41, -inf }
 0x9b0   : > { %v4619_v10 = vpop.f32.mrb[47].mxu1  ;;  %v2071_v31 = vsel %vm350_vm1, %v3592_v37, -inf }
 0x9b3   : > { %2069 = vmax.xlane.f32.xlu0 %v2068_v33  ;;  %v2065_v33 = vsel %vm350_vm1, %v4619_v10, -inf }
 0x9b7   : > { %2063 = vmax.xlane.f32.xlu0 %v2062_v27 }
 0x9bb   : > { %2298 = vrot.lane.b32.xlu1 %v4489_v56, %s4058_s3  ;;  %2072 = vmax.xlane.f32.xlu0 %v2071_v31 }
 0x9bf   : > { %2300 = vrot.lane.b32.xlu1 %v4493_v54, %s4058_s3 }
 0x9d1   : > { %2296 = vrot.lane.b32.xlu0 %v4485_v26, %s4058_s3 }
 0x9d5   : > { %2288 = vrot.lane.b32.xlu0 %v4532_v30, %s4058_s3 }
 0x9d9   : > { %2292 = vrot.lane.b32.xlu0 %v4536_v38, %s4058_s3 }
 0x9dd   : > { %2469 = vrot.lane.b32.xlu0 %v4485_v26, %s4059_s4 }
 0x9e3   : > { %2066 = vmax.xlane.f32.xlu1 %v2065_v33 }
 0x9f4   : > { %2302 = vrot.lane.b32.xlu1 %v4497_v3, %s4058_s3 }
 0x9f8   : > { %2290 = vrot.lane.b32.xlu1 %v4543_v58, %s4058_s3 }
 0x9fc   : > { %2294 = vrot.lane.b32.xlu1 %v4547_v6, %s4058_s3 }
 0xa00   : > { %2471 = vrot.lane.b32.xlu1 %v4489_v56, %s4059_s4 }
 0xa04   : > { %2473 = vrot.lane.b32.xlu1 %v4493_v54, %s4059_s4 }
 0xa08   : > { %2475 = vrot.lane.b32.xlu1 %v4497_v3, %s4059_s4 }
 0xa34   : > { %v2058_v63 = vpop.xlane.xlu0 %2057 }
 0xa35   : > { %v2076_v27 = vsub.f32 %v3587_v14, %v2058_v63 }
 0xa37   : > { %v2055_v51 = vpop.xlane.xlu1 %2054  ;;  %v2086_v17 = vmul.f32 1.442695, %v2076_v27 }
 0xa38   : > { %v2075_v31 = vsub.f32 %v2022_v13, %v2055_v51  ;;  %v2052_v57 = vpop.xlane.xlu0 %2051 }
 0xa39   : > { %v2074_v43 = vsub.f32 %v2019_v34, %v2052_v57 }
 0xa3a   : > { %v2084_v1 = vmul.f32 1.442695, %v2075_v31 }
 0xa3b   : > { %v2082_v44 = vmul.f32 1.442695, %v2074_v43 }
 0xa3c   : > { %3839 = vpow2.f32 %v2084_v1  ;;  %v2061_v47 = vpop.xlane.xlu0 %2060 }
 0xa3d   : > { %3841 = vpow2.f32 %v2082_v44  ;;  %v2077_v50 = vsub.f32 %v3588_v24, %v2061_v47 }
 0xa3e   : > { %3843 = vpow2.f32 %v2086_v17 }
 0xa3f   : > { %v2088_v33 = vmul.f32 1.442695, %v2077_v50 }
 0xa40   : > { %v2070_v61 = vpop.xlane.xlu0 %2069 }
 0xa41   : > { %3845 = vpow2.f32 %v2088_v33  ;;  %v2080_v18 = vsub.f32 %v3591_v7, %v2070_v61 }
 0xa43   : > { %v2094_v14 = vmul.f32 1.442695, %v2080_v18 }
 0xa44   : > { %v2064_v52 = vpop.xlane.xlu0 %2063 }
 0xa45   : > { %3847 = vpow2.f32 %v2094_v14  ;;  %v2078_v27 = vsub.f32 %v4616_v41, %v2064_v52 }
 0xa46   : > { %v4634_v53 = vpop.eup %3839 }
 0xa47   : > { %v4636_v55 = vpop.eup %3841  ;;  %v2090_v31 = vmul.f32 1.442695, %v2078_v27 }
 0xa48   : > { %5378 = vst [vmem:[#allocation51_spill] sm:$0xff] %v4636_v55  ;;  %v2073_v13 = vpop.xlane.xlu0 %2072  ;;  %v2122_v57 = vpack.c.bf16 %v4634_v53, %v4636_v55  ;;  %v4640_v1 = vpop.eup %3843 }
 0xa49   : > { %v2081_v43 = vsub.f32 %v3592_v37, %v2073_v13  ;;  %5379 = vst [vmem:[#allocation52_spill] sm:$0xff] %v4640_v1  ;;  %v2299_v37 = vpop.permute.xlu1 %2298 }
 0xa4a   : > { %3601 = vmatprep.mubr.msk.bf16.mxu0 %vm350_vm1, %v2122_v57  ;;  %v2320_v34 = vsel %vm260_vm0, %v2299_v37, 0 }
 0xa4b   : > { %v4643_v47 = vpop.eup %3845  ;;  %v2096_v50 = vmul.f32 1.442695, %v2081_v43 }
 0xa4c   : > { %v2123_v61 = vpack.c.bf16 %v4643_v47, %v4640_v1  ;;  %v2297_v17 = vpop.permute.xlu0 %2296 }
 0xa4d   : > { %3849 = vpow2.f32 %v2096_v50  ;;  %3697 = vmatprep.subr.msk.bf16.mxu0 %vm260_vm0, %v2297_v17  ;;  %v2317_v18 = vsel %vm260_vm0, %v2297_v17, 0  ;;  %v2301_v7 = vpop.permute.xlu1 %2300 }
 0xa4e   : > { %3602 = vmatmul.mubr.msk.bf16.vlgmr.msra.gmra.mrb[40].mxu0 %vm350_vm1, %v2123_v61  ;;  %v2323_v51 = vsel %vm260_vm0, %v2301_v7, 0  ;;  %3851 = vpow2.f32 %v2090_v31 }
 0xa4f   : > { %3610 = vmatpush3.bf16.xpose.msra.mxu0 %v2317_v18  ;;  %v4651_v44 = vpop.eup %3847 }
 0xa50   : > { %3698 = vmatprep.subr.msk.bf16.mxu0 %vm260_vm0, %v2299_v37  ;;  %5380 = vst [vmem:[#allocation53_spill] sm:$0xff] %v4651_v44  ;;  %v2289_v41 = vpop.permute.xlu0 %2288 }
 0xa54   : > { %v2293_v17 = vpop.permute.xlu0 %2292 }
 0xa57   : > { %v4654_v24 = vpop.eup %3849  ;;  %3612 = vmatpush3.bf16.xpose.msra.mxu0 %v2320_v34 }
 0xa58   : > { %3699 = vmatprep.subr.msk.bf16.mxu0 %vm260_vm0, %v2301_v7  ;;  %v2125_v63 = vpack.c.bf16 %v4654_v24, %v4651_v44  ;;  %v4664_v50 = vpop.eup %3851  ;;  %v2470_v37 = vpop.permute.xlu0 %2469 }
 0xa59   : > { %5381 = vst [vmem:[#allocation54_spill] sm:$0xff] %v4664_v50  ;;  %3625 = vmatprep.subr.bf16.mxu1 %v2470_v37 }
 0xa5a   : > { %3626 = vmatpush3.bf16.msra.mxu1 %v2470_v37 }
 0xa5f   : > { %3614 = vmatpush3.bf16.xpose.msra.mxu0 %v2323_v51 }
 0xa70   : > { %v2067_v33 = vpop.xlane.xlu1 %2066 }
 0xa71   : > { %v2079_v14 = vsub.f32 %v4619_v10, %v2067_v33 }
 0xa73   : > { %v2092_v13 = vmul.f32 1.442695, %v2079_v14 }
 0xa74   : > { %v2303_v57 = vpop.permute.xlu1 %2302 }
 0xa75   : > { %3853 = vpow2.f32 %v2092_v13  ;;  %3700 = vmatprep.subr.msk.bf16.mxu0 %vm260_vm0, %v2303_v57  ;;  %v2326_v43 = vsel %vm260_vm0, %v2303_v57, 0 }
 0xa76   : > { %3616 = vmatpush3.bf16.xpose.msra.mxu0 %v2326_v43 }
 0xa78   : > { %v2291_v10 = vpop.permute.xlu1 %2290 }
 0xa7c   : > { %v2295_v18 = vpop.permute.xlu1 %2294 }
 0xa7f   : > { %v4666_v61 = vpop.eup %3853 }
 0xa80   : > { %v2124_v52 = vpack.c.bf16 %v4666_v61, %v4664_v50  ;;  %v2472_v34 = vpop.permute.xlu1 %2471 }
 0xa81   : > { %3627 = vmatprep.subr.bf16.mxu1 %v2472_v34 }
 0xa82   : > { %3605 = vmatprep.mubr.msk.bf16.mxu0 %vm350_vm1, %v2124_v52  ;;  %3628 = vmatpush3.bf16.msra.mxu1 %v2472_v34 }
 0xa83   : > { %3606 = vmatmul.mubr.msk.bf16.gmra.mrb[44].mxu0 %vm350_vm1, %v2125_v63 }
 0xa84   : > { %3617 = vmatprep.mubr.msk.bf16.mxu0 %vm260_vm0, %v2289_v41  ;;  %v2474_v7 = vpop.permute.xlu1 %2473 }
 0xa85   : > { %3629 = vmatprep.subr.bf16.mxu1 %v2474_v7 }
 0xa86   : > { %3630 = vmatpush3.bf16.msra.mxu1 %v2474_v7 }
 0xa88   : > { %v2476_v33 = vpop.permute.xlu1 %2475 }
 0xa89   : > { %3631 = vmatprep.subr.bf16.mxu1 %v2476_v33 }
 0xa8a   : > { %3632 = vmatpush3.bf16.msra.mxu1 %v2476_v33 }
 0xa8b   : > { %3618 = vmatmul.mubr.msk.bf16.vlgmr.msra.gmra.mrb[48].mxu0 %vm260_vm0, %v2291_v10 }
 0xa8c   : > { %3621 = vmatprep.mubr.msk.bf16.mxu0 %vm260_vm0, %v2293_v17 }
 0xa93   : > { %3622 = vmatmul.mubr.msk.bf16.gmra.mrb[52].mxu0 %vm260_vm0, %v2295_v18 }
 0xb21   : > { %v4680_v63 = vpop.f32.mrb[40].mxu0 }
 0xb22   : > { %5382 = vst [vmem:[#allocation55_spill] sm:$0xff] %v4680_v63  ;;  %v4682_v51 = vpop.f32.mrb[41].mxu0 }
 0xb23   : > { %5383 = vst [vmem:[#allocation56_spill] sm:$0xff] %v4682_v51  ;;  %v4684_v27 = vpop.f32.mrb[42].mxu0 }
 0xb24   : > { %5384 = vst [vmem:[#allocation57_spill] sm:$0xff] %v4684_v27  ;;  %v4686_v31 = vpop.f32.mrb[43].mxu0 }
 0xb25   : > { %5385 = vst [vmem:[#allocation58_spill] sm:$0xff] %v4686_v31 }
 0xb56   : > { %v4688_v14 = vpop.f32.mrb[44].mxu0 }
 0xb57   : > { %5386 = vst [vmem:[#allocation59_spill] sm:$0xff] %v4688_v14  ;;  %v4690_v13 = vpop.f32.mrb[45].mxu0 }
 0xb58   : > { %5387 = vst [vmem:[#allocation60_spill] sm:$0xff] %v4690_v13  ;;  %v4692_v57 = vpop.f32.mrb[46].mxu0 }
 0xb59   : > { %5388 = vst [vmem:[#allocation61_spill] sm:$0xff] %v4692_v57  ;;  %v4694_v43 = vpop.f32.mrb[47].mxu0 }
 0xb5a   : > { %5389 = vst [vmem:[#allocation62_spill] sm:$0xff] %v4694_v43 }
 0xb5e   : > { %v3619_v52 = vpop.f32.mrb[48].mxu0 }
 0xb5f   : > { %v2362_v41 = vpop.f32.mrb[49].mxu0  ;;  %v2399_v10 = vsel %vm350_vm1, %v3619_v52, -inf }
 0xb60   : > { %2400 = vmax.xlane.f32.xlu0 %v2399_v10  ;;  %v3620_v17 = vpop.f32.mrb[50].mxu0  ;;  %v2393_v34 = vsel %vm350_vm1, %v2362_v41, -inf }
 0xb61   : > { %v2365_v18 = vpop.f32.mrb[51].mxu0  ;;  %v2402_v33 = vsel %vm350_vm1, %v3620_v17, -inf }
 0xb62   : > { %v2396_v37 = vsel %vm350_vm1, %v2365_v18, -inf }
 0xb63   : > { %2397 = vmax.xlane.f32.xlu1 %v2396_v37 }
 0xb64   : > { %2394 = vmax.xlane.f32.xlu0 %v2393_v34 }
 0xb66   : > { %v3623_v7 = vpop.f32.mrb[52].mxu0 }
 0xb67   : > { %v4700_v14 = vpop.f32.mrb[53].mxu0  ;;  %v2411_v63 = vsel %vm350_vm1, %v3623_v7, -inf }
 0xb68   : > { %2403 = vmax.xlane.f32.xlu0 %v2402_v33  ;;  %v3624_v13 = vpop.f32.mrb[54].mxu0  ;;  %v2405_v10 = vsel %vm350_vm1, %v4700_v14, -inf }
 0xb69   : > { %v4703_v51 = vpop.f32.mrb[55].mxu0  ;;  %v2414_v37 = vsel %vm350_vm1, %v3624_v13, -inf }
 0xb6c   : > { %2412 = vmax.xlane.f32.xlu0 %v2411_v63  ;;  %v2408_v63 = vsel %vm350_vm1, %v4703_v51, -inf }
 0xb70   : > { %2406 = vmax.xlane.f32.xlu0 %v2405_v10 }
 0xb74   : > { %2641 = vrot.lane.b32.xlu1 %v4489_v56, %s4060_s5  ;;  %2415 = vmax.xlane.f32.xlu0 %v2414_v37 }
 0xb78   : > { %2643 = vrot.lane.b32.xlu1 %v4493_v54, %s4060_s5 }
 0xb8a   : > { %2639 = vrot.lane.b32.xlu0 %v4485_v26, %s4060_s5 }
 0xb8e   : > { %2631 = vrot.lane.b32.xlu0 %v4532_v30, %s4060_s5 }
 0xb92   : > { %2635 = vrot.lane.b32.xlu0 %v4536_v38, %s4060_s5 }
 0xb96   : > { %2812 = vrot.lane.b32.xlu0 %v4485_v26, %s4061_s6 }
 0xb9c   : > { %2409 = vmax.xlane.f32.xlu1 %v2408_v63 }
 0xbad   : > { %2645 = vrot.lane.b32.xlu1 %v4497_v3, %s4060_s5 }
 0xbb1   : > { %2633 = vrot.lane.b32.xlu1 %v4543_v58, %s4060_s5 }
 0xbb5   : > { %2637 = vrot.lane.b32.xlu1 %v4547_v6, %s4060_s5 }
 0xbb9   : > { %2814 = vrot.lane.b32.xlu1 %v4489_v56, %s4061_s6 }
 0xbbd   : > { %2816 = vrot.lane.b32.xlu1 %v4493_v54, %s4061_s6 }
 0xbc1   : > { %2818 = vrot.lane.b32.xlu1 %v4497_v3, %s4061_s6 }
 0xbed   : > { %v2401_v34 = vpop.xlane.xlu0 %2400 }
 0xbee   : > { %v2419_v10 = vsub.f32 %v3619_v52, %v2401_v34 }
 0xbf0   : > { %v2398_v33 = vpop.xlane.xlu1 %2397  ;;  %v2429_v31 = vmul.f32 1.442695, %v2419_v10 }
 0xbf1   : > { %v2418_v37 = vsub.f32 %v2365_v18, %v2398_v33  ;;  %v2395_v57 = vpop.xlane.xlu0 %2394 }
 0xbf2   : > { %v2417_v43 = vsub.f32 %v2362_v41, %v2395_v57 }
 0xbf3   : > { %v2427_v27 = vmul.f32 1.442695, %v2418_v37 }
 0xbf4   : > { %v2425_v30 = vmul.f32 1.442695, %v2417_v43 }
 0xbf5   : > { %3855 = vpow2.f32 %v2427_v27  ;;  %v2404_v38 = vpop.xlane.xlu0 %2403 }
 0xbf6   : > { %3857 = vpow2.f32 %v2425_v30  ;;  %v2420_v44 = vsub.f32 %v3620_v17, %v2404_v38 }
 0xbf7   : > { %3859 = vpow2.f32 %v2429_v31 }
 0xbf8   : > { %v2431_v63 = vmul.f32 1.442695, %v2420_v44 }
 0xbf9   : > { %v2413_v50 = vpop.xlane.xlu0 %2412 }
 0xbfa   : > { %3861 = vpow2.f32 %v2431_v63  ;;  %v2423_v58 = vsub.f32 %v3623_v7, %v2413_v50 }
 0xbfc   : > { %v2437_v52 = vmul.f32 1.442695, %v2423_v58 }
 0xbfd   : > { %v2407_v1 = vpop.xlane.xlu0 %2406 }
 0xbfe   : > { %3863 = vpow2.f32 %v2437_v52  ;;  %v2421_v38 = vsub.f32 %v4700_v14, %v2407_v1 }
 0xbff   : > { %v4718_v6 = vpop.eup %3855 }
 0xc00   : > { %v4720_v55 = vpop.eup %3857  ;;  %v2433_v63 = vmul.f32 1.442695, %v2421_v38 }
 0xc01   : > { %v2416_v18 = vpop.xlane.xlu0 %2415  ;;  %v2465_v57 = vpack.c.bf16 %v4718_v6, %v4720_v55  ;;  %v4724_v27 = vpop.eup %3859 }
 0xc02   : > { %v2424_v43 = vsub.f32 %v3624_v13, %v2416_v18  ;;  %v2642_v13 = vpop.permute.xlu1 %2641 }
 0xc03   : > { %3633 = vmatprep.mubr.msk.bf16.mxu1 %vm350_vm1, %v2465_v57  ;;  %v2663_v34 = vsel %vm260_vm0, %v2642_v13, 0 }
 0xc04   : > { %v4727_v44 = vpop.eup %3861  ;;  %v2439_v31 = vmul.f32 1.442695, %v2424_v43 }
 0xc05   : > { %v2466_v50 = vpack.c.bf16 %v4727_v44, %v4724_v27  ;;  %v2640_v41 = vpop.permute.xlu0 %2639 }
 0xc06   : > { %3865 = vpow2.f32 %v2439_v31  ;;  %3701 = vmatprep.subr.msk.bf16.mxu1 %vm260_vm0, %v2640_v41  ;;  %v2660_v17 = vsel %vm260_vm0, %v2640_v41, 0  ;;  %v2644_v10 = vpop.permute.xlu1 %2643 }
 0xc07   : > { %3634 = vmatmul.mubr.msk.bf16.vlgmr.msra.gmra.mrb[48].mxu1 %vm350_vm1, %v2466_v50  ;;  %v2666_v30 = vsel %vm260_vm0, %v2644_v10, 0  ;;  %3867 = vpow2.f32 %v2433_v63 }
 0xc08   : > { %3642 = vmatpush3.bf16.xpose.msra.mxu1 %v2660_v17  ;;  %v4735_v7 = vpop.eup %3863 }
 0xc09   : > { %3702 = vmatprep.subr.msk.bf16.mxu1 %vm260_vm0, %v2642_v13  ;;  %v2632_v14 = vpop.permute.xlu0 %2631 }
 0xc0d   : > { %v2636_v41 = vpop.permute.xlu0 %2635 }
 0xc10   : > { %v4738_v33 = vpop.eup %3865  ;;  %3644 = vmatpush3.bf16.xpose.msra.mxu1 %v2663_v34 }
 0xc11   : > { %3703 = vmatprep.subr.msk.bf16.mxu1 %vm260_vm0, %v2644_v10  ;;  %v2468_v37 = vpack.c.bf16 %v4738_v33, %v4735_v7  ;;  %v4748_v31 = vpop.eup %3867 }
 0xc18   : > { %3646 = vmatpush3.bf16.xpose.msra.mxu1 %v2666_v30  ;;  %v2813_v30 = vpop.permute.xlu0 %2812 }
 0xc19   : > { %3657 = vmatprep.subr.bf16.mxu0 %v2813_v30 }
 0xc1a   : > { %3658 = vmatpush3.bf16.msra.mxu0 %v2813_v30 }
 0xc29   : > { %v2410_v58 = vpop.xlane.xlu1 %2409 }
 0xc2a   : > { %v2422_v52 = vsub.f32 %v4703_v51, %v2410_v58 }
 0xc2c   : > { %v2435_v18 = vmul.f32 1.442695, %v2422_v52 }
 0xc2d   : > { %v2646_v57 = vpop.permute.xlu1 %2645 }
 0xc2e   : > { %3869 = vpow2.f32 %v2435_v18  ;;  %3704 = vmatprep.subr.msk.bf16.mxu1 %vm260_vm0, %v2646_v57  ;;  %v2669_v43 = vsel %vm260_vm0, %v2646_v57, 0 }
 0xc2f   : > { %3648 = vmatpush3.bf16.xpose.msra.mxu1 %v2669_v43 }
 0xc31   : > { %v2634_v51 = vpop.permute.xlu1 %2633 }
 0xc35   : > { %v2638_v17 = vpop.permute.xlu1 %2637 }
 0xc38   : > { %v4750_v50 = vpop.eup %3869 }
 0xc39   : > { %v2467_v1 = vpack.c.bf16 %v4750_v50, %v4748_v31  ;;  %v2815_v38 = vpop.permute.xlu1 %2814 }
 0xc3a   : > { %3659 = vmatprep.subr.bf16.mxu0 %v2815_v38 }
 0xc3b   : > { %3637 = vmatprep.mubr.msk.bf16.mxu1 %vm350_vm1, %v2467_v1  ;;  %3660 = vmatpush3.bf16.msra.mxu0 %v2815_v38 }
 0xc3c   : > { %3638 = vmatmul.mubr.msk.bf16.gmra.mrb[52].mxu1 %vm350_vm1, %v2468_v37 }
 0xc3d   : > { %3649 = vmatprep.mubr.msk.bf16.mxu1 %vm260_vm0, %v2632_v14  ;;  %v2817_v56 = vpop.permute.xlu1 %2816 }
 0xc3e   : > { %3661 = vmatprep.subr.bf16.mxu0 %v2817_v56 }
 0xc3f   : > { %3662 = vmatpush3.bf16.msra.mxu0 %v2817_v56 }
 0xc41   : > { %v2819_v26 = vpop.permute.xlu1 %2818 }
 0xc42   : > { %3663 = vmatprep.subr.bf16.mxu0 %v2819_v26 }
 0xc43   : > { %3664 = vmatpush3.bf16.msra.mxu0 %v2819_v26 }
 0xc44   : > { %3650 = vmatmul.mubr.msk.bf16.vlgmr.msra.gmra.mrb[56].mxu1 %vm260_vm0, %v2634_v51 }
 0xc45   : > { %3653 = vmatprep.mubr.msk.bf16.mxu1 %vm260_vm0, %v2636_v41  ;;  %v729_v41 = vsel %vm350_vm1, %v4274_v19, 0.0  ;;  %v747_v19 = vsel %vm350_vm1, %v4294_v42, 0.0  ;;  %v732_v42 = vsel %vm350_vm1, %v4280_v25, 0.0  ;;  %v1415_v25 = vsel %vm350_vm1, %v4442_v11, 0.0 }
 0xc46   : > { %v1075_v11 = vsel %vm350_vm1, %v4364_v49, 0.0  ;;  %v1764_v49 = vsel %vm350_vm1, %v4559_v22, 0.0  ;;  %v1424_v22 = vsel %vm350_vm1, %v4472_v35, 0.0  ;;  %v2101_v35 = vsel %vm350_vm1, %v4634_v53, 0.0 }
 0xc4c   : > { %3654 = vmatmul.mubr.msk.bf16.gmra.mrb[60].mxu1 %vm260_vm0, %v2638_v17 }
 0xcda   : > { %v4764_v13 = vpop.f32.mrb[48].mxu1 }
 0xcdb   : > { %v4766_v34 = vpop.f32.mrb[49].mxu1 }
 0xcdc   : > { %v4768_v10 = vpop.f32.mrb[50].mxu1 }
 0xcdd   : > { %v4770_v37 = vpop.f32.mrb[51].mxu1 }
 0xd0f   : > { %v4772_v54 = vpop.f32.mrb[52].mxu1 }
 0xd10   : > { %v4774_v3 = vpop.f32.mrb[53].mxu1 }
 0xd11   : > { %v4776_v63 = vpop.f32.mrb[54].mxu1 }
 0xd12   : > { %v4778_v58 = vpop.f32.mrb[55].mxu1 }
 0xd17   : > { %v4780_v52 = vpop.f32.mrb[56].mxu1 }
 0xd18   : > { %v4782_v18 = vpop.f32.mrb[57].mxu1  ;;  %v2742_v57 = vsel %vm350_vm1, %v4780_v52, -inf }
 0xd19   : > { %2743 = vmax.xlane.f32.xlu0 %v2742_v57  ;;  %v4786_v43 = vpop.f32.mrb[58].mxu1  ;;  %v2736_v51 = vsel %vm350_vm1, %v4782_v18, -inf }
 0xd1a   : > { %v4788_v1 = vpop.f32.mrb[59].mxu1  ;;  %v2745_v30 = vsel %vm350_vm1, %v4786_v43, -inf }
 0xd1b   : > { %v2739_v14 = vsel %vm350_vm1, %v4788_v1, -inf }
 0xd1c   : > { %2740 = vmax.xlane.f32.xlu1 %v2739_v14  ;;  %v741_v14 = vsel %vm350_vm1, %v4306_v62, 0.0  ;;  %v1078_v62 = vsel %vm350_vm1, %v4367_v39, 0.0  ;;  %v738_v39 = vsel %vm350_vm1, %v4304_v59, 0.0  ;;  %v1427_v59 = vsel %vm350_vm1, %v4474_v5, 0.0 }
 0xd1d   : > { %2737 = vmax.xlane.f32.xlu0 %v2736_v51  ;;  %v1087_v5 = vsel %vm350_vm1, %v4375_v8, 0.0 }
 0xd1f   : > { %v4796_v17 = vpop.f32.mrb[60].mxu1 }
 0xd20   : > { %730 = vadd.xlane.f32.xlu1 %v729_v41  ;;  %v4800_v38 = vpop.f32.mrb[61].mxu1  ;;  %v2754_v57 = vsel %vm350_vm1, %v4796_v17, -inf  ;;  %v1072_v41 = vsel %vm350_vm1, %v4358_v45, 0.0  ;;  %v735_v45 = vsel %vm350_vm1, %v4283_v29, 0.0  ;;  %v1421_v29 = vsel %vm350_vm1, %v4451_v28, 0.0 }
 0xd21   : > { %2746 = vmax.xlane.f32.xlu0 %v2745_v30  ;;  %v4802_v56 = vpop.f32.mrb[62].mxu1  ;;  %v2748_v51 = vsel %vm350_vm1, %v4800_v38, -inf  ;;  %v726_v30 = vsel %vm350_vm1, %v4276_v20, 0.0  ;;  %v1090_v20 = vsel %vm350_vm1, %v4378_v21, 0.0  ;;  %v1069_v21 = vsel %vm350_vm1, %v4360_v32, 0.0 }
 0xd22   : > { %v4804_v26 = vpop.f32.mrb[63].mxu1  ;;  %v1081_v28 = vsel %vm350_vm1, %v4388_v2, 0.0  ;;  %v1758_v32 = vsel %vm350_vm1, %v4550_v16, 0.0  ;;  %v2757_v2 = vsel %vm350_vm1, %v4802_v56, -inf  ;;  %v1418_v16 = vsel %vm350_vm1, %v4448_v12, 0.0 }
 0xd23   : > { %v2751_v8 = vsel %vm350_vm1, %v4804_v26, -inf  ;;  %v1776_v12 = vsel %vm350_vm1, %v4570_v9, 0.0  ;;  %v1767_v9 = vsel %vm350_vm1, %v4580_v23, 0.0  ;;  %v2444_v23 = vsel %vm350_vm1, %v4718_v6, 0.0 }
 0xd24   : > { %742 = vadd.xlane.f32.xlu1 %v741_v14  ;;  %v1430_v14 = vsel %vm350_vm1, %v4459_v4, 0.0  ;;  %v2107_v4 = vsel %vm350_vm1, %v4643_v47, 0.0 }
 0xd25   : > { %2755 = vmax.xlane.f32.xlu0 %v2754_v57  ;;  %v1084_v57 = vsel %vm350_vm1, %v4390_v46, 0.0  ;;  %v744_v46 = vsel %vm350_vm1, %v4291_v40, 0.0  ;;  %v1433_v40 = vsel %vm350_vm1, %v4462_v0, 0.0  ;;  %v1412_v0 = vsel %vm350_vm1, %v4444_v36, 0.0 }
 0xd26   : > { %v1770_v36 = vsel %vm350_vm1, %v4582_v15, 0.0  ;;  %v1761_v15 = vsel %vm350_vm1, %v4556_v48, 0.0  ;;  %v2119_v48 = vsel %vm350_vm1, %v4654_v24, 0.0 }
 0xd28   : > { %748 = vadd.xlane.f32.xlu1 %v747_v19  ;;  %v1755_v19 = vsel %vm350_vm1, %v4552_v60, 0.0  ;;  %v2113_v60 = vsel %vm350_vm1, %v4666_v61, 0.0 }
 0xd29   : > { %2749 = vmax.xlane.f32.xlu0 %v2748_v51  ;;  %v5390_v51 = vld [vmem:[#allocation42_spill] sm:$0xff] }
 0xd2a   : > { %v1773_v53 = vsel %vm350_vm1, %v5390_v51, 0.0 }
 0xd2c   : > { %1073 = vadd.xlane.f32.xlu1 %v1072_v41  ;;  %v5391_v41 = vld [vmem:[#allocation51_spill] sm:$0xff] }
 0xd2d   : > { %727 = vadd.xlane.f32.xlu0 %v726_v30  ;;  %v2098_v47 = vsel %vm350_vm1, %v5391_v41, 0.0  ;;  %v5392_v30 = vld [vmem:[#allocation52_spill] sm:$0xff] }
 0xd2e   : > { %v2104_v61 = vsel %vm350_vm1, %v5392_v30, 0.0  ;;  %v5403_v30 = vld [vmem:[#allocation21_spill] sm:$0xff] }
 0xd30   : > { %1079 = vadd.xlane.f32.xlu1 %v1078_v62  ;;  %v2450_v62 = vsel %vm350_vm1, %v4727_v44, 0.0  ;;  %v2441_v44 = vsel %vm350_vm1, %v4720_v55, 0.0 }
 0xd31   : > { %733 = vadd.xlane.f32.xlu0 %v732_v42  ;;  %v5393_v42 = vld [vmem:[#allocation54_spill] sm:$0xff] }
 0xd32   : > { %v2110_v24 = vsel %vm350_vm1, %v5393_v42, 0.0 }
 0xd34   : > { %1085 = vadd.xlane.f32.xlu1 %v1084_v57  ;;  %v2456_v57 = vsel %vm350_vm1, %v4750_v50, 0.0  ;;  %v2447_v50 = vsel %vm350_vm1, %v4724_v27, 0.0 }
 0xd35   : > { %736 = vadd.xlane.f32.xlu0 %v735_v45  ;;  %v5394_v45 = vld [vmem:[#allocation53_spill] sm:$0xff] }
 0xd36   : > { %v2116_v6 = vsel %vm350_vm1, %v5394_v45, 0.0 }
 0xd38   : > { %1091 = vadd.xlane.f32.xlu1 %v1090_v20  ;;  %v2462_v20 = vsel %vm350_vm1, %v4738_v33, 0.0  ;;  %v2453_v33 = vsel %vm350_vm1, %v4748_v31, 0.0 }
 0xd39   : > { %739 = vadd.xlane.f32.xlu0 %v738_v39  ;;  %v5395_v39 = vld [vmem:[#allocation5_spill] sm:$0xff] }
 0xd3c   : > { %1416 = vadd.xlane.f32.xlu1 %v1415_v25  ;;  %v402_v25 = vsel %vm350_vm1, %v5395_v39, 0.0 }
 0xd3d   : > { %745 = vadd.xlane.f32.xlu0 %v744_v46  ;;  %v5396_v46 = vld [vmem:[#allocation4_spill] sm:$0xff] }
 0xd40   : > { %1422 = vadd.xlane.f32.xlu1 %v1421_v29  ;;  %v408_v29 = vsel %vm350_vm1, %v5396_v46, 0.0  ;;  %v5404_v46 = vld [vmem:[#allocation19_spill] sm:$0xff] }
 0xd41   : > { %1070 = vadd.xlane.f32.xlu0 %v1069_v21  ;;  %v5397_v21 = vld [vmem:[#allocation9_spill] sm:$0xff] }
 0xd42   : > { %v414_v55 = vsel %vm350_vm1, %v5397_v21, 0.0 }
 0xd44   : > { %1428 = vadd.xlane.f32.xlu1 %v1427_v59  ;;  %v2459_v59 = vsel %vm350_vm1, %v4735_v7, 0.0 }
 0xd45   : > { %1076 = vadd.xlane.f32.xlu0 %v1075_v11  ;;  %v5398_v11 = vld [vmem:[#allocation7_spill] sm:$0xff] }
 0xd46   : > { %v420_v27 = vsel %vm350_vm1, %v5398_v11, 0.0  ;;  %v5405_v11 = vld [vmem:[#allocation18_spill] sm:$0xff] }
 0xd48   : > { %1434 = vadd.xlane.f32.xlu1 %v1433_v40  ;;  %v5399_v40 = vld [vmem:[#allocation3_spill] sm:$0xff] }
 0xd49   : > { %1082 = vadd.xlane.f32.xlu0 %v1081_v28  ;;  %v399_v28 = vsel %vm350_vm1, %v5399_v40, 0.0 }
 0xd4c   : > { %1759 = vadd.xlane.f32.xlu1 %v1758_v32  ;;  %v5400_v32 = vld [vmem:[#allocation2_spill] sm:$0xff] }
 0xd4d   : > { %1088 = vadd.xlane.f32.xlu0 %v1087_v5  ;;  %v405_v31 = vsel %vm350_vm1, %v5400_v32, 0.0  ;;  %v5401_v5 = vld [vmem:[#allocation8_spill] sm:$0xff] }
 0xd50   : > { %1765 = vadd.xlane.f32.xlu1 %v1764_v49  ;;  %v411_v49 = vsel %vm350_vm1, %v5401_v5, 0.0 }
 0xd51   : > { %1413 = vadd.xlane.f32.xlu0 %v1412_v0  ;;  %v5402_v0 = vld [vmem:[#allocation6_spill] sm:$0xff] }
 0xd52   : > { %v417_v7 = vsel %vm350_vm1, %v5402_v0, 0.0 }
 0xd54   : > { %2758 = vmax.xlane.f32.xlu1 %v2757_v2 }
 0xd55   : > { %1419 = vadd.xlane.f32.xlu0 %v1418_v16 }
 0xd58   : > { %2752 = vmax.xlane.f32.xlu1 %v2751_v8 }
 0xd59   : > { %1425 = vadd.xlane.f32.xlu0 %v1424_v22 }
 0xd5c   : > { %1771 = vadd.xlane.f32.xlu1 %v1770_v36 }
 0xd5d   : > { %1431 = vadd.xlane.f32.xlu0 %v1430_v14 }
 0xd60   : > { %1777 = vadd.xlane.f32.xlu1 %v1776_v12 }
 0xd61   : > { %1756 = vadd.xlane.f32.xlu0 %v1755_v19 }
 0xd64   : > { %2102 = vadd.xlane.f32.xlu1 %v2101_v35 }
 0xd65   : > { %1762 = vadd.xlane.f32.xlu0 %v1761_v15 }
 0xd68   : > { %2108 = vadd.xlane.f32.xlu1 %v2107_v4 }
 0xd69   : > { %1768 = vadd.xlane.f32.xlu0 %v1767_v9 }
 0xd6c   : > { %2114 = vadd.xlane.f32.xlu1 %v2113_v60 }
 0xd6d   : > { %1774 = vadd.xlane.f32.xlu0 %v1773_v53 }
 0xd70   : > { %2120 = vadd.xlane.f32.xlu1 %v2119_v48 }
 0xd71   : > { %2099 = vadd.xlane.f32.xlu0 %v2098_v47 }
 0xd74   : > { %2445 = vadd.xlane.f32.xlu1 %v2444_v23 }
 0xd75   : > { %2105 = vadd.xlane.f32.xlu0 %v2104_v61 }
 0xd78   : > { %2451 = vadd.xlane.f32.xlu1 %v2450_v62 }
 0xd79   : > { %2111 = vadd.xlane.f32.xlu0 %v2110_v24 }
 0xd7c   : > { %2457 = vadd.xlane.f32.xlu1 %v2456_v57 }
 0xd7d   : > { %2117 = vadd.xlane.f32.xlu0 %v2116_v6 }
 0xd80   : > { %2463 = vadd.xlane.f32.xlu1 %v2462_v20 }
 0xd81   : > { %2442 = vadd.xlane.f32.xlu0 %v2441_v44 }
 0xd84   : > { %403 = vadd.xlane.f32.xlu1 %v402_v25 }
 0xd85   : > { %2448 = vadd.xlane.f32.xlu0 %v2447_v50 }
 0xd88   : > { %409 = vadd.xlane.f32.xlu1 %v408_v29 }
 0xd89   : > { %2454 = vadd.xlane.f32.xlu0 %v2453_v33 }
 0xd8c   : > { %415 = vadd.xlane.f32.xlu1 %v414_v55 }
 0xd8d   : > { %2460 = vadd.xlane.f32.xlu0 %v2459_v59 }
 0xd90   : > { %421 = vadd.xlane.f32.xlu1 %v420_v27 }
 0xd91   : > { %400 = vadd.xlane.f32.xlu0 %v399_v28 }
 0xd95   : > { %406 = vadd.xlane.f32.xlu0 %v405_v31 }
 0xd99   : > { %412 = vadd.xlane.f32.xlu0 %v411_v49  ;;  %v5406_v49 = vld [vmem:[#allocation20_spill] sm:$0xff] }
 0xd9d   : > { %418 = vadd.xlane.f32.xlu0 %v417_v7 }
 0xda6   : > { %v2744_v2 = vpop.xlane.xlu0 %2743 }
 0xda7   : > { %v2762_v8 = vsub.f32 %v4780_v52, %v2744_v2 }
 0xda9   : > { %v2741_v16 = vpop.xlane.xlu1 %2740  ;;  %v2772_v15 = vmul.f32 1.442695, %v2762_v8 }
 0xdaa   : > { %v2761_v22 = vsub.f32 %v4788_v1, %v2741_v16  ;;  %v2738_v36 = vpop.xlane.xlu0 %2737  ;;  %v5407_v16 = vld [vmem:[#allocation25_spill] sm:$0xff] }
 0xdab   : > { %v2760_v14 = vsub.f32 %v4782_v18, %v2738_v36 }
 0xdac   : > { %v2770_v12 = vmul.f32 1.442695, %v2761_v22 }
 0xdad   : > { %v2768_v19 = vmul.f32 1.442695, %v2760_v14  ;;  %v731_v35 = vpop.xlane.xlu1 %730 }
 0xdae   : > { %3871 = vpow2.f32 %v2770_v12  ;;  %v2747_v4 = vpop.xlane.xlu0 %2746  ;;  %v5408_v12 = vld [vmem:[#allocation23_spill] sm:$0xff] }
 0xdaf   : > { %3873 = vpow2.f32 %v2768_v19  ;;  %v2763_v9 = vsub.f32 %v4786_v43, %v2747_v4 }
 0xdb0   : > { %3875 = vrcp.f32 %v731_v35 }
 0xdb1   : > { %v2774_v60 = vmul.f32 1.442695, %v2763_v9  ;;  %v743_v51 = vpop.xlane.xlu1 %742  ;;  %3877 = vpow2.f32 %v2772_v15  ;;  %v5409_v9 = vld [vmem:[#allocation24_spill] sm:$0xff] }
 0xdb2   : > { %v4928_v53 = vpop.xlane.xlu0 %2755 }
 0xdb3   : > { %3879 = vpow2.f32 %v2774_v60 }
 0xdb5   : > { %v749_v52 = vpop.xlane.xlu1 %748 }
 0xdb6   : > { %v4930_v1 = vpop.xlane.xlu0 %2749 }
 0xdb8   : > { %v4932_v18 = vpop.eup %3871 }
 0xdb9   : > { %v4934_v48 = vpop.eup %3873  ;;  %v1074_v41 = vpop.xlane.xlu1 %1073 }
 0xdba   : > { %v3876_v47 = vpop.eup %3875  ;;  %v728_v23 = vpop.xlane.xlu0 %727  ;;  %v2808_v43 = vpack.c.bf16 %v4932_v18, %v4934_v48 }
 0xdbb   : > { %v852_v61 = vmul.f32 %v3876_v47, %v5403_v30  ;;  %v4939_v62 = vpop.eup %3877  ;;  %3881 = vrcp.f32 %v728_v23  ;;  %v5410_v47 = vld [vmem:[#allocation22_spill] sm:$0xff]  ;;  %v2766_v30 = vsub.f32 %v4796_v17, %v4928_v53 }
 0xdbc   : > { %3665 = vmatprep.mubr.msk.bf16.mxu0 %vm350_vm1, %v2808_v43 }
 0xdbd   : > { %v4942_v42 = vpop.eup %3879  ;;  %v3234_v24 = vpack.c.bf16 %v852_v61, %v852_v61  ;;  %v1080_v57 = vpop.xlane.xlu1 %1079  ;;  %v2780_v17 = vmul.f32 1.442695, %v2766_v30  ;;  %v5419_v30 = vld [vmem:[#allocation37_spill] sm:$0xff] }
 0xdbe   : > { %v2809_v45 = vpack.c.bf16 %v4942_v42, %v4939_v62  ;;  %v734_v6 = vpop.xlane.xlu0 %733 }
 0xdbf   : > { %885 = vrot.lane.b32.xlu1 %v3234_v24, %s4062_s7  ;;  %3883 = vrcp.f32 %v734_v6 }
 0xdc0   : > { %3666 = vmatmul.mubr.msk.bf16.vlgmr.msra.gmra.mrb[56].mxu0 %vm350_vm1, %v2809_v45  ;;  %3885 = vrcp.f32 %v743_v51 }
 0xdc1   : > { %v1086_v20 = vpop.xlane.xlu1 %1085 }
 0xdc2   : > { %v737_v44 = vpop.xlane.xlu0 %736 }
 0xdc3   : > { %3887 = vrcp.f32 %v737_v44 }
 0xdc4   : > { %3889 = vrcp.f32 %v749_v52 }
 0xdc5   : > { %v1092_v39 = vpop.xlane.xlu1 %1091  ;;  %v3882_v25 = vpop.eup %3881 }
 0xdc6   : > { %v740_v50 = vpop.xlane.xlu0 %739  ;;  %v851_v29 = vmul.f32 %v3882_v25, %v5404_v46  ;;  %v5412_v25 = vld [vmem:[#allocation27_spill] sm:$0xff] }
 0xdc7   : > { %3891 = vrcp.f32 %v740_v50 }
 0xdc8   : > { %v3233_v55 = vpack.c.bf16 %v851_v29, %v851_v29  ;;  %3893 = vrcp.f32 %v1074_v41 }
 0xdc9   : > { %v3884_v33 = vpop.eup %3883  ;;  %v1417_v21 = vpop.xlane.xlu1 %1416 }
 0xdca   : > { %v746_v59 = vpop.xlane.xlu0 %745  ;;  %v853_v27 = vmul.f32 %v3884_v33, %v5405_v11  ;;  %883 = vrot.lane.b32.xlu0 %v3233_v55, %s4062_s7  ;;  %v3886_v40 = vpop.eup %3885  ;;  %v5413_v33 = vld [vmem:[#allocation28_spill] sm:$0xff] }
 0xdcb   : > { %3895 = vrcp.f32 %v746_v59  ;;  %v856_v8 = vmul.f32 %v3886_v40, %v5407_v16  ;;  %v5416_v16 = vld [vmem:[#allocation31_spill] sm:$0xff] }
 0xdcc   : > { %v3235_v28 = vpack.c.bf16 %v853_v27, %v853_v27  ;;  %3897 = vrcp.f32 %v1080_v57  ;;  %v5411_v57 = vld [vmem:[#allocation29_spill] sm:$0xff] }
 0xdcd   : > { %v3888_v32 = vpop.eup %3887  ;;  %v1423_v31 = vpop.xlane.xlu1 %1422  ;;  %v3238_v4 = vpack.c.bf16 %v856_v8, %v856_v8 }
 0xdce   : > { %v1071_v5 = vpop.xlane.xlu0 %1070  ;;  %887 = vrot.lane.b32.xlu1 %v3235_v28, %s4062_s7  ;;  %v854_v0 = vmul.f32 %v3888_v32, %v5406_v49  ;;  %v3890_v7 = vpop.eup %3889 }
 0xdcf   : > { %3899 = vrcp.f32 %v1071_v5  ;;  %v858_v60 = vmul.f32 %v3890_v7, %v5409_v9  ;;  %v5415_v5 = vld [vmem:[#allocation33_spill] sm:$0xff] }
 0xdd0   : > { %v3236_v2 = vpack.c.bf16 %v854_v0, %v854_v0  ;;  %3901 = vrcp.f32 %v1086_v20  ;;  %v2764_v20 = vsub.f32 %v4800_v38, %v4930_v1  ;;  %v5414_v1 = vld [vmem:[#allocation26_spill] sm:$0xff] }
 0xdd1   : > { %v3892_v22 = vpop.eup %3891  ;;  %v1429_v36 = vpop.xlane.xlu1 %1428  ;;  %v3240_v24 = vpack.c.bf16 %v858_v60, %v858_v60  ;;  %v5418_v60 = vld [vmem:[#allocation30_spill] sm:$0xff] }
 0xdd2   : > { %v1077_v14 = vpop.xlane.xlu0 %1076  ;;  %889 = vrot.lane.b32.xlu1 %v3236_v2, %s4062_s7  ;;  %v855_v19 = vmul.f32 %v3892_v22, %v5408_v12  ;;  %v3894_v35 = vpop.eup %3893  ;;  %v2776_v11 = vmul.f32 1.442695, %v2764_v20 }
 0xdd3   : > { %3903 = vrcp.f32 %v1077_v14  ;;  %v1195_v45 = vmul.f32 %v3894_v35, %v5411_v57  ;;  %v5417_v35 = vld [vmem:[#allocation32_spill] sm:$0xff] }
 0xdd4   : > { %v3237_v15 = vpack.c.bf16 %v855_v19, %v855_v19  ;;  %3905 = vrcp.f32 %v1092_v39 }
 0xdd5   : > { %v3896_v51 = vpop.eup %3895  ;;  %v1435_v52 = vpop.xlane.xlu1 %1434  ;;  %v3242_v29 = vpack.c.bf16 %v1195_v45, %v1195_v45  ;;  %v5420_v45 = vld [vmem:[#allocation35_spill] sm:$0xff] }
 0xdd6   : > { %891 = vrot.lane.b32.xlu0 %v3237_v15, %s4062_s7  ;;  %v1083_v41 = vpop.xlane.xlu0 %1082  ;;  %893 = vrot.lane.b32.xlu1 %v3238_v4, %s4062_s7  ;;  %v857_v23 = vmul.f32 %v3896_v51, %v5410_v47  ;;  %v3898_v43 = vpop.eup %3897 }
 0xdd7   : > { %3907 = vrcp.f32 %v1083_v41  ;;  %v1197_v55 = vmul.f32 %v3898_v43, %v5413_v33  ;;  %v5422_v33 = vld [vmem:[#allocation34_spill] sm:$0xff] }
 0xdd8   : > { %v3239_v61 = vpack.c.bf16 %v857_v23, %v857_v23  ;;  %3909 = vrcp.f32 %v1417_v21 }
 0xdd9   : > { %v3900_v6 = vpop.eup %3899  ;;  %v1760_v44 = vpop.xlane.xlu1 %1759  ;;  %v3244_v32 = vpack.c.bf16 %v1197_v55, %v1197_v55 }
 0xdda   : > { %895 = vrot.lane.b32.xlu0 %v3239_v61, %s4062_s7  ;;  %v1089_v39 = vpop.xlane.xlu0 %1088  ;;  %897 = vrot.lane.b32.xlu1 %v3240_v24, %s4062_s7  ;;  %v1194_v50 = vmul.f32 %v3900_v6, %v5412_v25  ;;  %v3902_v46 = vpop.eup %3901 }
 0xddb   : > { %3911 = vrcp.f32 %v1089_v39  ;;  %v1199_v49 = vmul.f32 %v3902_v46, %v5415_v5  ;;  %v5421_v46 = vld [vmem:[#allocation36_spill] sm:$0xff] }
 0xddc   : > { %v3241_v53 = vpack.c.bf16 %v1194_v50, %v1194_v50  ;;  %3913 = vrcp.f32 %v1423_v31 }
 0xddd   : > { %v3904_v59 = vpop.eup %3903  ;;  %v4969_v27 = vpop.xlane.xlu1 %1765  ;;  %v3246_v19 = vpack.c.bf16 %v1199_v49, %v1199_v49 }
 0xdde   : > { %1226 = vrot.lane.b32.xlu0 %v3241_v53, %s4063_s8  ;;  %v1414_v38 = vpop.xlane.xlu0 %1413  ;;  %1228 = vrot.lane.b32.xlu1 %v3242_v29, %s4063_s8  ;;  %v1196_v21 = vmul.f32 %v3904_v59, %v5414_v1  ;;  %v3906_v40 = vpop.eup %3905 }
 0xddf   : > { %3915 = vrcp.f32 %v1414_v38  ;;  %v1201_v15 = vmul.f32 %v3906_v40, %v5417_v35 }
 0xde0   : > { %3917 = vpow2.f32 %v2780_v17  ;;  %v3243_v28 = vpack.c.bf16 %v1196_v21, %v1196_v21  ;;  %v5423_v21 = vld [vmem:[#allocation41_spill] sm:$0xff] }
 0xde1   : > { %v3908_v0 = vpop.eup %3907  ;;  %3919 = vpow2.f32 %v2776_v11  ;;  %v2759_v7 = vpop.xlane.xlu1 %2758  ;;  %v3248_v43 = vpack.c.bf16 %v1201_v15, %v1201_v15 }
 0xde2   : > { %3921 = vrcp.f32 %v1429_v36  ;;  %v2767_v31 = vsub.f32 %v4802_v56, %v2759_v7  ;;  %1230 = vrot.lane.b32.xlu0 %v3243_v28, %s4063_s8  ;;  %v1420_v2 = vpop.xlane.xlu0 %1419  ;;  %1232 = vrot.lane.b32.xlu1 %v3244_v32, %s4063_s8  ;;  %v1198_v8 = vmul.f32 %v3908_v0, %v5416_v16  ;;  %v3910_v22 = vpop.eup %3909  ;;  %v5424_v0 = vld [vmem:[#allocation39_spill] sm:$0xff] }
 0xde3   : > { %3923 = vrcp.f32 %v1420_v2  ;;  %v1538_v61 = vmul.f32 %v3910_v22, %v5419_v30  ;;  %v5425_v22 = vld [vmem:[#allocation40_spill] sm:$0xff] }
 0xde4   : > { %v2782_v14 = vmul.f32 1.442695, %v2767_v31  ;;  %v3245_v12 = vpack.c.bf16 %v1198_v8, %v1198_v8  ;;  %3925 = vrcp.f32 %v1435_v52 }
 0xde5   : > { %v3912_v4 = vpop.eup %3911  ;;  %v2753_v9 = vpop.xlane.xlu1 %2752  ;;  %v3250_v50 = vpack.c.bf16 %v1538_v61, %v1538_v61 }
 0xde6   : > { %3927 = vpow2.f32 %v2782_v14  ;;  %v2765_v56 = vsub.f32 %v4804_v26, %v2753_v9  ;;  %1234 = vrot.lane.b32.xlu0 %v3245_v12, %s4063_s8  ;;  %v1426_v36 = vpop.xlane.xlu0 %1425  ;;  %1236 = vrot.lane.b32.xlu1 %v3246_v19, %s4063_s8  ;;  %v1200_v51 = vmul.f32 %v3912_v4, %v5418_v60  ;;  %v3914_v41 = vpop.eup %3913  ;;  %v5426_v9 = vld [vmem:[#allocation50_spill] sm:$0xff] }
 0xde7   : > { %3929 = vrcp.f32 %v1426_v36  ;;  %v5427_v36 = vld [vmem:[#allocation38_spill] sm:$0xff] }
 0xde8   : > { %v2778_v47 = vmul.f32 1.442695, %v2765_v56  ;;  %v3247_v23 = vpack.c.bf16 %v1200_v51, %v1200_v51  ;;  %3931 = vrcp.f32 %v1760_v44  ;;  %v1540_v44 = vmul.f32 %v3914_v41, %v5421_v46 }
 0xde9   : > { %v3916_v24 = vpop.eup %3915  ;;  %v1772_v52 = vpop.xlane.xlu1 %1771 }
 0xdea   : > { %v4985_v57 = vpop.eup %3917  ;;  %3933 = vpow2.f32 %v2778_v47  ;;  %1238 = vrot.lane.b32.xlu0 %v3247_v23, %s4063_s8  ;;  %v1432_v26 = vpop.xlane.xlu0 %1431  ;;  %1240 = vrot.lane.b32.xlu1 %v3248_v43, %s4063_s8  ;;  %v1537_v6 = vmul.f32 %v3916_v24, %v5420_v45  ;;  %v3252_v1 = vpack.c.bf16 %v1540_v44, %v1540_v44  ;;  %v5428_v47 = vld [vmem:[#allocation46_spill] sm:$0xff]  ;;  %v5429_v24 = vld [vmem:[#allocation49_spill] sm:$0xff]  ;;  %v5430_v45 = vld [vmem:[#allocation44_spill] sm:$0xff] }
 0xdeb   : > { %v4990_v20 = vpop.eup %3919  ;;  %3935 = vrcp.f32 %v1772_v52  ;;  %v5431_v44 = vld [vmem:[#allocation58_spill] sm:$0xff] }
 0xdec   : > { %v3922_v39 = vpop.eup %3921  ;;  %3937 = vrcp.f32 %v1432_v26  ;;  %v3249_v25 = vpack.c.bf16 %v1537_v6, %v1537_v6 }
 0xded   : > { %v3924_v17 = vpop.eup %3923  ;;  %v1778_v53 = vpop.xlane.xlu1 %1777  ;;  %v1542_v40 = vmul.f32 %v3922_v39, %v5423_v21 }
 0xdee   : > { %3939 = vrcp.f32 %v1778_v53  ;;  %1569 = vrot.lane.b32.xlu0 %v3249_v25, %s4064_s9  ;;  %v1757_v29 = vpop.xlane.xlu0 %1756  ;;  %1571 = vrot.lane.b32.xlu1 %v3250_v50, %s4064_s9  ;;  %v1539_v55 = vmul.f32 %v3924_v17, %v5422_v33  ;;  %v3926_v59 = vpop.eup %3925 }
 0xdef   : > { %3941 = vrcp.f32 %v1757_v29  ;;  %v3254_v8 = vpack.c.bf16 %v1542_v40, %v1542_v40  ;;  %v1544_v14 = vmul.f32 %v3926_v59, %v5425_v22  ;;  %v5433_v40 = vld [vmem:[#allocation62_spill] sm:$0xff] }
 0xdf0   : > { %v4996_v11 = vpop.eup %3927  ;;  %v3251_v38 = vpack.c.bf16 %v1539_v55, %v1539_v55  ;;  %v5432_v55 = vld [vmem:[#allocation57_spill] sm:$0xff] }
 0xdf1   : > { %v3930_v28 = vpop.eup %3929  ;;  %v2103_v32 = vpop.xlane.xlu1 %2102  ;;  %v2811_v5 = vpack.c.bf16 %v4996_v11, %v4985_v57  ;;  %v3256_v41 = vpack.c.bf16 %v1544_v14, %v1544_v14 }
 0xdf2   : > { %3943 = vrcp.f32 %v2103_v32  ;;  %1573 = vrot.lane.b32.xlu0 %v3251_v38, %s4064_s9  ;;  %v5002_v49 = vpop.xlane.xlu0 %1762  ;;  %1575 = vrot.lane.b32.xlu1 %v3252_v1, %s4064_s9  ;;  %v1541_v7 = vmul.f32 %v3930_v28, %v5424_v0  ;;  %v3932_v31 = vpop.eup %3931 }
 0xdf3   : > { %v1881_v23 = vmul.f32 %v3932_v31, %v5428_v47 }
 0xdf4   : > { %v5006_v2 = vpop.eup %3933  ;;  %v3253_v16 = vpack.c.bf16 %v1541_v7, %v1541_v7  ;;  %v5434_v7 = vld [vmem:[#allocation61_spill] sm:$0xff] }
 0xdf5   : > { %v3936_v12 = vpop.eup %3935  ;;  %v2109_v19 = vpop.xlane.xlu1 %2108  ;;  %v2810_v35 = vpack.c.bf16 %v5006_v2, %v4990_v20  ;;  %v3258_v50 = vpack.c.bf16 %v1881_v23, %v1881_v23 }
 0xdf6   : > { %v3938_v15 = vpop.eup %3937  ;;  %3945 = vrcp.f32 %v2109_v19  ;;  %1577 = vrot.lane.b32.xlu0 %v3253_v16, %s4064_s9  ;;  %v5012_v4 = vpop.xlane.xlu0 %1768  ;;  %1579 = vrot.lane.b32.xlu1 %v3254_v8, %s4064_s9  ;;  %v5016_v56 = vmul.f32 %v3936_v12, %v5426_v9 }
 0xdf7   : > { %3669 = vmatprep.mubr.msk.bf16.mxu0 %vm350_vm1, %v2810_v35  ;;  %v1543_v60 = vmul.f32 %v3938_v15, %v5427_v36 }
 0xdf8   : > { %v3940_v51 = vpop.eup %3939  ;;  %3670 = vmatmul.mubr.msk.bf16.gmra.mrb[60].mxu0 %vm350_vm1, %v2811_v5 }
 0xdf9   : > { %v3942_v43 = vpop.eup %3941  ;;  %v2115_v30 = vpop.xlane.xlu1 %2114  ;;  %v3255_v61 = vpack.c.bf16 %v1543_v60, %v1543_v60  ;;  %v5023_v52 = vmul.f32 %v3940_v51, %v5429_v24  ;;  %v2790_v24 = vsel %vm350_vm1, %v4939_v62, 0.0  ;;  %v2784_v62 = vsel %vm350_vm1, %v4934_v48, 0.0 }
 0xdfa   : > { %3947 = vrcp.f32 %v2115_v30  ;;  %v5025_v26 = vpop.xlane.xlu0 %1774  ;;  %1583 = vrot.lane.b32.xlu1 %v3256_v41, %s4064_s9  ;;  %v1880_v6 = vmul.f32 %v3942_v43, %v5430_v45  ;;  %v5435_v30 = vld [vmem:[#allocation13_spill] sm:$0xff]  ;;  %v2787_v48 = vsel %vm350_vm1, %v4932_v18, 0.0 }
 0xdfb   : > { %1581 = vrot.lane.b32.xlu0 %v3255_v61, %s4064_s9 }
 0xdfc   : > { %v3944_v39 = vpop.eup %3943  ;;  %v3257_v25 = vpack.c.bf16 %v1880_v6, %v1880_v6 }
 0xdfd   : > { %v2121_v46 = vpop.xlane.xlu1 %2120  ;;  %v5031_v17 = vmul.f32 %v3944_v39, %v5431_v44  ;;  %v5436_v39 = vld [vmem:[#allocation12_spill] sm:$0xff] }
 0xdfe   : > { %3949 = vrcp.f32 %v2121_v46  ;;  %v5033_v53 = vpop.xlane.xlu0 %2099  ;;  %1914 = vrot.lane.b32.xlu1 %v3258_v50, %s4065_s14  ;;  %v2793_v50 = vsel %vm350_vm1, %v4942_v42, 0.0 }
 0xdff   : > { %1912 = vrot.lane.b32.xlu0 %v3257_v25, %s4065_s14 }
 0xe00   : > { %v3946_v29 = vpop.eup %3945 }
 0xe01   : > { %v2446_v33 = vpop.xlane.xlu1 %2445  ;;  %v5038_v59 = vmul.f32 %v3946_v29, %v5432_v55 }
 0xe02   : > { %3951 = vrcp.f32 %v2446_v33  ;;  %v5040_v38 = vpop.xlane.xlu0 %2105  ;;  %v5437_v33 = vld [vmem:[#allocation17_spill] sm:$0xff] }
 0xe04   : > { %v3948_v1 = vpop.eup %3947 }
 0xe05   : > { %v2452_v21 = vpop.xlane.xlu1 %2451  ;;  %v5043_v28 = vmul.f32 %v3948_v1, %v5433_v40  ;;  %v2802_v1 = vsel %vm350_vm1, %v4985_v57, 0.0  ;;  %v5439_v57 = vld [vmem:[#allocation11_spill] sm:$0xff] }
 0xe06   : > { %3953 = vrcp.f32 %v2452_v21  ;;  %v5045_v32 = vpop.xlane.xlu0 %2111 }
 0xe08   : > { %v3950_v5 = vpop.eup %3949 }
 0xe09   : > { %v2458_v0 = vpop.xlane.xlu1 %2457  ;;  %v5048_v31 = vmul.f32 %v3950_v5, %v5434_v7  ;;  %v2796_v7 = vsel %vm350_vm1, %v4990_v20, 0.0 }
 0xe0a   : > { %3955 = vrcp.f32 %v2458_v0  ;;  %v5050_v16 = vpop.xlane.xlu0 %2117 }
 0xe0c   : > { %v3952_v8 = vpop.eup %3951 }
 0xe0d   : > { %v2464_v22 = vpop.xlane.xlu1 %2463  ;;  %v5053_v14 = vmul.f32 %v3952_v8, %v4770_v37 }
 0xe0e   : > { %3957 = vrcp.f32 %v2464_v22  ;;  %v5055_v12 = vpop.xlane.xlu0 %2442 }
 0xe10   : > { %v3954_v19 = vpop.eup %3953 }
 0xe11   : > { %v404_v35 = vpop.xlane.xlu1 %403  ;;  %v5058_v15 = vmul.f32 %v3954_v19, %v4768_v10 }
 0xe12   : > { %3959 = vrcp.f32 %v404_v35  ;;  %v5060_v9 = vpop.xlane.xlu0 %2448 }
 0xe14   : > { %v3956_v36 = vpop.eup %3955 }
 0xe15   : > { %v410_v60 = vpop.xlane.xlu1 %409  ;;  %v5063_v51 = vmul.f32 %v3956_v36, %v4778_v58 }
 0xe16   : > { %3961 = vrcp.f32 %v410_v60  ;;  %v5065_v37 = vpop.xlane.xlu0 %2454  ;;  %v5440_v60 = vld [vmem:[#allocation10_spill] sm:$0xff] }
 0xe18   : > { %v3958_v41 = vpop.eup %3957 }
 0xe19   : > { %v416_v47 = vpop.xlane.xlu1 %415  ;;  %v5068_v23 = vmul.f32 %v3958_v41, %v4776_v63 }
 0xe1a   : > { %3963 = vrcp.f32 %v416_v47  ;;  %v5070_v10 = vpop.xlane.xlu0 %2460 }
 0xe1c   : > { %v3960_v43 = vpop.eup %3959 }
 0xe1d   : > { %v525_v61 = vmul.f32 %v3960_v43, %v5435_v30  ;;  %v422_v45 = vpop.xlane.xlu1 %421  ;;  %v5441_v30 = vld [vmem:[#allocation45_spill] sm:$0xff] }
 0xe1e   : > { %2791 = vadd.xlane.f32.xlu0 %v2790_v24  ;;  %3965 = vrcp.f32 %v422_v45  ;;  %v401_v63 = vpop.xlane.xlu0 %400  ;;  %v5442_v24 = vld [vmem:[#allocation15_spill] sm:$0xff] }
 0xe1f   : > { %3967 = vrcp.f32 %v401_v63  ;;  %v3226_v58 = vpack.c.bf16 %v525_v61, %v525_v61 }
 0xe20   : > { %v3962_v6 = vpop.eup %3961 }
 0xe21   : > { %v527_v25 = vmul.f32 %v3962_v6, %v5436_v39  ;;  %566 = vst.msk [vmem:[%s5079_s17 + $0x4] sm:$0xf] %vm564_vm2, %v3226_v58  ;;  %v5443_v6 = vld [vmem:[#allocation14_spill] sm:$0xff] }
 0xe22   : > { %2785 = vadd.xlane.f32.xlu0 %v2784_v62  ;;  %v407_v46 = vpop.xlane.xlu0 %406  ;;  %2794 = vadd.xlane.f32.xlu1 %v2793_v50  ;;  %v5444_v62 = vld [vmem:[#allocation43_spill] sm:$0xff] }
 0xe23   : > { %3969 = vrcp.f32 %v407_v46  ;;  %v3228_v44 = vpack.c.bf16 %v527_v25, %v527_v25 }
 0xe24   : > { %v3964_v29 = vpop.eup %3963  ;;  %3971 = vrcp.f32 %v4969_v27  ;;  %v5438_v27 = vld [vmem:[#allocation16_spill] sm:$0xff] }
 0xe25   : > { %v529_v55 = vmul.f32 %v3964_v29, %v5437_v33  ;;  %568 = vst.msk [vmem:[%s5079_s17 + $0xc] sm:$0xf] %vm564_vm2, %v3228_v44  ;;  %v5445_v29 = vld [vmem:[#allocation48_spill] sm:$0xff] }
 0xe26   : > { %2803 = vadd.xlane.f32.xlu0 %v2802_v1  ;;  %v413_v42 = vpop.xlane.xlu0 %412  ;;  %2788 = vadd.xlane.f32.xlu1 %v2787_v48  ;;  %v5446_v48 = vld [vmem:[#allocation47_spill] sm:$0xff] }
 0xe27   : > { %3973 = vrcp.f32 %v413_v42  ;;  %v3230_v21 = vpack.c.bf16 %v529_v55, %v529_v55 }
 0xe28   : > { %v3966_v40 = vpop.eup %3965 }
 0xe29   : > { %v3968_v5 = vpop.eup %3967  ;;  %v531_v0 = vmul.f32 %v3966_v40, %v5438_v27  ;;  %570 = vst.msk [vmem:[%s5079_s17 + $0x14] sm:$0xf] %vm564_vm2, %v3230_v21 }
 0xe2a   : > { %v524_v18 = vmul.f32 %v3968_v5, %v5439_v57  ;;  %2797 = vadd.xlane.f32.xlu0 %v2796_v7  ;;  %v419_v8 = vpop.xlane.xlu0 %418  ;;  %v5447_v5 = vld [vmem:[#allocation56_spill] sm:$0xff] }
 0xe2b   : > { %3975 = vrcp.f32 %v419_v8  ;;  %v3232_v22 = vpack.c.bf16 %v531_v0, %v531_v0 }
 0xe2c   : > { %v3225_v19 = vpack.c.bf16 %v524_v18, %v524_v18  ;;  %3977 = vrcp.f32 %v5002_v49 }
 0xe2d   : > { %v3970_v35 = vpop.eup %3969  ;;  %572 = vst.msk [vmem:[%s5079_s17 + $0x1c] sm:$0xf] %vm564_vm2, %v3232_v22  ;;  %3979 = vrcp.f32 %v5012_v4 }
 0xe2e   : > { %v3972_v36 = vpop.eup %3971  ;;  %v526_v41 = vmul.f32 %v3970_v35, %v5440_v60  ;;  %565 = vst.msk [vmem:[%s5079_s17] sm:$0xf] %vm564_vm2, %v3225_v19  ;;  %3981 = vrcp.f32 %v5025_v26  ;;  %v5449_v35 = vld [vmem:[#allocation60_spill] sm:$0xff] }
 0xe2f   : > { %v1883_v61 = vmul.f32 %v3972_v36, %v5441_v30  ;;  %3983 = vrcp.f32 %v5033_v53 }
 0xe30   : > { %v3227_v20 = vpack.c.bf16 %v526_v41, %v526_v41  ;;  %3985 = vrcp.f32 %v5040_v38 }
 0xe31   : > { %v3974_v47 = vpop.eup %3973  ;;  %v886_v43 = vpop.permute.xlu1 %885  ;;  %v3260_v58 = vpack.c.bf16 %v1883_v61, %v1883_v61  ;;  %3987 = vrcp.f32 %v5045_v32 }
 0xe32   : > { %v528_v45 = vmul.f32 %v3974_v47, %v5442_v24  ;;  %909 = vst.msk [vmem:[%s5079_s17 + $0x4] sm:$0xf] %vm907_vm3, %v886_v43  ;;  %3989 = vrcp.f32 %v5050_v16  ;;  %v5448_v16 = vld [vmem:[#allocation55_spill] sm:$0xff] }
 0xe33   : > { %567 = vst.msk [vmem:[%s5079_s17 + $0x8] sm:$0xf] %vm564_vm2, %v3227_v20  ;;  %3991 = vrcp.f32 %v5055_v12  ;;  %v5450_v47 = vld [vmem:[#allocation59_spill] sm:$0xff] }
 0xe34   : > { %v3229_v49 = vpack.c.bf16 %v528_v45, %v528_v45  ;;  %3993 = vrcp.f32 %v5060_v9 }
 0xe35   : > { %v3976_v63 = vpop.eup %3975  ;;  %3995 = vrcp.f32 %v5065_v37 }
 0xe36   : > { %v530_v39 = vmul.f32 %v3976_v63, %v5443_v6  ;;  %569 = vst.msk [vmem:[%s5079_s17 + $0x10] sm:$0xf] %vm564_vm2, %v3229_v49  ;;  %v3978_v4 = vpop.eup %3977  ;;  %3997 = vrcp.f32 %v5070_v10  ;;  %v2805_v10 = vsel %vm350_vm1, %v4996_v11, 0.0  ;;  %v2799_v11 = vsel %vm350_vm1, %v5006_v2, 0.0 }
 0xe37   : > { %1918 = vrot.lane.b32.xlu1 %v3260_v58, %s4065_s14  ;;  %v1882_v50 = vmul.f32 %v3978_v4, %v5444_v62  ;;  %v3980_v46 = vpop.eup %3979 }
 0xe38   : > { %v3231_v25 = vpack.c.bf16 %v530_v39, %v530_v39  ;;  %v1884_v33 = vmul.f32 %v3980_v46, %v5445_v29  ;;  %v3982_v55 = vpop.eup %3981 }
 0xe39   : > { %v3259_v44 = vpack.c.bf16 %v1882_v50, %v1882_v50  ;;  %v1886_v38 = vmul.f32 %v3982_v55, %v5446_v48  ;;  %v3984_v42 = vpop.eup %3983  ;;  %v3262_v48 = vpack.c.bf16 %v5016_v56, %v5016_v56  ;;  %v3268_v56 = vpack.c.bf16 %v5038_v59, %v5038_v59 }
 0xe3a   : > { %571 = vst.msk [vmem:[%s5079_s17 + $0x18] sm:$0xf] %vm564_vm2, %v3231_v25  ;;  %v3261_v53 = vpack.c.bf16 %v1884_v33, %v1884_v33  ;;  %v2223_v27 = vmul.f32 %v3984_v42, %v5447_v5  ;;  %v3986_v32 = vpop.eup %3985  ;;  %v3270_v5 = vpack.c.bf16 %v5043_v28, %v5043_v28  ;;  %v3276_v59 = vpack.c.bf16 %v5058_v15, %v5058_v15 }
 0xe3b   : > { %v3263_v40 = vpack.c.bf16 %v1886_v38, %v1886_v38  ;;  %v2225_v18 = vmul.f32 %v3986_v32, %v5448_v16  ;;  %v3988_v8 = vpop.eup %3987  ;;  %v3278_v28 = vpack.c.bf16 %v5063_v51, %v5063_v51 }
 0xe3c   : > { %v884_v26 = vpop.permute.xlu0 %883  ;;  %v3265_v57 = vpack.c.bf16 %v2223_v27, %v2223_v27  ;;  %v2227_v36 = vmul.f32 %v3988_v8, %v5449_v35  ;;  %v3990_v60 = vpop.eup %3989 }
 0xe3d   : > { %908 = vst.msk [vmem:[%s5079_s17] sm:$0xf] %vm907_vm3, %v884_v26  ;;  %v3267_v12 = vpack.c.bf16 %v2225_v18, %v2225_v18  ;;  %v2229_v43 = vmul.f32 %v3990_v60, %v5450_v47  ;;  %v3992_v30 = vpop.eup %3991 }
 0xe3e   : > { %v3269_v9 = vpack.c.bf16 %v2227_v36, %v2227_v36  ;;  %v2566_v45 = vmul.f32 %v3992_v30, %v4766_v34  ;;  %v3994_v49 = vpop.eup %3993 }
 0xe3f   : > { %v3271_v37 = vpack.c.bf16 %v2229_v43, %v2229_v43  ;;  %v2568_v39 = vmul.f32 %v3994_v49, %v4764_v13  ;;  %v3996_v4 = vpop.eup %3995 }
 0xe40   : > { %1916 = vrot.lane.b32.xlu0 %v3259_v44, %s4065_s14  ;;  %v888_v1 = vpop.permute.xlu1 %887  ;;  %v3273_v6 = vpack.c.bf16 %v2566_v45, %v2566_v45  ;;  %v2570_v13 = vmul.f32 %v3996_v4, %v4774_v3  ;;  %v3998_v50 = vpop.eup %3997 }
 0xe41   : > { %910 = vst.msk [vmem:[%s5079_s17 + $0x8] sm:$0xf] %vm907_vm3, %v888_v1  ;;  %v3275_v62 = vpack.c.bf16 %v2568_v39, %v2568_v39  ;;  %v2572_v2 = vmul.f32 %v3998_v50, %v4772_v54 }
 0xe42   : > { %v3277_v44 = vpack.c.bf16 %v2570_v13, %v2570_v13 }
 0xe43   : > { %v3279_v33 = vpack.c.bf16 %v2572_v2, %v2572_v2 }
 0xe44   : > { %1920 = vrot.lane.b32.xlu0 %v3261_v53, %s4065_s14  ;;  %v890_v21 = vpop.permute.xlu1 %889 }
 0xe45   : > { %911 = vst.msk [vmem:[%s5079_s17 + $0xc] sm:$0xf] %vm907_vm3, %v890_v21  ;;  %v3264_v21 = vpack.c.bf16 %v5023_v52, %v5023_v52  ;;  %v3272_v52 = vpack.c.bf16 %v5048_v31, %v5048_v31  ;;  %v3280_v31 = vpack.c.bf16 %v5068_v23, %v5068_v23 }
 0xe48   : > { %1924 = vrot.lane.b32.xlu0 %v3263_v40, %s4065_s14  ;;  %v892_v0 = vpop.permute.xlu0 %891  ;;  %v894_v7 = vpop.permute.xlu1 %893  ;;  %v3266_v40 = vpack.c.bf16 %v5031_v17, %v5031_v17  ;;  %v3274_v17 = vpack.c.bf16 %v5053_v14, %v5053_v14 }
 0xe49   : > { %912 = vst.msk [vmem:[%s5079_s17 + $0x10] sm:$0xf] %vm907_vm3, %v892_v0  ;;  %913 = vst.msk [vmem:[%s5079_s17 + $0x14] sm:$0xf] %vm907_vm3, %v894_v7 }
 0xe4c   : > { %2255 = vrot.lane.b32.xlu0 %v3265_v57, %s4066_s13  ;;  %v896_v22 = vpop.permute.xlu0 %895  ;;  %v898_v19 = vpop.permute.xlu1 %897 }
 0xe4d   : > { %914 = vst.msk [vmem:[%s5079_s17 + $0x18] sm:$0xf] %vm907_vm3, %v896_v22  ;;  %915 = vst.msk [vmem:[%s5079_s17 + $0x1c] sm:$0xf] %vm907_vm3, %v898_v19 }
 0xe50   : > { %2259 = vrot.lane.b32.xlu0 %v3267_v12, %s4066_s13  ;;  %v1227_v41 = vpop.permute.xlu0 %1226  ;;  %v1229_v20 = vpop.permute.xlu1 %1228 }
 0xe51   : > { %1251 = vst.msk [vmem:[%s5079_s17] sm:$0xf] %vm1250_vm4, %v1227_v41  ;;  %1252 = vst.msk [vmem:[%s5079_s17 + $0x4] sm:$0xf] %vm1250_vm4, %v1229_v20 }
 0xe54   : > { %2263 = vrot.lane.b32.xlu0 %v3269_v9, %s4066_s13  ;;  %v1231_v61 = vpop.permute.xlu0 %1230  ;;  %v1233_v24 = vpop.permute.xlu1 %1232 }
 0xe55   : > { %1253 = vst.msk [vmem:[%s5079_s17 + $0x8] sm:$0xf] %vm1250_vm4, %v1231_v61  ;;  %1254 = vst.msk [vmem:[%s5079_s17 + $0xc] sm:$0xf] %vm1250_vm4, %v1233_v24 }
 0xe58   : > { %2267 = vrot.lane.b32.xlu0 %v3271_v37, %s4066_s13  ;;  %v1235_v63 = vpop.permute.xlu0 %1234  ;;  %v1237_v58 = vpop.permute.xlu1 %1236 }
 0xe59   : > { %1255 = vst.msk [vmem:[%s5079_s17 + $0x10] sm:$0xf] %vm1250_vm4, %v1235_v63  ;;  %1256 = vst.msk [vmem:[%s5079_s17 + $0x14] sm:$0xf] %vm1250_vm4, %v1237_v58 }
 0xe5b   : > { %2806 = vadd.xlane.f32.xlu1 %v2805_v10 }
 0xe5c   : > { %2598 = vrot.lane.b32.xlu0 %v3273_v6, %s4067_s18  ;;  %v1239_v34 = vpop.permute.xlu0 %1238  ;;  %v1241_v25 = vpop.permute.xlu1 %1240 }
 0xe5d   : > { %1257 = vst.msk [vmem:[%s5079_s17 + $0x18] sm:$0xf] %vm1250_vm4, %v1239_v34  ;;  %1258 = vst.msk [vmem:[%s5079_s17 + $0x1c] sm:$0xf] %vm1250_vm4, %v1241_v25 }
 0xe5f   : > { %2800 = vadd.xlane.f32.xlu1 %v2799_v11 }
 0xe60   : > { %2602 = vrot.lane.b32.xlu0 %v3275_v62, %s4067_s18  ;;  %v1570_v46 = vpop.permute.xlu0 %1569  ;;  %v1572_v26 = vpop.permute.xlu1 %1571 }
 0xe61   : > { %1594 = vst.msk [vmem:[%s5079_s17] sm:$0xf] %vm1593_vm5, %v1570_v46  ;;  %1595 = vst.msk [vmem:[%s5079_s17 + $0x4] sm:$0xf] %vm1593_vm5, %v1572_v26 }
 0xe64   : > { %2606 = vrot.lane.b32.xlu0 %v3277_v44, %s4067_s18  ;;  %v1574_v3 = vpop.permute.xlu0 %1573  ;;  %v1576_v29 = vpop.permute.xlu1 %1575 }
 0xe65   : > { %1596 = vst.msk [vmem:[%s5079_s17 + $0x8] sm:$0xf] %vm1593_vm5, %v1574_v3  ;;  %1597 = vst.msk [vmem:[%s5079_s17 + $0xc] sm:$0xf] %vm1593_vm5, %v1576_v29 }
 0xe68   : > { %2610 = vrot.lane.b32.xlu0 %v3279_v33, %s4067_s18  ;;  %v1578_v55 = vpop.permute.xlu0 %1577  ;;  %v1580_v1 = vpop.permute.xlu1 %1579 }
 0xe69   : > { %1598 = vst.msk [vmem:[%s5079_s17 + $0x10] sm:$0xf] %vm1593_vm5, %v1578_v55  ;;  %1599 = vst.msk [vmem:[%s5079_s17 + $0x14] sm:$0xf] %vm1593_vm5, %v1580_v1 }
 0xe6c   : > { %v1584_v54 = vpop.permute.xlu1 %1583 }
 0xe6d   : > { %v1582_v53 = vpop.permute.xlu0 %1581  ;;  %1601 = vst.msk [vmem:[%s5079_s17 + $0x1c] sm:$0xf] %vm1593_vm5, %v1584_v54 }
 0xe6e   : > { %1600 = vst.msk [vmem:[%s5079_s17 + $0x18] sm:$0xf] %vm1593_vm5, %v1582_v53 }
 0xe70   : > { %1922 = vrot.lane.b32.xlu1 %v3262_v48, %s4065_s14  ;;  %v1915_v38 = vpop.permute.xlu1 %1914 }
 0xe71   : > { %v1913_v42 = vpop.permute.xlu0 %1912  ;;  %1938 = vst.msk [vmem:[%s5079_s17 + $0x4] sm:$0xf] %vm1936_vm6, %v1915_v38 }
 0xe72   : > { %1937 = vst.msk [vmem:[%s5079_s17] sm:$0xf] %vm1936_vm6, %v1913_v42 }
 0xe74   : > { %1926 = vrot.lane.b32.xlu1 %v3264_v21, %s4065_s14 }
 0xe78   : > { %2257 = vrot.lane.b32.xlu1 %v3266_v40, %s4066_s13 }
 0xe7c   : > { %2261 = vrot.lane.b32.xlu1 %v3268_v56, %s4066_s13 }
 0xe80   : > { %2265 = vrot.lane.b32.xlu1 %v3270_v5, %s4066_s13 }
 0xe84   : > { %2269 = vrot.lane.b32.xlu1 %v3272_v52, %s4066_s13 }
 0xe88   : > { %2600 = vrot.lane.b32.xlu1 %v3274_v17, %s4067_s18 }
 0xe8c   : > { %2604 = vrot.lane.b32.xlu1 %v3276_v59, %s4067_s18 }
 0xe90   : > { %2608 = vrot.lane.b32.xlu1 %v3278_v28, %s4067_s18 }
 0xe93   : > { %v3667_v27 = vpop.f32.mrb[56].mxu0 }
 0xe94   : > { %v2870_v32 = vpop.f32.mrb[57].mxu0  ;;  %2612 = vrot.lane.b32.xlu1 %v3280_v31, %s4067_s18 }
 0xe95   : > { %v3668_v14 = vpop.f32.mrb[58].mxu0 }
 0xe96   : > { %v2873_v0 = vpop.f32.mrb[59].mxu0 }
 0xeab   : > { %v2792_v7 = vpop.xlane.xlu0 %2791 }
 0xeac   : > { %3999 = vrcp.f32 %v2792_v7 }
 0xeaf   : > { %v2786_v15 = vpop.xlane.xlu0 %2785  ;;  %v2795_v57 = vpop.xlane.xlu1 %2794 }
 0xeb0   : > { %4001 = vrcp.f32 %v2786_v15 }
 0xeb1   : > { %4003 = vrcp.f32 %v2795_v57 }
 0xeb3   : > { %v2804_v51 = vpop.xlane.xlu0 %2803  ;;  %v2789_v16 = vpop.xlane.xlu1 %2788 }
 0xeb4   : > { %4005 = vrcp.f32 %v2789_v16 }
 0xeb6   : > { %v4000_v18 = vpop.eup %3999 }
 0xeb7   : > { %v2798_v8 = vpop.xlane.xlu0 %2797  ;;  %v1919_v23 = vpop.permute.xlu1 %1918  ;;  %v2911_v22 = vmul.f32 %v4000_v18, %v3667_v27 }
 0xeb8   : > { %1940 = vst.msk [vmem:[%s5079_s17 + $0xc] sm:$0xf] %vm1936_vm6, %v1919_v23  ;;  %4007 = vrcp.f32 %v2798_v8 }
 0xeb9   : > { %v3283_v19 = vpack.c.bf16 %v2911_v22, %v2911_v22  ;;  %4009 = vrcp.f32 %v2804_v51 }
 0xeba   : > { %v4002_v12 = vpop.eup %4001 }
 0xebb   : > { %v4004_v35 = vpop.eup %4003  ;;  %v1917_v36 = vpop.permute.xlu0 %1916  ;;  %2945 = vrot.lane.b32.xlu0 %v3283_v19, %s4068_s19  ;;  %v2909_v60 = vmul.f32 %v4002_v12, %v2870_v32 }
 0xebc   : > { %1939 = vst.msk [vmem:[%s5079_s17 + $0x8] sm:$0xf] %vm1936_vm6, %v1917_v36  ;;  %v2912_v41 = vmul.f32 %v4004_v35, %v3668_v14 }
 0xebd   : > { %v3281_v20 = vpack.c.bf16 %v2909_v60, %v2909_v60 }
 0xebe   : > { %v3284_v9 = vpack.c.bf16 %v2912_v41, %v2912_v41  ;;  %v4006_v47 = vpop.eup %4005 }
 0xebf   : > { %v1921_v43 = vpop.permute.xlu0 %1920  ;;  %2941 = vrot.lane.b32.xlu0 %v3281_v20, %s4068_s19  ;;  %v2910_v30 = vmul.f32 %v4006_v47, %v2873_v0 }
 0xec0   : > { %1941 = vst.msk [vmem:[%s5079_s17 + $0x10] sm:$0xf] %vm1936_vm6, %v1921_v43  ;;  %2947 = vrot.lane.b32.xlu1 %v3284_v9, %s4068_s19 }
 0xec1   : > { %v3282_v61 = vpack.c.bf16 %v2910_v30, %v2910_v30 }
 0xec2   : > { %v4008_v63 = vpop.eup %4007 }
 0xec3   : > { %v1925_v24 = vpop.permute.xlu0 %1924  ;;  %v4010_v39 = vpop.eup %4009 }
 0xec4   : > { %1943 = vst.msk [vmem:[%s5079_s17 + $0x18] sm:$0xf] %vm1936_vm6, %v1925_v24  ;;  %2943 = vrot.lane.b32.xlu1 %v3282_v61, %s4068_s19 }
 0xec7   : > { %v2256_v37 = vpop.permute.xlu0 %2255 }
 0xec8   : > { %2280 = vst.msk [vmem:[%s5079_s17] sm:$0xf] %vm2279_vm7, %v2256_v37 }
 0xecb   : > { %v2260_v45 = vpop.permute.xlu0 %2259  ;;  %v3671_v49 = vpop.f32.mrb[60].mxu0 }
 0xecc   : > { %2282 = vst.msk [vmem:[%s5079_s17 + $0x8] sm:$0xf] %vm2279_vm7, %v2260_v45  ;;  %v2886_v58 = vpop.f32.mrb[61].mxu0  ;;  %v2915_v34 = vmul.f32 %v4010_v39, %v3671_v49 }
 0xecd   : > { %v2913_v6 = vmul.f32 %v4008_v63, %v2886_v58  ;;  %v3672_v10 = vpop.f32.mrb[62].mxu0 }
 0xece   : > { %v2889_v4 = vpop.f32.mrb[63].mxu0  ;;  %v3287_v11 = vpack.c.bf16 %v2915_v34, %v2915_v34 }
 0xecf   : > { %v3285_v25 = vpack.c.bf16 %v2913_v6, %v2913_v6  ;;  %v2264_v62 = vpop.permute.xlu0 %2263 }
 0xed0   : > { %2284 = vst.msk [vmem:[%s5079_s17 + $0x10] sm:$0xf] %vm2279_vm7, %v2264_v62 }
 0xed1   : > { %2949 = vrot.lane.b32.xlu0 %v3285_v25, %s4068_s19 }
 0xed3   : > { %v2268_v13 = vpop.permute.xlu0 %2267 }
 0xed4   : > { %2286 = vst.msk [vmem:[%s5079_s17 + $0x18] sm:$0xf] %vm2279_vm7, %v2268_v13 }
 0xed5   : > { %2953 = vrot.lane.b32.xlu0 %v3287_v11, %s4068_s19 }
 0xed7   : > { %v2599_v50 = vpop.permute.xlu0 %2598 }
 0xed8   : > { %2623 = vst.msk [vmem:[%s5079_s17] sm:$0xf] %vm2622_vm8, %v2599_v50 }
 0xedb   : > { %v2603_v46 = vpop.permute.xlu0 %2602 }
 0xedc   : > { %2625 = vst.msk [vmem:[%s5079_s17 + $0x8] sm:$0xf] %vm2622_vm8, %v2603_v46 }
 0xedf   : > { %v2607_v26 = vpop.permute.xlu0 %2606 }
 0xee0   : > { %2627 = vst.msk [vmem:[%s5079_s17 + $0x10] sm:$0xf] %vm2622_vm8, %v2607_v26 }
 0xee3   : > { %v2611_v44 = vpop.permute.xlu0 %2610 }
 0xee4   : > { %2629 = vst.msk [vmem:[%s5079_s17 + $0x18] sm:$0xf] %vm2622_vm8, %v2611_v44 }
 0xee8   : > { %v2807_v2 = vpop.xlane.xlu1 %2806 }
 0xee9   : > { %4011 = vrcp.f32 %v2807_v2 }
 0xeec   : > { %v2801_v3 = vpop.xlane.xlu1 %2800 }
 0xeed   : > { %4013 = vrcp.f32 %v2801_v3 }
 0xef0   : > { %v1923_v29 = vpop.permute.xlu1 %1922 }
 0xef1   : > { %1942 = vst.msk [vmem:[%s5079_s17 + $0x14] sm:$0xf] %vm1936_vm6, %v1923_v29 }
 0xef3   : > { %v4012_v55 = vpop.eup %4011 }
 0xef4   : > { %v1927_v33 = vpop.permute.xlu1 %1926  ;;  %v2916_v38 = vmul.f32 %v4012_v55, %v3672_v10 }
 0xef5   : > { %1944 = vst.msk [vmem:[%s5079_s17 + $0x1c] sm:$0xf] %vm1936_vm6, %v1927_v33 }
 0xef6   : > { %v3288_v21 = vpack.c.bf16 %v2916_v38, %v2916_v38 }
 0xef7   : > { %v4014_v1 = vpop.eup %4013 }
 0xef8   : > { %v2258_v54 = vpop.permute.xlu1 %2257  ;;  %v2914_v53 = vmul.f32 %v4014_v1, %v2889_v4 }
 0xef9   : > { %2281 = vst.msk [vmem:[%s5079_s17 + $0x4] sm:$0xf] %vm2279_vm7, %v2258_v54 }
 0xefa   : > { %v3286_v48 = vpack.c.bf16 %v2914_v53, %v2914_v53 }
 0xefc   : > { %2951 = vrot.lane.b32.xlu1 %v3286_v48, %s4068_s19  ;;  %v2262_v42 = vpop.permute.xlu1 %2261 }
 0xefd   : > { %2283 = vst.msk [vmem:[%s5079_s17 + $0xc] sm:$0xf] %vm2279_vm7, %v2262_v42 }
 0xf00   : > { %2955 = vrot.lane.b32.xlu1 %v3288_v21, %s4068_s19  ;;  %v2266_v40 = vpop.permute.xlu1 %2265 }
 0xf01   : > { %2285 = vst.msk [vmem:[%s5079_s17 + $0x14] sm:$0xf] %vm2279_vm7, %v2266_v40 }
 0xf04   : > { %v2270_v56 = vpop.permute.xlu1 %2269 }
 0xf05   : > { %2287 = vst.msk [vmem:[%s5079_s17 + $0x1c] sm:$0xf] %vm2279_vm7, %v2270_v56 }
 0xf08   : > { %v2601_v5 = vpop.permute.xlu1 %2600 }
 0xf09   : > { %2624 = vst.msk [vmem:[%s5079_s17 + $0x4] sm:$0xf] %vm2622_vm8, %v2601_v5 }
 0xf0c   : > { %v2605_v52 = vpop.permute.xlu1 %2604 }
 0xf0d   : > { %2626 = vst.msk [vmem:[%s5079_s17 + $0xc] sm:$0xf] %vm2622_vm8, %v2605_v52 }
 0xf10   : > { %v2609_v17 = vpop.permute.xlu1 %2608 }
 0xf11   : > { %2628 = vst.msk [vmem:[%s5079_s17 + $0x14] sm:$0xf] %vm2622_vm8, %v2609_v17 }
 0xf14   : > { %v2613_v59 = vpop.permute.xlu1 %2612 }
 0xf15   : > { %2630 = vst.msk [vmem:[%s5079_s17 + $0x1c] sm:$0xf] %vm2622_vm8, %v2613_v59 }
 0xf2d   : > { %v2946_v28 = vpop.permute.xlu0 %2945 }
 0xf2e   : > { %2968 = vst.msk [vmem:[%s5079_s17 + $0x8] sm:$0xf] %vm2965_vm9, %v2946_v28 }
 0xf31   : > { %v2942_v31 = vpop.permute.xlu0 %2941 }
 0xf32   : > { %2966 = vst.msk [vmem:[%s5079_s17] sm:$0xf] %vm2965_vm9, %v2942_v31  ;;  %v2948_v27 = vpop.permute.xlu1 %2947 }
 0xf33   : > { %2969 = vst.msk [vmem:[%s5079_s17 + $0xc] sm:$0xf] %vm2965_vm9, %v2948_v27 }
 0xf36   : > { %v2944_v32 = vpop.permute.xlu1 %2943 }
 0xf37   : > { %2967 = vst.msk [vmem:[%s5079_s17 + $0x4] sm:$0xf] %vm2965_vm9, %v2944_v32 }
 0xf43   : > { %v2950_v14 = vpop.permute.xlu0 %2949 }
 0xf44   : > { %2970 = vst.msk [vmem:[%s5079_s17 + $0x10] sm:$0xf] %vm2965_vm9, %v2950_v14 }
 0xf47   : > { %v2954_v0 = vpop.permute.xlu0 %2953 }
 0xf48   : > { %2972 = vst.msk [vmem:[%s5079_s17 + $0x18] sm:$0xf] %vm2965_vm9, %v2954_v0 }
 0xf6e   : > { %v2952_v7 = vpop.permute.xlu1 %2951 }
 0xf6f   : > { %2971 = vst.msk [vmem:[%s5079_s17 + $0x14] sm:$0xf] %vm2965_vm9, %v2952_v7 }
 0xf72   : > { %v2956_v15 = vpop.permute.xlu1 %2955 }
 0xf73   : > { %2973 = vst.msk [vmem:[%s5079_s17 + $0x1c] sm:$0xf] %vm2965_vm9, %v2956_v15 }
 0xf74 PF: > { %s12_s11 = sadd.s32 1, %s4045_s11   ;;  %s5451_s9 = smov %s4041_s10 }
 0xf75   : > { %p9_p5 = scmp.ge.s32.totalorder %s12_s11, 4   ;;  %s5452_s10 = smov %s5454_s12 }
 0xf77   :  { %11 = sbr.rel (!%p9_p5) target bundleno = 2 (0x2), region = 61 }

</bundles_post_ra>
